<compile_context>
chip_gen: v5e
topology: v5e:2x2
jax: 0.10.0
libtpu: 0.0.40
codegen_flags: <defaults>
</compile_context>

<pallas_src>
import functools
import numpy as np
import jax
import jax.numpy as jnp
from jax.experimental import pallas as pl
from jax.experimental.pallas import tpu as pltpu


# ----------------------------- small math helpers -----------------------------

def _elu(v):
    # F.elu with alpha=1, safe against exp overflow under jnp.where
    return jnp.where(v > 0, v, jnp.exp(jnp.minimum(v, 0.0)) - 1.0)


def _inorm_cl(x, g, b, eps=1e-6):
    # InstanceNorm1d on a single (C, L) tile; g, b are (C, 1).  eps=1e-6 matches the
    # module (all InstanceNorm1d are constructed with eps=1e-06).  Stats in f32.
    mu = jnp.mean(x, axis=-1, keepdims=True)
    var = jnp.mean((x - mu) ** 2, axis=-1, keepdims=True)
    return (x - mu) * jax.lax.rsqrt(var + eps) * g + b


# ------------------------------ fused kernel -----------------------------------

def fused_kernel(f2d_ref, mask_ref, a_ref, s_ref, wr_ref, br_ref,
                 inr_g_ref, inr_b_ref, pw_ref, pb_ref,
                 in1g_ref, in1b_ref, w1_ref, b1_ref,
                 in2g_ref, in2b_ref, w2p_ref, b2_ref,
                 in3g_ref, in3b_ref, w3_ref, b3_ref,
                 se1w_ref, se1b_ref, se2w_ref, se2b_ref,
                 out_ref, *, dil_list):
    # f2d_ref: (1, Cin, L*L)  mask_ref: (1, 1, L*L)  a_ref: (H, L*L) softmaxed
    # s_ref: (L*L, L) segment-sum matrix (p = i*L + j -> i)
    # wr/br: conv2d_reduct;  pw/pb: init 1x1 projection
    # per-block stacks: in*_g/b (NB,*,1), w1 (NB,Ch,C), w2p (NB,Ch,3*Ch), w3 (NB,C,Ch),
    #                   se1w (NB,Cr,C), se2w (NB,C,Cr)
    # out_ref: (1, C, L) with C = H * C_red (head-major channel order)
    H = a_ref.shape[0]
    C_red = wr_ref.shape[0]
    LL = f2d_ref.shape[-1]
    L = s_ref.shape[-1]

    # ---- stage 1: conv2d_reduct (1x1) + aa-mask + attention-weighted segment sum
    x2d = f2d_ref[0]                                                     # (Cin, LL)
    y = jnp.dot(wr_ref[...], x2d, preferred_element_type=jnp.float32)    # (C_red, LL)
    y = y + br_ref[...]
    y = y * mask_ref[0]                                                  # mask over j
    a = a_ref[...]                                                       # (H, LL)
    # all heads in one matmul: rows ordered h*C_red + c (matches reshape(B,-1,L))
    z_all = (y[None, :, :] * a[:, None, :]).reshape(H * C_red, LL)       # (C, LL)
    x = jnp.dot(z_all, s_ref[...], preferred_element_type=jnp.float32)   # (C, L)

    # ---- stage 2: inorm_reduct + ELU + init 1x1 projection
    x = _elu(_inorm_cl(x, inr_g_ref[...], inr_b_ref[...]))
    x = jnp.dot(pw_ref[...], x, preferred_element_type=jnp.float32) + pb_ref[...]

    # ---- stage 3: residual trunk (statically unrolled)
    NB = w1_ref.shape[0]
    for blk in range(NB):
        d = int(dil_list[blk])
        res = x
        h = _elu(_inorm_cl(x, in1g_ref[blk], in1b_ref[blk]))
        h = jnp.dot(w1_ref[blk], h, preferred_element_type=jnp.float32) + b1_ref[blk]
        h = _elu(_inorm_cl(h, in2g_ref[blk], in2b_ref[blk]))

        # dilated k=3 conv: zero-pad + static lane slices (no MXU), stack the 3 taps
        # along sublanes and contract with the pre-packed (Ch, 3*Ch) weight in one dot.
        Ch = h.shape[0]
        zpad = jnp.zeros((Ch, d), dtype=h.dtype)
        h_pad = jnp.concatenate([zpad, h, zpad], axis=-1)                # (Ch, L+2d)
        h_stack = jnp.concatenate(
            [h_pad[:, k * d:k * d + L] for k in range(3)], axis=0)       # (3*Ch, L)
        h = jnp.dot(w2p_ref[blk], h_stack,
                    preferred_element_type=jnp.float32) + b2_ref[blk]    # (Ch, L)

        h = _elu(_inorm_cl(h, in3g_ref[blk], in3b_ref[blk]))
        h = jnp.dot(w3_ref[blk], h, preferred_element_type=jnp.float32) + b3_ref[blk]

        # SE block on VPU/XLU (mean -> linear -> relu -> linear -> relu -> sigmoid),
        # kept off the MXU since these are N=1 products on the serial critical path.
        z = jnp.mean(h, axis=-1)                                         # (C,)
        s1 = jnp.maximum(
            jnp.sum(se1w_ref[blk] * z[None, :], axis=-1) + se1b_ref[blk][:, 0], 0.0)
        s2 = jnp.maximum(
            jnp.sum(se2w_ref[blk] * s1[None, :], axis=-1) + se2b_ref[blk][:, 0], 0.0)
        scale = jax.nn.sigmoid(s2)[:, None]                              # (C, 1)
        x = h * scale + res

    out_ref[0] = _elu(x)


# ------------------------------- JAX glue / wrapper ----------------------------

def _rep_spec(arr):
    nd = arr.ndim
    return pl.BlockSpec(arr.shape, lambda b, _nd=nd: (0,) * _nd)


def forward_pallas(params, f2d, aa_mask, dilations, num_chunks):
    B, Cin, L, _ = f2d.shape
    H = params['A'].shape[0]
    C_red = params['wr'].shape[0]
    C = H * C_red
    NB = params['w1'].shape[0]
    Ch = params['w1'].shape[1]
    LL = L * L

    # glue: softmax of the tiny attention weights, flattening, segment-sum matrix
    A_sm = jax.nn.softmax(params['A'][:, :L, :L], axis=-1).reshape(H, LL)
    f2d_flat = f2d.reshape(B, Cin, LL)
    mask3 = jnp.tile(aa_mask, (1, L)).reshape(B, 1, LL)   # mask[b, i*L+j] = aa_mask[b, j]
    S = jnp.asarray(np.repeat(np.eye(L, dtype=np.float32), L, axis=0))     # (LL, L)

    dil_list = tuple(d for _ in range(num_chunks) for d in dilations)
    # pack the 3 conv taps on the contraction axis: w2p[blk, o, k*Ch + c] = w2[blk, k, o, c]
    w2p = params['w2'].transpose(0, 2, 1, 3).reshape(NB, Ch, 3 * Ch)

    reps = [A_sm, S, params['wr'], params['br'],
            params['inr_g'], params['inr_b'], params['proj_w'], params['proj_b'],
            params['in1_g'], params['in1_b'], params['w1'], params['b1'],
            params['in2_g'], params['in2_b'], w2p, params['b2'],
            params['in3_g'], params['in3_b'], params['w3'], params['b3'],
            params['se1_w'], params['se1_b'], params['se2_w'], params['se2_b']]

    kernel = functools.partial(fused_kernel, dil_list=dil_list)

    out = pl.pallas_call(
        kernel,
        out_shape=jax.ShapeDtypeStruct((B, C, L), jnp.float32),
        grid=(B,),
        in_specs=[pl.BlockSpec((1, Cin, LL), lambda b: (b, 0, 0)),
                  pl.BlockSpec((1, 1, LL), lambda b: (b, 0, 0))]
                 + [_rep_spec(a) for a in reps],
        out_specs=pl.BlockSpec((1, C, L), lambda b: (b, 0, 0)),
        compiler_params=pltpu.CompilerParams(dimension_semantics=("parallel",)),
    )(f2d_flat, mask3, *reps)
    return out


# --------------------------- pure-JAX reference (check) ------------------------

def _inorm_bcl(x, g, b, eps=1e-6):
    mu = x.mean(-1, keepdims=True)
    var = ((x - mu) ** 2).mean(-1, keepdims=True)
    return (x - mu) / jnp.sqrt(var + eps) * g[None] + b[None]


def _shift_ref(x, off):
    L = x.shape[-1]
    if off == 0:
        return x
    if off > 0:
        pad = jnp.zeros(x.shape[:-1] + (off,), x.dtype)
        return jnp.concatenate([x[..., off:], pad], axis=-1)
    o = -off
    pad = jnp.zeros(x.shape[:-1] + (o,), x.dtype)
    return jnp.concatenate([pad, x[..., :L - o]], axis=-1)


def reference_forward(params, f2d, aa_mask, dilations, num_chunks):
    with jax.default_matmul_precision('float32'):
        B, Cin, L, _ = f2d.shape
        H = params['A'].shape[0]
        C = H * params['wr'].shape[0]
        y = jnp.einsum('ok,bkij->boij', params['wr'], f2d) + params['br'][:, 0][None, :, None, None]
        y = y * aa_mask[:, None, None, :]
        A_sm = jax.nn.softmax(params['A'][:, :L, :L], axis=-1)
        x = jnp.einsum('bcij,hij->bhci', y, A_sm).reshape(B, C, L)
        x = _elu(_inorm_bcl(x, params['inr_g'], params['inr_b']))
        x = jnp.einsum('oc,bcl->bol', params['proj_w'], x) + params['proj_b'][None]
        dil_list = [d for _ in range(num_chunks) for d in dilations]
        for blk, d in enumerate(dil_list):
            res = x
            h = _elu(_inorm_bcl(x, params['in1_g'][blk], params['in1_b'][blk]))
            h = jnp.einsum('oc,bcl->bol', params['w1'][blk], h) + params['b1'][blk][None]
            h = _elu(_inorm_bcl(h, params['in2_g'][blk], params['in2_b'][blk]))
            h = sum(jnp.einsum('oc,bcl->bol', params['w2'][blk, k], _shift_ref(h, (k - 1) * d))
                    for k in range(3)) + params['b2'][blk][None]
            h = _elu(_inorm_bcl(h, params['in3_g'][blk], params['in3_b'][blk]))
            h = jnp.einsum('oc,bcl->bol', params['w3'][blk], h) + params['b3'][blk][None]
            z = jnp.mean(h, axis=-1)
            s1 = jnp.maximum(jnp.einsum('rc,bc->br', params['se1_w'][blk], z)
                             + params['se1_b'][blk][:, 0][None], 0.0)
            s2 = jnp.maximum(jnp.einsum('cr,br->bc', params['se2_w'][blk], s1)
                             + params['se2_b'][blk][:, 0][None], 0.0)
            x = h * jax.nn.sigmoid(s2)[:, :, None] + res
        return _elu(x)


# ------------------------------ parameter creation -----------------------------

def make_params(key, Cin, C, H, L_max, num_chunks, dilations):
    C_red = C // H
    Ch = C // 2
    Cr = C // 16
    NB = num_chunks * len(dilations)
    keys = iter(jax.random.split(key, 64))

    def nrm(shape, std=0.05):
        return std * jax.random.normal(next(keys), shape, dtype=jnp.float32)

    p = {}
    p['wr'] = nrm((C_red, Cin))                 # conv2d_reduct (1x1) weight
    p['br'] = nrm((C_red, 1))                   # conv2d_reduct bias
    p['A'] = 1.0 + 0.02 * jax.random.normal(next(keys), (H, L_max, L_max), jnp.float32)
    p['inr_g'] = 1.0 + nrm((C, 1), 0.1)
    p['inr_b'] = nrm((C, 1), 0.1)
    p['proj_w'] = nrm((C, C))
    p['proj_b'] = nrm((C, 1))
    p['in1_g'] = 1.0 + nrm((NB, C, 1), 0.1)
    p['in1_b'] = nrm((NB, C, 1), 0.1)
    p['w1'] = nrm((NB, Ch, C))
    p['b1'] = nrm((NB, Ch, 1))
    p['in2_g'] = 1.0 + nrm((NB, Ch, 1), 0.1)
    p['in2_b'] = nrm((NB, Ch, 1), 0.1)
    p['w2'] = nrm((NB, 3, Ch, Ch))              # [blk, tap k, out, in]
    p['b2'] = nrm((NB, Ch, 1))
    p['in3_g'] = 1.0 + nrm((NB, Ch, 1), 0.1)
    p['in3_b'] = nrm((NB, Ch, 1), 0.1)
    p['w3'] = nrm((NB, C, Ch))
    p['b3'] = nrm((NB, C, 1))
    p['se1_w'] = nrm((NB, Cr, C))
    p['se1_b'] = nrm((NB, Cr, 1))
    p['se2_w'] = nrm((NB, C, Cr))
    p['se2_b'] = nrm((NB, C, 1))
    return p


# ------------------------------------ main --------------------------------------

if __name__ == "__main__":
    # small config consistent with the module:
    #   init_channels=8, num_channels=32, num_interact_transf_atten=4,
    #   num_chunks=1, seq_max_length=24, seq length L=16, use_region_atten=False
    B, Cin, L, Lmax = 2, 8, 16, 24
    C, H, num_chunks = 32, 4, 1
    dilations = (1, 2, 4, 8)

    key = jax.random.PRNGKey(0)
    kp, kx, km = jax.random.split(key, 3)
    params = make_params(kp, Cin, C, H, Lmax, num_chunks, dilations)

    f2d_tile = jax.random.normal(kx, (B, Cin, L, L), dtype=jnp.float32)
    aa_mask = (jax.random.uniform(km, (B, L)) > 0.25).astype(jnp.float32)

    out = forward_pallas(params, f2d_tile, aa_mask, dilations, num_chunks)
    out = jax.block_until_ready(out)

    ref = reference_forward(params, f2d_tile, aa_mask, dilations, num_chunks)
    err = float(jnp.max(jnp.abs(out - ref)))

    assert out.shape == (B, C, L)
    assert not bool(jnp.any(jnp.isnan(out)))
    assert err < 1e-2, f"max abs err vs reference = {err}"

    # TODO(synk): MultiHeadRegionalAttention1D path not implemented (disabled by
    # use_region_atten=False default, matching the module defaults).
    print("KERNEL_OK")
</pallas_src>

<mosaic_0001>
module attributes {stable_mosaic.version = 11 : i64} {
  func.func @fused_kernel(%arg0: i32, %arg1: memref<1x8x256xf32, #tpu.memory_space<vmem>>, %arg2: memref<1x1x256xf32, #tpu.memory_space<vmem>>, %arg3: memref<4x256xf32, #tpu.memory_space<vmem>>, %arg4: memref<256x16xf32, #tpu.memory_space<vmem>>, %arg5: memref<8x8xf32, #tpu.memory_space<vmem>>, %arg6: memref<8x1xf32, #tpu.memory_space<vmem>>, %arg7: memref<32x1xf32, #tpu.memory_space<vmem>>, %arg8: memref<32x1xf32, #tpu.memory_space<vmem>>, %arg9: memref<32x32xf32, #tpu.memory_space<vmem>>, %arg10: memref<32x1xf32, #tpu.memory_space<vmem>>, %arg11: memref<4x32x1xf32, #tpu.memory_space<vmem>>, %arg12: memref<4x32x1xf32, #tpu.memory_space<vmem>>, %arg13: memref<4x16x32xf32, #tpu.memory_space<vmem>>, %arg14: memref<4x16x1xf32, #tpu.memory_space<vmem>>, %arg15: memref<4x16x1xf32, #tpu.memory_space<vmem>>, %arg16: memref<4x16x1xf32, #tpu.memory_space<vmem>>, %arg17: memref<4x16x48xf32, #tpu.memory_space<vmem>>, %arg18: memref<4x16x1xf32, #tpu.memory_space<vmem>>, %arg19: memref<4x16x1xf32, #tpu.memory_space<vmem>>, %arg20: memref<4x16x1xf32, #tpu.memory_space<vmem>>, %arg21: memref<4x32x16xf32, #tpu.memory_space<vmem>>, %arg22: memref<4x32x1xf32, #tpu.memory_space<vmem>>, %arg23: memref<4x2x32xf32, #tpu.memory_space<vmem>>, %arg24: memref<4x2x1xf32, #tpu.memory_space<vmem>>, %arg25: memref<4x32x2xf32, #tpu.memory_space<vmem>>, %arg26: memref<4x32x1xf32, #tpu.memory_space<vmem>>, %arg27: memref<1x32x16xf32, #tpu.memory_space<vmem>>) attributes {dimension_semantics = [#tpu.dimension_semantics<parallel>], iteration_bounds = array<i64: 2>, scalar_prefetch = 0 : i64, scratch_operands = 0 : i64, tpu.core_type = #tpu.core_type<tc>, window_params = [{transform_indices = @transform_0, window_bounds = array<i64: 1, 8, 256>}, {transform_indices = @transform_1, window_bounds = array<i64: 1, 1, 256>}, {pipeline_mode = #tpu.pipeline_mode<synchronous>, transform_indices = @transform_2, window_bounds = array<i64: 4, 256>}, {pipeline_mode = #tpu.pipeline_mode<synchronous>, transform_indices = @transform_3, window_bounds = array<i64: 256, 16>}, {pipeline_mode = #tpu.pipeline_mode<synchronous>, transform_indices = @transform_4, window_bounds = array<i64: 8, 8>}, {pipeline_mode = #tpu.pipeline_mode<synchronous>, transform_indices = @transform_5, window_bounds = array<i64: 8, 1>}, {pipeline_mode = #tpu.pipeline_mode<synchronous>, transform_indices = @transform_6, window_bounds = array<i64: 32, 1>}, {pipeline_mode = #tpu.pipeline_mode<synchronous>, transform_indices = @transform_7, window_bounds = array<i64: 32, 1>}, {pipeline_mode = #tpu.pipeline_mode<synchronous>, transform_indices = @transform_8, window_bounds = array<i64: 32, 32>}, {pipeline_mode = #tpu.pipeline_mode<synchronous>, transform_indices = @transform_9, window_bounds = array<i64: 32, 1>}, {pipeline_mode = #tpu.pipeline_mode<synchronous>, transform_indices = @transform_10, window_bounds = array<i64: 4, 32, 1>}, {pipeline_mode = #tpu.pipeline_mode<synchronous>, transform_indices = @transform_11, window_bounds = array<i64: 4, 32, 1>}, {pipeline_mode = #tpu.pipeline_mode<synchronous>, transform_indices = @transform_12, window_bounds = array<i64: 4, 16, 32>}, {pipeline_mode = #tpu.pipeline_mode<synchronous>, transform_indices = @transform_13, window_bounds = array<i64: 4, 16, 1>}, {pipeline_mode = #tpu.pipeline_mode<synchronous>, transform_indices = @transform_14, window_bounds = array<i64: 4, 16, 1>}, {pipeline_mode = #tpu.pipeline_mode<synchronous>, transform_indices = @transform_15, window_bounds = array<i64: 4, 16, 1>}, {pipeline_mode = #tpu.pipeline_mode<synchronous>, transform_indices = @transform_16, window_bounds = array<i64: 4, 16, 48>}, {pipeline_mode = #tpu.pipeline_mode<synchronous>, transform_indices = @transform_17, window_bounds = array<i64: 4, 16, 1>}, {pipeline_mode = #tpu.pipeline_mode<synchronous>, transform_indices = @transform_18, window_bounds = array<i64: 4, 16, 1>}, {pipeline_mode = #tpu.pipeline_mode<synchronous>, transform_indices = @transform_19, window_bounds = array<i64: 4, 16, 1>}, {pipeline_mode = #tpu.pipeline_mode<synchronous>, transform_indices = @transform_20, window_bounds = array<i64: 4, 32, 16>}, {pipeline_mode = #tpu.pipeline_mode<synchronous>, transform_indices = @transform_21, window_bounds = array<i64: 4, 32, 1>}, {pipeline_mode = #tpu.pipeline_mode<synchronous>, transform_indices = @transform_22, window_bounds = array<i64: 4, 2, 32>}, {pipeline_mode = #tpu.pipeline_mode<synchronous>, transform_indices = @transform_23, window_bounds = array<i64: 4, 2, 1>}, {pipeline_mode = #tpu.pipeline_mode<synchronous>, transform_indices = @transform_24, window_bounds = array<i64: 4, 32, 2>}, {pipeline_mode = #tpu.pipeline_mode<synchronous>, transform_indices = @transform_25, window_bounds = array<i64: 4, 32, 1>}, {transform_indices = @transform_26, window_bounds = array<i64: 1, 32, 16>}]} {
    %c0 = arith.constant 0 : index
    %c0_0 = arith.constant 0 : index
    %c0_1 = arith.constant 0 : index
    %0 = vector.load %arg1[%c0, %c0_0, %c0_1] : memref<1x8x256xf32, #tpu.memory_space<vmem>>, vector<1x8x256xf32>
    %1 = vector.shape_cast %0 : vector<1x8x256xf32> to vector<8x256xf32>
    %c0_2 = arith.constant 0 : index
    %c0_3 = arith.constant 0 : index
    %2 = vector.load %arg5[%c0_2, %c0_3] : memref<8x8xf32, #tpu.memory_space<vmem>>, vector<8x8xf32>
    %cst = arith.constant dense<0.000000e+00> : vector<8x256xf32>
    %3 = tpu.matmul %2, %1, %cst {dimension_numbers = #tpu.dot_dimension_numbers<[1], [0], [0], [1], [0, 0, 1, 1], [], []>} : vector<8x8xf32>, vector<8x256xf32>, vector<8x256xf32> -> vector<8x256xf32>
    %c0_4 = arith.constant 0 : index
    %c0_5 = arith.constant 0 : index
    %4 = vector.load %arg6[%c0_4, %c0_5] : memref<8x1xf32, #tpu.memory_space<vmem>>, vector<8x1xf32>
    %5 = vector.broadcast %4 : vector<8x1xf32> to vector<8x256xf32>
    %6 = arith.addf %3, %5 : vector<8x256xf32>
    %c0_6 = arith.constant 0 : index
    %c0_7 = arith.constant 0 : index
    %c0_8 = arith.constant 0 : index
    %7 = vector.load %arg2[%c0_6, %c0_7, %c0_8] : memref<1x1x256xf32, #tpu.memory_space<vmem>>, vector<1x1x256xf32>
    %8 = vector.shape_cast %7 : vector<1x1x256xf32> to vector<1x256xf32>
    %9 = vector.broadcast %8 : vector<1x256xf32> to vector<8x256xf32>
    %10 = arith.mulf %6, %9 : vector<8x256xf32>
    %c0_9 = arith.constant 0 : index
    %c0_10 = arith.constant 0 : index
    %11 = vector.load %arg3[%c0_9, %c0_10] : memref<4x256xf32, #tpu.memory_space<vmem>>, vector<4x256xf32>
    %12 = vector.shape_cast %10 : vector<8x256xf32> to vector<1x8x256xf32>
    %13 = vector.shape_cast %11 : vector<4x256xf32> to vector<4x1x256xf32>
    %14 = vector.broadcast %12 : vector<1x8x256xf32> to vector<4x8x256xf32>
    %15 = vector.broadcast %13 : vector<4x1x256xf32> to vector<4x8x256xf32>
    %16 = arith.mulf %14, %15 : vector<4x8x256xf32>
    %17 = vector.shape_cast %16 : vector<4x8x256xf32> to vector<32x256xf32>
    %c0_11 = arith.constant 0 : index
    %c0_12 = arith.constant 0 : index
    %18 = vector.load %arg4[%c0_11, %c0_12] : memref<256x16xf32, #tpu.memory_space<vmem>>, vector<256x16xf32>
    %cst_13 = arith.constant dense<0.000000e+00> : vector<32x16xf32>
    %19 = tpu.matmul %17, %18, %cst_13 {dimension_numbers = #tpu.dot_dimension_numbers<[1], [0], [0], [1], [0, 0, 1, 1], [], []>} : vector<32x256xf32>, vector<256x16xf32>, vector<32x16xf32> -> vector<32x16xf32>
    %c0_14 = arith.constant 0 : index
    %c0_15 = arith.constant 0 : index
    %20 = vector.load %arg7[%c0_14, %c0_15] : memref<32x1xf32, #tpu.memory_space<vmem>>, vector<32x1xf32>
    %c0_16 = arith.constant 0 : index
    %c0_17 = arith.constant 0 : index
    %21 = vector.load %arg8[%c0_16, %c0_17] : memref<32x1xf32, #tpu.memory_space<vmem>>, vector<32x1xf32>
    %cst_18 = arith.constant dense<0.000000e+00> : vector<32xf32>
    %22 = vector.multi_reduction <add>, %19, %cst_18 [1] : vector<32x16xf32> to vector<32xf32>
    %23 = vector.shape_cast %22 : vector<32xf32> to vector<32x1xf32>
    %cst_19 = arith.constant 1.600000e+01 : f32
    %24 = vector.broadcast %cst_19 : f32 to vector<32x1xf32>
    %25 = arith.divf %23, %24 : vector<32x1xf32>
    %26 = vector.broadcast %25 : vector<32x1xf32> to vector<32x16xf32>
    %27 = arith.subf %19, %26 : vector<32x16xf32>
    %28 = arith.mulf %27, %27 : vector<32x16xf32>
    %cst_20 = arith.constant dense<0.000000e+00> : vector<32xf32>
    %29 = vector.multi_reduction <add>, %28, %cst_20 [1] : vector<32x16xf32> to vector<32xf32>
    %30 = vector.shape_cast %29 : vector<32xf32> to vector<32x1xf32>
    %cst_21 = arith.constant 1.600000e+01 : f32
    %31 = vector.broadcast %cst_21 : f32 to vector<32x1xf32>
    %32 = arith.divf %30, %31 : vector<32x1xf32>
    %33 = vector.broadcast %25 : vector<32x1xf32> to vector<32x16xf32>
    %34 = arith.subf %19, %33 : vector<32x16xf32>
    %cst_22 = arith.constant 9.99999997E-7 : f32
    %35 = vector.broadcast %cst_22 : f32 to vector<32x1xf32>
    %36 = arith.addf %32, %35 : vector<32x1xf32>
    %37 = math.rsqrt %36 : vector<32x1xf32>
    %38 = vector.broadcast %37 : vector<32x1xf32> to vector<32x16xf32>
    %39 = arith.mulf %34, %38 : vector<32x16xf32>
    %40 = vector.broadcast %20 : vector<32x1xf32> to vector<32x16xf32>
    %41 = arith.mulf %39, %40 : vector<32x16xf32>
    %42 = vector.broadcast %21 : vector<32x1xf32> to vector<32x16xf32>
    %43 = arith.addf %41, %42 : vector<32x16xf32>
    %cst_23 = arith.constant 0.000000e+00 : f32
    %44 = vector.broadcast %cst_23 : f32 to vector<32x16xf32>
    %45 = arith.cmpf ogt, %43, %44 : vector<32x16xf32>
    %cst_24 = arith.constant 0.000000e+00 : f32
    %46 = vector.broadcast %cst_24 : f32 to vector<32x16xf32>
    %47 = arith.minimumf %43, %46 : vector<32x16xf32>
    %48 = math.exp %47 : vector<32x16xf32>
    %cst_25 = arith.constant 1.000000e+00 : f32
    %49 = vector.broadcast %cst_25 : f32 to vector<32x16xf32>
    %50 = arith.subf %48, %49 : vector<32x16xf32>
    %51 = arith.select %45, %43, %50 : vector<32x16xi1>, vector<32x16xf32>
    %c0_26 = arith.constant 0 : index
    %c0_27 = arith.constant 0 : index
    %52 = vector.load %arg9[%c0_26, %c0_27] : memref<32x32xf32, #tpu.memory_space<vmem>>, vector<32x32xf32>
    %cst_28 = arith.constant dense<0.000000e+00> : vector<32x16xf32>
    %53 = tpu.matmul %52, %51, %cst_28 {dimension_numbers = #tpu.dot_dimension_numbers<[1], [0], [0], [1], [0, 0, 1, 1], [], []>} : vector<32x32xf32>, vector<32x16xf32>, vector<32x16xf32> -> vector<32x16xf32>
    %c0_29 = arith.constant 0 : index
    %c0_30 = arith.constant 0 : index
    %54 = vector.load %arg10[%c0_29, %c0_30] : memref<32x1xf32, #tpu.memory_space<vmem>>, vector<32x1xf32>
    %55 = vector.broadcast %54 : vector<32x1xf32> to vector<32x16xf32>
    %56 = arith.addf %53, %55 : vector<32x16xf32>
    %c0_31 = arith.constant 0 : index
    %c0_32 = arith.constant 0 : index
    %c0_33 = arith.constant 0 : index
    %57 = vector.load %arg11[%c0_31, %c0_32, %c0_33] : memref<4x32x1xf32, #tpu.memory_space<vmem>>, vector<1x32x1xf32>
    %58 = vector.shape_cast %57 : vector<1x32x1xf32> to vector<32x1xf32>
    %c0_34 = arith.constant 0 : index
    %c0_35 = arith.constant 0 : index
    %c0_36 = arith.constant 0 : index
    %59 = vector.load %arg12[%c0_34, %c0_35, %c0_36] : memref<4x32x1xf32, #tpu.memory_space<vmem>>, vector<1x32x1xf32>
    %60 = vector.shape_cast %59 : vector<1x32x1xf32> to vector<32x1xf32>
    %cst_37 = arith.constant dense<0.000000e+00> : vector<32xf32>
    %61 = vector.multi_reduction <add>, %56, %cst_37 [1] : vector<32x16xf32> to vector<32xf32>
    %62 = vector.shape_cast %61 : vector<32xf32> to vector<32x1xf32>
    %cst_38 = arith.constant 1.600000e+01 : f32
    %63 = vector.broadcast %cst_38 : f32 to vector<32x1xf32>
    %64 = arith.divf %62, %63 : vector<32x1xf32>
    %65 = vector.broadcast %64 : vector<32x1xf32> to vector<32x16xf32>
    %66 = arith.subf %56, %65 : vector<32x16xf32>
    %67 = arith.mulf %66, %66 : vector<32x16xf32>
    %cst_39 = arith.constant dense<0.000000e+00> : vector<32xf32>
    %68 = vector.multi_reduction <add>, %67, %cst_39 [1] : vector<32x16xf32> to vector<32xf32>
    %69 = vector.shape_cast %68 : vector<32xf32> to vector<32x1xf32>
    %cst_40 = arith.constant 1.600000e+01 : f32
    %70 = vector.broadcast %cst_40 : f32 to vector<32x1xf32>
    %71 = arith.divf %69, %70 : vector<32x1xf32>
    %72 = vector.broadcast %64 : vector<32x1xf32> to vector<32x16xf32>
    %73 = arith.subf %56, %72 : vector<32x16xf32>
    %cst_41 = arith.constant 9.99999997E-7 : f32
    %74 = vector.broadcast %cst_41 : f32 to vector<32x1xf32>
    %75 = arith.addf %71, %74 : vector<32x1xf32>
    %76 = math.rsqrt %75 : vector<32x1xf32>
    %77 = vector.broadcast %76 : vector<32x1xf32> to vector<32x16xf32>
    %78 = arith.mulf %73, %77 : vector<32x16xf32>
    %79 = vector.broadcast %58 : vector<32x1xf32> to vector<32x16xf32>
    %80 = arith.mulf %78, %79 : vector<32x16xf32>
    %81 = vector.broadcast %60 : vector<32x1xf32> to vector<32x16xf32>
    %82 = arith.addf %80, %81 : vector<32x16xf32>
    %cst_42 = arith.constant 0.000000e+00 : f32
    %83 = vector.broadcast %cst_42 : f32 to vector<32x16xf32>
    %84 = arith.cmpf ogt, %82, %83 : vector<32x16xf32>
    %cst_43 = arith.constant 0.000000e+00 : f32
    %85 = vector.broadcast %cst_43 : f32 to vector<32x16xf32>
    %86 = arith.minimumf %82, %85 : vector<32x16xf32>
    %87 = math.exp %86 : vector<32x16xf32>
    %cst_44 = arith.constant 1.000000e+00 : f32
    %88 = vector.broadcast %cst_44 : f32 to vector<32x16xf32>
    %89 = arith.subf %87, %88 : vector<32x16xf32>
    %90 = arith.select %84, %82, %89 : vector<32x16xi1>, vector<32x16xf32>
    %c0_45 = arith.constant 0 : index
    %c0_46 = arith.constant 0 : index
    %c0_47 = arith.constant 0 : index
    %91 = vector.load %arg13[%c0_45, %c0_46, %c0_47] : memref<4x16x32xf32, #tpu.memory_space<vmem>>, vector<1x16x32xf32>
    %92 = vector.shape_cast %91 : vector<1x16x32xf32> to vector<16x32xf32>
    %cst_48 = arith.constant dense<0.000000e+00> : vector<16x16xf32>
    %93 = tpu.matmul %92, %90, %cst_48 {dimension_numbers = #tpu.dot_dimension_numbers<[1], [0], [0], [1], [0, 0, 1, 1], [], []>} : vector<16x32xf32>, vector<32x16xf32>, vector<16x16xf32> -> vector<16x16xf32>
    %c0_49 = arith.constant 0 : index
    %c0_50 = arith.constant 0 : index
    %c0_51 = arith.constant 0 : index
    %94 = vector.load %arg14[%c0_49, %c0_50, %c0_51] : memref<4x16x1xf32, #tpu.memory_space<vmem>>, vector<1x16x1xf32>
    %95 = vector.shape_cast %94 : vector<1x16x1xf32> to vector<16x1xf32>
    %96 = vector.broadcast %95 : vector<16x1xf32> to vector<16x16xf32>
    %97 = arith.addf %93, %96 : vector<16x16xf32>
    %c0_52 = arith.constant 0 : index
    %c0_53 = arith.constant 0 : index
    %c0_54 = arith.constant 0 : index
    %98 = vector.load %arg15[%c0_52, %c0_53, %c0_54] : memref<4x16x1xf32, #tpu.memory_space<vmem>>, vector<1x16x1xf32>
    %99 = vector.shape_cast %98 : vector<1x16x1xf32> to vector<16x1xf32>
    %c0_55 = arith.constant 0 : index
    %c0_56 = arith.constant 0 : index
    %c0_57 = arith.constant 0 : index
    %100 = vector.load %arg16[%c0_55, %c0_56, %c0_57] : memref<4x16x1xf32, #tpu.memory_space<vmem>>, vector<1x16x1xf32>
    %101 = vector.shape_cast %100 : vector<1x16x1xf32> to vector<16x1xf32>
    %cst_58 = arith.constant dense<0.000000e+00> : vector<16xf32>
    %102 = vector.multi_reduction <add>, %97, %cst_58 [1] : vector<16x16xf32> to vector<16xf32>
    %103 = vector.shape_cast %102 : vector<16xf32> to vector<16x1xf32>
    %cst_59 = arith.constant 1.600000e+01 : f32
    %104 = vector.broadcast %cst_59 : f32 to vector<16x1xf32>
    %105 = arith.divf %103, %104 : vector<16x1xf32>
    %106 = vector.broadcast %105 : vector<16x1xf32> to vector<16x16xf32>
    %107 = arith.subf %97, %106 : vector<16x16xf32>
    %108 = arith.mulf %107, %107 : vector<16x16xf32>
    %cst_60 = arith.constant dense<0.000000e+00> : vector<16xf32>
    %109 = vector.multi_reduction <add>, %108, %cst_60 [1] : vector<16x16xf32> to vector<16xf32>
    %110 = vector.shape_cast %109 : vector<16xf32> to vector<16x1xf32>
    %cst_61 = arith.constant 1.600000e+01 : f32
    %111 = vector.broadcast %cst_61 : f32 to vector<16x1xf32>
    %112 = arith.divf %110, %111 : vector<16x1xf32>
    %113 = vector.broadcast %105 : vector<16x1xf32> to vector<16x16xf32>
    %114 = arith.subf %97, %113 : vector<16x16xf32>
    %cst_62 = arith.constant 9.99999997E-7 : f32
    %115 = vector.broadcast %cst_62 : f32 to vector<16x1xf32>
    %116 = arith.addf %112, %115 : vector<16x1xf32>
    %117 = math.rsqrt %116 : vector<16x1xf32>
    %118 = vector.broadcast %117 : vector<16x1xf32> to vector<16x16xf32>
    %119 = arith.mulf %114, %118 : vector<16x16xf32>
    %120 = vector.broadcast %99 : vector<16x1xf32> to vector<16x16xf32>
    %121 = arith.mulf %119, %120 : vector<16x16xf32>
    %122 = vector.broadcast %101 : vector<16x1xf32> to vector<16x16xf32>
    %123 = arith.addf %121, %122 : vector<16x16xf32>
    %cst_63 = arith.constant 0.000000e+00 : f32
    %124 = vector.broadcast %cst_63 : f32 to vector<16x16xf32>
    %125 = arith.cmpf ogt, %123, %124 : vector<16x16xf32>
    %cst_64 = arith.constant 0.000000e+00 : f32
    %126 = vector.broadcast %cst_64 : f32 to vector<16x16xf32>
    %127 = arith.minimumf %123, %126 : vector<16x16xf32>
    %128 = math.exp %127 : vector<16x16xf32>
    %cst_65 = arith.constant 1.000000e+00 : f32
    %129 = vector.broadcast %cst_65 : f32 to vector<16x16xf32>
    %130 = arith.subf %128, %129 : vector<16x16xf32>
    %131 = arith.select %125, %123, %130 : vector<16x16xi1>, vector<16x16xf32>
    %cst_66 = arith.constant 0.000000e+00 : f32
    %132 = vector.broadcast %cst_66 : f32 to vector<16x1xf32>
    %133 = tpu.concatenate %132, %131, %132 in 1 : vector<16x1xf32>, vector<16x16xf32>, vector<16x1xf32> -> vector<16x18xf32>
    %134 = vector.extract_strided_slice %133 {offsets = [0, 0], sizes = [16, 16], strides = [1, 1]} : vector<16x18xf32> to vector<16x16xf32>
    %135 = vector.extract_strided_slice %133 {offsets = [0, 1], sizes = [16, 16], strides = [1, 1]} : vector<16x18xf32> to vector<16x16xf32>
    %136 = vector.extract_strided_slice %133 {offsets = [0, 2], sizes = [16, 16], strides = [1, 1]} : vector<16x18xf32> to vector<16x16xf32>
    %137 = tpu.concatenate %134, %135, %136 in 0 : vector<16x16xf32>, vector<16x16xf32>, vector<16x16xf32> -> vector<48x16xf32>
    %c0_67 = arith.constant 0 : index
    %c0_68 = arith.constant 0 : index
    %c0_69 = arith.constant 0 : index
    %138 = vector.load %arg17[%c0_67, %c0_68, %c0_69] : memref<4x16x48xf32, #tpu.memory_space<vmem>>, vector<1x16x48xf32>
    %139 = vector.shape_cast %138 : vector<1x16x48xf32> to vector<16x48xf32>
    %cst_70 = arith.constant dense<0.000000e+00> : vector<16x16xf32>
    %140 = tpu.matmul %139, %137, %cst_70 {dimension_numbers = #tpu.dot_dimension_numbers<[1], [0], [0], [1], [0, 0, 1, 1], [], []>} : vector<16x48xf32>, vector<48x16xf32>, vector<16x16xf32> -> vector<16x16xf32>
    %c0_71 = arith.constant 0 : index
    %c0_72 = arith.constant 0 : index
    %c0_73 = arith.constant 0 : index
    %141 = vector.load %arg18[%c0_71, %c0_72, %c0_73] : memref<4x16x1xf32, #tpu.memory_space<vmem>>, vector<1x16x1xf32>
    %142 = vector.shape_cast %141 : vector<1x16x1xf32> to vector<16x1xf32>
    %143 = vector.broadcast %142 : vector<16x1xf32> to vector<16x16xf32>
    %144 = arith.addf %140, %143 : vector<16x16xf32>
    %c0_74 = arith.constant 0 : index
    %c0_75 = arith.constant 0 : index
    %c0_76 = arith.constant 0 : index
    %145 = vector.load %arg19[%c0_74, %c0_75, %c0_76] : memref<4x16x1xf32, #tpu.memory_space<vmem>>, vector<1x16x1xf32>
    %146 = vector.shape_cast %145 : vector<1x16x1xf32> to vector<16x1xf32>
    %c0_77 = arith.constant 0 : index
    %c0_78 = arith.constant 0 : index
    %c0_79 = arith.constant 0 : index
    %147 = vector.load %arg20[%c0_77, %c0_78, %c0_79] : memref<4x16x1xf32, #tpu.memory_space<vmem>>, vector<1x16x1xf32>
    %148 = vector.shape_cast %147 : vector<1x16x1xf32> to vector<16x1xf32>
    %cst_80 = arith.constant dense<0.000000e+00> : vector<16xf32>
    %149 = vector.multi_reduction <add>, %144, %cst_80 [1] : vector<16x16xf32> to vector<16xf32>
    %150 = vector.shape_cast %149 : vector<16xf32> to vector<16x1xf32>
    %cst_81 = arith.constant 1.600000e+01 : f32
    %151 = vector.broadcast %cst_81 : f32 to vector<16x1xf32>
    %152 = arith.divf %150, %151 : vector<16x1xf32>
    %153 = vector.broadcast %152 : vector<16x1xf32> to vector<16x16xf32>
    %154 = arith.subf %144, %153 : vector<16x16xf32>
    %155 = arith.mulf %154, %154 : vector<16x16xf32>
    %cst_82 = arith.constant dense<0.000000e+00> : vector<16xf32>
    %156 = vector.multi_reduction <add>, %155, %cst_82 [1] : vector<16x16xf32> to vector<16xf32>
    %157 = vector.shape_cast %156 : vector<16xf32> to vector<16x1xf32>
    %cst_83 = arith.constant 1.600000e+01 : f32
    %158 = vector.broadcast %cst_83 : f32 to vector<16x1xf32>
    %159 = arith.divf %157, %158 : vector<16x1xf32>
    %160 = vector.broadcast %152 : vector<16x1xf32> to vector<16x16xf32>
    %161 = arith.subf %144, %160 : vector<16x16xf32>
    %cst_84 = arith.constant 9.99999997E-7 : f32
    %162 = vector.broadcast %cst_84 : f32 to vector<16x1xf32>
    %163 = arith.addf %159, %162 : vector<16x1xf32>
    %164 = math.rsqrt %163 : vector<16x1xf32>
    %165 = vector.broadcast %164 : vector<16x1xf32> to vector<16x16xf32>
    %166 = arith.mulf %161, %165 : vector<16x16xf32>
    %167 = vector.broadcast %146 : vector<16x1xf32> to vector<16x16xf32>
    %168 = arith.mulf %166, %167 : vector<16x16xf32>
    %169 = vector.broadcast %148 : vector<16x1xf32> to vector<16x16xf32>
    %170 = arith.addf %168, %169 : vector<16x16xf32>
    %cst_85 = arith.constant 0.000000e+00 : f32
    %171 = vector.broadcast %cst_85 : f32 to vector<16x16xf32>
    %172 = arith.cmpf ogt, %170, %171 : vector<16x16xf32>
    %cst_86 = arith.constant 0.000000e+00 : f32
    %173 = vector.broadcast %cst_86 : f32 to vector<16x16xf32>
    %174 = arith.minimumf %170, %173 : vector<16x16xf32>
    %175 = math.exp %174 : vector<16x16xf32>
    %cst_87 = arith.constant 1.000000e+00 : f32
    %176 = vector.broadcast %cst_87 : f32 to vector<16x16xf32>
    %177 = arith.subf %175, %176 : vector<16x16xf32>
    %178 = arith.select %172, %170, %177 : vector<16x16xi1>, vector<16x16xf32>
    %c0_88 = arith.constant 0 : index
    %c0_89 = arith.constant 0 : index
    %c0_90 = arith.constant 0 : index
    %179 = vector.load %arg21[%c0_88, %c0_89, %c0_90] : memref<4x32x16xf32, #tpu.memory_space<vmem>>, vector<1x32x16xf32>
    %180 = vector.shape_cast %179 : vector<1x32x16xf32> to vector<32x16xf32>
    %cst_91 = arith.constant dense<0.000000e+00> : vector<32x16xf32>
    %181 = tpu.matmul %180, %178, %cst_91 {dimension_numbers = #tpu.dot_dimension_numbers<[1], [0], [0], [1], [0, 0, 1, 1], [], []>} : vector<32x16xf32>, vector<16x16xf32>, vector<32x16xf32> -> vector<32x16xf32>
    %c0_92 = arith.constant 0 : index
    %c0_93 = arith.constant 0 : index
    %c0_94 = arith.constant 0 : index
    %182 = vector.load %arg22[%c0_92, %c0_93, %c0_94] : memref<4x32x1xf32, #tpu.memory_space<vmem>>, vector<1x32x1xf32>
    %183 = vector.shape_cast %182 : vector<1x32x1xf32> to vector<32x1xf32>
    %184 = vector.broadcast %183 : vector<32x1xf32> to vector<32x16xf32>
    %185 = arith.addf %181, %184 : vector<32x16xf32>
    %cst_95 = arith.constant dense<0.000000e+00> : vector<32xf32>
    %186 = vector.multi_reduction <add>, %185, %cst_95 [1] : vector<32x16xf32> to vector<32xf32>
    %cst_96 = arith.constant 1.600000e+01 : f32
    %187 = vector.broadcast %cst_96 : f32 to vector<32xf32>
    %188 = arith.divf %186, %187 : vector<32xf32>
    %c0_97 = arith.constant 0 : index
    %c0_98 = arith.constant 0 : index
    %c0_99 = arith.constant 0 : index
    %189 = vector.load %arg23[%c0_97, %c0_98, %c0_99] : memref<4x2x32xf32, #tpu.memory_space<vmem>>, vector<1x2x32xf32>
    %190 = vector.shape_cast %189 : vector<1x2x32xf32> to vector<2x32xf32>
    %191 = vector.shape_cast %188 : vector<32xf32> to vector<1x32xf32>
    %192 = vector.broadcast %191 : vector<1x32xf32> to vector<2x32xf32>
    %193 = arith.mulf %190, %192 : vector<2x32xf32>
    %cst_100 = arith.constant dense<0.000000e+00> : vector<2xf32>
    %194 = vector.multi_reduction <add>, %193, %cst_100 [1] : vector<2x32xf32> to vector<2xf32>
    %c0_101 = arith.constant 0 : index
    %c0_102 = arith.constant 0 : index
    %c0_103 = arith.constant 0 : index
    %195 = vector.load %arg24[%c0_101, %c0_102, %c0_103] : memref<4x2x1xf32, #tpu.memory_space<vmem>>, vector<1x2x1xf32>
    %196 = vector.shape_cast %195 : vector<1x2x1xf32> to vector<2x1xf32>
    %197 = vector.shape_cast %196 : vector<2x1xf32> to vector<2xf32>
    %198 = arith.addf %194, %197 : vector<2xf32>
    %cst_104 = arith.constant 0.000000e+00 : f32
    %199 = vector.broadcast %cst_104 : f32 to vector<2xf32>
    %200 = arith.maximumf %198, %199 : vector<2xf32>
    %c0_105 = arith.constant 0 : index
    %c0_106 = arith.constant 0 : index
    %c0_107 = arith.constant 0 : index
    %201 = vector.load %arg25[%c0_105, %c0_106, %c0_107] : memref<4x32x2xf32, #tpu.memory_space<vmem>>, vector<1x32x2xf32>
    %202 = vector.shape_cast %201 : vector<1x32x2xf32> to vector<32x2xf32>
    %203 = vector.shape_cast %200 : vector<2xf32> to vector<1x2xf32>
    %204 = vector.broadcast %203 : vector<1x2xf32> to vector<32x2xf32>
    %205 = arith.mulf %202, %204 : vector<32x2xf32>
    %cst_108 = arith.constant dense<0.000000e+00> : vector<32xf32>
    %206 = vector.multi_reduction <add>, %205, %cst_108 [1] : vector<32x2xf32> to vector<32xf32>
    %c0_109 = arith.constant 0 : index
    %c0_110 = arith.constant 0 : index
    %c0_111 = arith.constant 0 : index
    %207 = vector.load %arg26[%c0_109, %c0_110, %c0_111] : memref<4x32x1xf32, #tpu.memory_space<vmem>>, vector<1x32x1xf32>
    %208 = vector.shape_cast %207 : vector<1x32x1xf32> to vector<32x1xf32>
    %209 = vector.shape_cast %208 : vector<32x1xf32> to vector<32xf32>
    %210 = arith.addf %206, %209 : vector<32xf32>
    %cst_112 = arith.constant 0.000000e+00 : f32
    %211 = vector.broadcast %cst_112 : f32 to vector<32xf32>
    %212 = arith.maximumf %210, %211 : vector<32xf32>
    %213 = arith.negf %212 : vector<32xf32>
    %214 = math.exp %213 : vector<32xf32>
    %cst_113 = arith.constant 1.000000e+00 : f32
    %215 = vector.broadcast %cst_113 : f32 to vector<32xf32>
    %216 = arith.addf %215, %214 : vector<32xf32>
    %217 = arith.divf %215, %216 : vector<32xf32>
    %218 = vector.shape_cast %217 : vector<32xf32> to vector<32x1xf32>
    %219 = vector.broadcast %218 : vector<32x1xf32> to vector<32x16xf32>
    %220 = arith.mulf %185, %219 : vector<32x16xf32>
    %221 = arith.addf %220, %56 : vector<32x16xf32>
    %c1 = arith.constant 1 : index
    %c0_114 = arith.constant 0 : index
    %c0_115 = arith.constant 0 : index
    %222 = vector.load %arg11[%c1, %c0_114, %c0_115] : memref<4x32x1xf32, #tpu.memory_space<vmem>>, vector<1x32x1xf32>
    %223 = vector.shape_cast %222 : vector<1x32x1xf32> to vector<32x1xf32>
    %c1_116 = arith.constant 1 : index
    %c0_117 = arith.constant 0 : index
    %c0_118 = arith.constant 0 : index
    %224 = vector.load %arg12[%c1_116, %c0_117, %c0_118] : memref<4x32x1xf32, #tpu.memory_space<vmem>>, vector<1x32x1xf32>
    %225 = vector.shape_cast %224 : vector<1x32x1xf32> to vector<32x1xf32>
    %cst_119 = arith.constant dense<0.000000e+00> : vector<32xf32>
    %226 = vector.multi_reduction <add>, %221, %cst_119 [1] : vector<32x16xf32> to vector<32xf32>
    %227 = vector.shape_cast %226 : vector<32xf32> to vector<32x1xf32>
    %cst_120 = arith.constant 1.600000e+01 : f32
    %228 = vector.broadcast %cst_120 : f32 to vector<32x1xf32>
    %229 = arith.divf %227, %228 : vector<32x1xf32>
    %230 = vector.broadcast %229 : vector<32x1xf32> to vector<32x16xf32>
    %231 = arith.subf %221, %230 : vector<32x16xf32>
    %232 = arith.mulf %231, %231 : vector<32x16xf32>
    %cst_121 = arith.constant dense<0.000000e+00> : vector<32xf32>
    %233 = vector.multi_reduction <add>, %232, %cst_121 [1] : vector<32x16xf32> to vector<32xf32>
    %234 = vector.shape_cast %233 : vector<32xf32> to vector<32x1xf32>
    %cst_122 = arith.constant 1.600000e+01 : f32
    %235 = vector.broadcast %cst_122 : f32 to vector<32x1xf32>
    %236 = arith.divf %234, %235 : vector<32x1xf32>
    %237 = vector.broadcast %229 : vector<32x1xf32> to vector<32x16xf32>
    %238 = arith.subf %221, %237 : vector<32x16xf32>
    %cst_123 = arith.constant 9.99999997E-7 : f32
    %239 = vector.broadcast %cst_123 : f32 to vector<32x1xf32>
    %240 = arith.addf %236, %239 : vector<32x1xf32>
    %241 = math.rsqrt %240 : vector<32x1xf32>
    %242 = vector.broadcast %241 : vector<32x1xf32> to vector<32x16xf32>
    %243 = arith.mulf %238, %242 : vector<32x16xf32>
    %244 = vector.broadcast %223 : vector<32x1xf32> to vector<32x16xf32>
    %245 = arith.mulf %243, %244 : vector<32x16xf32>
    %246 = vector.broadcast %225 : vector<32x1xf32> to vector<32x16xf32>
    %247 = arith.addf %245, %246 : vector<32x16xf32>
    %cst_124 = arith.constant 0.000000e+00 : f32
    %248 = vector.broadcast %cst_124 : f32 to vector<32x16xf32>
    %249 = arith.cmpf ogt, %247, %248 : vector<32x16xf32>
    %cst_125 = arith.constant 0.000000e+00 : f32
    %250 = vector.broadcast %cst_125 : f32 to vector<32x16xf32>
    %251 = arith.minimumf %247, %250 : vector<32x16xf32>
    %252 = math.exp %251 : vector<32x16xf32>
    %cst_126 = arith.constant 1.000000e+00 : f32
    %253 = vector.broadcast %cst_126 : f32 to vector<32x16xf32>
    %254 = arith.subf %252, %253 : vector<32x16xf32>
    %255 = arith.select %249, %247, %254 : vector<32x16xi1>, vector<32x16xf32>
    %c1_127 = arith.constant 1 : index
    %c0_128 = arith.constant 0 : index
    %c0_129 = arith.constant 0 : index
    %256 = vector.load %arg13[%c1_127, %c0_128, %c0_129] : memref<4x16x32xf32, #tpu.memory_space<vmem>>, vector<1x16x32xf32>
    %257 = vector.shape_cast %256 : vector<1x16x32xf32> to vector<16x32xf32>
    %cst_130 = arith.constant dense<0.000000e+00> : vector<16x16xf32>
    %258 = tpu.matmul %257, %255, %cst_130 {dimension_numbers = #tpu.dot_dimension_numbers<[1], [0], [0], [1], [0, 0, 1, 1], [], []>} : vector<16x32xf32>, vector<32x16xf32>, vector<16x16xf32> -> vector<16x16xf32>
    %c1_131 = arith.constant 1 : index
    %c0_132 = arith.constant 0 : index
    %c0_133 = arith.constant 0 : index
    %259 = vector.load %arg14[%c1_131, %c0_132, %c0_133] : memref<4x16x1xf32, #tpu.memory_space<vmem>>, vector<1x16x1xf32>
    %260 = vector.shape_cast %259 : vector<1x16x1xf32> to vector<16x1xf32>
    %261 = vector.broadcast %260 : vector<16x1xf32> to vector<16x16xf32>
    %262 = arith.addf %258, %261 : vector<16x16xf32>
    %c1_134 = arith.constant 1 : index
    %c0_135 = arith.constant 0 : index
    %c0_136 = arith.constant 0 : index
    %263 = vector.load %arg15[%c1_134, %c0_135, %c0_136] : memref<4x16x1xf32, #tpu.memory_space<vmem>>, vector<1x16x1xf32>
    %264 = vector.shape_cast %263 : vector<1x16x1xf32> to vector<16x1xf32>
    %c1_137 = arith.constant 1 : index
    %c0_138 = arith.constant 0 : index
    %c0_139 = arith.constant 0 : index
    %265 = vector.load %arg16[%c1_137, %c0_138, %c0_139] : memref<4x16x1xf32, #tpu.memory_space<vmem>>, vector<1x16x1xf32>
    %266 = vector.shape_cast %265 : vector<1x16x1xf32> to vector<16x1xf32>
    %cst_140 = arith.constant dense<0.000000e+00> : vector<16xf32>
    %267 = vector.multi_reduction <add>, %262, %cst_140 [1] : vector<16x16xf32> to vector<16xf32>
    %268 = vector.shape_cast %267 : vector<16xf32> to vector<16x1xf32>
    %cst_141 = arith.constant 1.600000e+01 : f32
    %269 = vector.broadcast %cst_141 : f32 to vector<16x1xf32>
    %270 = arith.divf %268, %269 : vector<16x1xf32>
    %271 = vector.broadcast %270 : vector<16x1xf32> to vector<16x16xf32>
    %272 = arith.subf %262, %271 : vector<16x16xf32>
    %273 = arith.mulf %272, %272 : vector<16x16xf32>
    %cst_142 = arith.constant dense<0.000000e+00> : vector<16xf32>
    %274 = vector.multi_reduction <add>, %273, %cst_142 [1] : vector<16x16xf32> to vector<16xf32>
    %275 = vector.shape_cast %274 : vector<16xf32> to vector<16x1xf32>
    %cst_143 = arith.constant 1.600000e+01 : f32
    %276 = vector.broadcast %cst_143 : f32 to vector<16x1xf32>
    %277 = arith.divf %275, %276 : vector<16x1xf32>
    %278 = vector.broadcast %270 : vector<16x1xf32> to vector<16x16xf32>
    %279 = arith.subf %262, %278 : vector<16x16xf32>
    %cst_144 = arith.constant 9.99999997E-7 : f32
    %280 = vector.broadcast %cst_144 : f32 to vector<16x1xf32>
    %281 = arith.addf %277, %280 : vector<16x1xf32>
    %282 = math.rsqrt %281 : vector<16x1xf32>
    %283 = vector.broadcast %282 : vector<16x1xf32> to vector<16x16xf32>
    %284 = arith.mulf %279, %283 : vector<16x16xf32>
    %285 = vector.broadcast %264 : vector<16x1xf32> to vector<16x16xf32>
    %286 = arith.mulf %284, %285 : vector<16x16xf32>
    %287 = vector.broadcast %266 : vector<16x1xf32> to vector<16x16xf32>
    %288 = arith.addf %286, %287 : vector<16x16xf32>
    %cst_145 = arith.constant 0.000000e+00 : f32
    %289 = vector.broadcast %cst_145 : f32 to vector<16x16xf32>
    %290 = arith.cmpf ogt, %288, %289 : vector<16x16xf32>
    %cst_146 = arith.constant 0.000000e+00 : f32
    %291 = vector.broadcast %cst_146 : f32 to vector<16x16xf32>
    %292 = arith.minimumf %288, %291 : vector<16x16xf32>
    %293 = math.exp %292 : vector<16x16xf32>
    %cst_147 = arith.constant 1.000000e+00 : f32
    %294 = vector.broadcast %cst_147 : f32 to vector<16x16xf32>
    %295 = arith.subf %293, %294 : vector<16x16xf32>
    %296 = arith.select %290, %288, %295 : vector<16x16xi1>, vector<16x16xf32>
    %cst_148 = arith.constant 0.000000e+00 : f32
    %297 = vector.broadcast %cst_148 : f32 to vector<16x2xf32>
    %298 = tpu.concatenate %297, %296, %297 in 1 : vector<16x2xf32>, vector<16x16xf32>, vector<16x2xf32> -> vector<16x20xf32>
    %299 = vector.extract_strided_slice %298 {offsets = [0, 0], sizes = [16, 16], strides = [1, 1]} : vector<16x20xf32> to vector<16x16xf32>
    %300 = vector.extract_strided_slice %298 {offsets = [0, 2], sizes = [16, 16], strides = [1, 1]} : vector<16x20xf32> to vector<16x16xf32>
    %301 = vector.extract_strided_slice %298 {offsets = [0, 4], sizes = [16, 16], strides = [1, 1]} : vector<16x20xf32> to vector<16x16xf32>
    %302 = tpu.concatenate %299, %300, %301 in 0 : vector<16x16xf32>, vector<16x16xf32>, vector<16x16xf32> -> vector<48x16xf32>
    %c1_149 = arith.constant 1 : index
    %c0_150 = arith.constant 0 : index
    %c0_151 = arith.constant 0 : index
    %303 = vector.load %arg17[%c1_149, %c0_150, %c0_151] : memref<4x16x48xf32, #tpu.memory_space<vmem>>, vector<1x16x48xf32>
    %304 = vector.shape_cast %303 : vector<1x16x48xf32> to vector<16x48xf32>
    %cst_152 = arith.constant dense<0.000000e+00> : vector<16x16xf32>
    %305 = tpu.matmul %304, %302, %cst_152 {dimension_numbers = #tpu.dot_dimension_numbers<[1], [0], [0], [1], [0, 0, 1, 1], [], []>} : vector<16x48xf32>, vector<48x16xf32>, vector<16x16xf32> -> vector<16x16xf32>
    %c1_153 = arith.constant 1 : index
    %c0_154 = arith.constant 0 : index
    %c0_155 = arith.constant 0 : index
    %306 = vector.load %arg18[%c1_153, %c0_154, %c0_155] : memref<4x16x1xf32, #tpu.memory_space<vmem>>, vector<1x16x1xf32>
    %307 = vector.shape_cast %306 : vector<1x16x1xf32> to vector<16x1xf32>
    %308 = vector.broadcast %307 : vector<16x1xf32> to vector<16x16xf32>
    %309 = arith.addf %305, %308 : vector<16x16xf32>
    %c1_156 = arith.constant 1 : index
    %c0_157 = arith.constant 0 : index
    %c0_158 = arith.constant 0 : index
    %310 = vector.load %arg19[%c1_156, %c0_157, %c0_158] : memref<4x16x1xf32, #tpu.memory_space<vmem>>, vector<1x16x1xf32>
    %311 = vector.shape_cast %310 : vector<1x16x1xf32> to vector<16x1xf32>
    %c1_159 = arith.constant 1 : index
    %c0_160 = arith.constant 0 : index
    %c0_161 = arith.constant 0 : index
    %312 = vector.load %arg20[%c1_159, %c0_160, %c0_161] : memref<4x16x1xf32, #tpu.memory_space<vmem>>, vector<1x16x1xf32>
    %313 = vector.shape_cast %312 : vector<1x16x1xf32> to vector<16x1xf32>
    %cst_162 = arith.constant dense<0.000000e+00> : vector<16xf32>
    %314 = vector.multi_reduction <add>, %309, %cst_162 [1] : vector<16x16xf32> to vector<16xf32>
    %315 = vector.shape_cast %314 : vector<16xf32> to vector<16x1xf32>
    %cst_163 = arith.constant 1.600000e+01 : f32
    %316 = vector.broadcast %cst_163 : f32 to vector<16x1xf32>
    %317 = arith.divf %315, %316 : vector<16x1xf32>
    %318 = vector.broadcast %317 : vector<16x1xf32> to vector<16x16xf32>
    %319 = arith.subf %309, %318 : vector<16x16xf32>
    %320 = arith.mulf %319, %319 : vector<16x16xf32>
    %cst_164 = arith.constant dense<0.000000e+00> : vector<16xf32>
    %321 = vector.multi_reduction <add>, %320, %cst_164 [1] : vector<16x16xf32> to vector<16xf32>
    %322 = vector.shape_cast %321 : vector<16xf32> to vector<16x1xf32>
    %cst_165 = arith.constant 1.600000e+01 : f32
    %323 = vector.broadcast %cst_165 : f32 to vector<16x1xf32>
    %324 = arith.divf %322, %323 : vector<16x1xf32>
    %325 = vector.broadcast %317 : vector<16x1xf32> to vector<16x16xf32>
    %326 = arith.subf %309, %325 : vector<16x16xf32>
    %cst_166 = arith.constant 9.99999997E-7 : f32
    %327 = vector.broadcast %cst_166 : f32 to vector<16x1xf32>
    %328 = arith.addf %324, %327 : vector<16x1xf32>
    %329 = math.rsqrt %328 : vector<16x1xf32>
    %330 = vector.broadcast %329 : vector<16x1xf32> to vector<16x16xf32>
    %331 = arith.mulf %326, %330 : vector<16x16xf32>
    %332 = vector.broadcast %311 : vector<16x1xf32> to vector<16x16xf32>
    %333 = arith.mulf %331, %332 : vector<16x16xf32>
    %334 = vector.broadcast %313 : vector<16x1xf32> to vector<16x16xf32>
    %335 = arith.addf %333, %334 : vector<16x16xf32>
    %cst_167 = arith.constant 0.000000e+00 : f32
    %336 = vector.broadcast %cst_167 : f32 to vector<16x16xf32>
    %337 = arith.cmpf ogt, %335, %336 : vector<16x16xf32>
    %cst_168 = arith.constant 0.000000e+00 : f32
    %338 = vector.broadcast %cst_168 : f32 to vector<16x16xf32>
    %339 = arith.minimumf %335, %338 : vector<16x16xf32>
    %340 = math.exp %339 : vector<16x16xf32>
    %cst_169 = arith.constant 1.000000e+00 : f32
    %341 = vector.broadcast %cst_169 : f32 to vector<16x16xf32>
    %342 = arith.subf %340, %341 : vector<16x16xf32>
    %343 = arith.select %337, %335, %342 : vector<16x16xi1>, vector<16x16xf32>
    %c1_170 = arith.constant 1 : index
    %c0_171 = arith.constant 0 : index
    %c0_172 = arith.constant 0 : index
    %344 = vector.load %arg21[%c1_170, %c0_171, %c0_172] : memref<4x32x16xf32, #tpu.memory_space<vmem>>, vector<1x32x16xf32>
    %345 = vector.shape_cast %344 : vector<1x32x16xf32> to vector<32x16xf32>
    %cst_173 = arith.constant dense<0.000000e+00> : vector<32x16xf32>
    %346 = tpu.matmul %345, %343, %cst_173 {dimension_numbers = #tpu.dot_dimension_numbers<[1], [0], [0], [1], [0, 0, 1, 1], [], []>} : vector<32x16xf32>, vector<16x16xf32>, vector<32x16xf32> -> vector<32x16xf32>
    %c1_174 = arith.constant 1 : index
    %c0_175 = arith.constant 0 : index
    %c0_176 = arith.constant 0 : index
    %347 = vector.load %arg22[%c1_174, %c0_175, %c0_176] : memref<4x32x1xf32, #tpu.memory_space<vmem>>, vector<1x32x1xf32>
    %348 = vector.shape_cast %347 : vector<1x32x1xf32> to vector<32x1xf32>
    %349 = vector.broadcast %348 : vector<32x1xf32> to vector<32x16xf32>
    %350 = arith.addf %346, %349 : vector<32x16xf32>
    %cst_177 = arith.constant dense<0.000000e+00> : vector<32xf32>
    %351 = vector.multi_reduction <add>, %350, %cst_177 [1] : vector<32x16xf32> to vector<32xf32>
    %cst_178 = arith.constant 1.600000e+01 : f32
    %352 = vector.broadcast %cst_178 : f32 to vector<32xf32>
    %353 = arith.divf %351, %352 : vector<32xf32>
    %c1_179 = arith.constant 1 : index
    %c0_180 = arith.constant 0 : index
    %c0_181 = arith.constant 0 : index
    %354 = vector.load %arg23[%c1_179, %c0_180, %c0_181] : memref<4x2x32xf32, #tpu.memory_space<vmem>>, vector<1x2x32xf32>
    %355 = vector.shape_cast %354 : vector<1x2x32xf32> to vector<2x32xf32>
    %356 = vector.shape_cast %353 : vector<32xf32> to vector<1x32xf32>
    %357 = vector.broadcast %356 : vector<1x32xf32> to vector<2x32xf32>
    %358 = arith.mulf %355, %357 : vector<2x32xf32>
    %cst_182 = arith.constant dense<0.000000e+00> : vector<2xf32>
    %359 = vector.multi_reduction <add>, %358, %cst_182 [1] : vector<2x32xf32> to vector<2xf32>
    %c1_183 = arith.constant 1 : index
    %c0_184 = arith.constant 0 : index
    %c0_185 = arith.constant 0 : index
    %360 = vector.load %arg24[%c1_183, %c0_184, %c0_185] : memref<4x2x1xf32, #tpu.memory_space<vmem>>, vector<1x2x1xf32>
    %361 = vector.shape_cast %360 : vector<1x2x1xf32> to vector<2x1xf32>
    %362 = vector.shape_cast %361 : vector<2x1xf32> to vector<2xf32>
    %363 = arith.addf %359, %362 : vector<2xf32>
    %cst_186 = arith.constant 0.000000e+00 : f32
    %364 = vector.broadcast %cst_186 : f32 to vector<2xf32>
    %365 = arith.maximumf %363, %364 : vector<2xf32>
    %c1_187 = arith.constant 1 : index
    %c0_188 = arith.constant 0 : index
    %c0_189 = arith.constant 0 : index
    %366 = vector.load %arg25[%c1_187, %c0_188, %c0_189] : memref<4x32x2xf32, #tpu.memory_space<vmem>>, vector<1x32x2xf32>
    %367 = vector.shape_cast %366 : vector<1x32x2xf32> to vector<32x2xf32>
    %368 = vector.shape_cast %365 : vector<2xf32> to vector<1x2xf32>
    %369 = vector.broadcast %368 : vector<1x2xf32> to vector<32x2xf32>
    %370 = arith.mulf %367, %369 : vector<32x2xf32>
    %cst_190 = arith.constant dense<0.000000e+00> : vector<32xf32>
    %371 = vector.multi_reduction <add>, %370, %cst_190 [1] : vector<32x2xf32> to vector<32xf32>
    %c1_191 = arith.constant 1 : index
    %c0_192 = arith.constant 0 : index
    %c0_193 = arith.constant 0 : index
    %372 = vector.load %arg26[%c1_191, %c0_192, %c0_193] : memref<4x32x1xf32, #tpu.memory_space<vmem>>, vector<1x32x1xf32>
    %373 = vector.shape_cast %372 : vector<1x32x1xf32> to vector<32x1xf32>
    %374 = vector.shape_cast %373 : vector<32x1xf32> to vector<32xf32>
    %375 = arith.addf %371, %374 : vector<32xf32>
    %cst_194 = arith.constant 0.000000e+00 : f32
    %376 = vector.broadcast %cst_194 : f32 to vector<32xf32>
    %377 = arith.maximumf %375, %376 : vector<32xf32>
    %378 = arith.negf %377 : vector<32xf32>
    %379 = math.exp %378 : vector<32xf32>
    %cst_195 = arith.constant 1.000000e+00 : f32
    %380 = vector.broadcast %cst_195 : f32 to vector<32xf32>
    %381 = arith.addf %380, %379 : vector<32xf32>
    %382 = arith.divf %380, %381 : vector<32xf32>
    %383 = vector.shape_cast %382 : vector<32xf32> to vector<32x1xf32>
    %384 = vector.broadcast %383 : vector<32x1xf32> to vector<32x16xf32>
    %385 = arith.mulf %350, %384 : vector<32x16xf32>
    %386 = arith.addf %385, %221 : vector<32x16xf32>
    %c2 = arith.constant 2 : index
    %c0_196 = arith.constant 0 : index
    %c0_197 = arith.constant 0 : index
    %387 = vector.load %arg11[%c2, %c0_196, %c0_197] : memref<4x32x1xf32, #tpu.memory_space<vmem>>, vector<1x32x1xf32>
    %388 = vector.shape_cast %387 : vector<1x32x1xf32> to vector<32x1xf32>
    %c2_198 = arith.constant 2 : index
    %c0_199 = arith.constant 0 : index
    %c0_200 = arith.constant 0 : index
    %389 = vector.load %arg12[%c2_198, %c0_199, %c0_200] : memref<4x32x1xf32, #tpu.memory_space<vmem>>, vector<1x32x1xf32>
    %390 = vector.shape_cast %389 : vector<1x32x1xf32> to vector<32x1xf32>
    %cst_201 = arith.constant dense<0.000000e+00> : vector<32xf32>
    %391 = vector.multi_reduction <add>, %386, %cst_201 [1] : vector<32x16xf32> to vector<32xf32>
    %392 = vector.shape_cast %391 : vector<32xf32> to vector<32x1xf32>
    %cst_202 = arith.constant 1.600000e+01 : f32
    %393 = vector.broadcast %cst_202 : f32 to vector<32x1xf32>
    %394 = arith.divf %392, %393 : vector<32x1xf32>
    %395 = vector.broadcast %394 : vector<32x1xf32> to vector<32x16xf32>
    %396 = arith.subf %386, %395 : vector<32x16xf32>
    %397 = arith.mulf %396, %396 : vector<32x16xf32>
    %cst_203 = arith.constant dense<0.000000e+00> : vector<32xf32>
    %398 = vector.multi_reduction <add>, %397, %cst_203 [1] : vector<32x16xf32> to vector<32xf32>
    %399 = vector.shape_cast %398 : vector<32xf32> to vector<32x1xf32>
    %cst_204 = arith.constant 1.600000e+01 : f32
    %400 = vector.broadcast %cst_204 : f32 to vector<32x1xf32>
    %401 = arith.divf %399, %400 : vector<32x1xf32>
    %402 = vector.broadcast %394 : vector<32x1xf32> to vector<32x16xf32>
    %403 = arith.subf %386, %402 : vector<32x16xf32>
    %cst_205 = arith.constant 9.99999997E-7 : f32
    %404 = vector.broadcast %cst_205 : f32 to vector<32x1xf32>
    %405 = arith.addf %401, %404 : vector<32x1xf32>
    %406 = math.rsqrt %405 : vector<32x1xf32>
    %407 = vector.broadcast %406 : vector<32x1xf32> to vector<32x16xf32>
    %408 = arith.mulf %403, %407 : vector<32x16xf32>
    %409 = vector.broadcast %388 : vector<32x1xf32> to vector<32x16xf32>
    %410 = arith.mulf %408, %409 : vector<32x16xf32>
    %411 = vector.broadcast %390 : vector<32x1xf32> to vector<32x16xf32>
    %412 = arith.addf %410, %411 : vector<32x16xf32>
    %cst_206 = arith.constant 0.000000e+00 : f32
    %413 = vector.broadcast %cst_206 : f32 to vector<32x16xf32>
    %414 = arith.cmpf ogt, %412, %413 : vector<32x16xf32>
    %cst_207 = arith.constant 0.000000e+00 : f32
    %415 = vector.broadcast %cst_207 : f32 to vector<32x16xf32>
    %416 = arith.minimumf %412, %415 : vector<32x16xf32>
    %417 = math.exp %416 : vector<32x16xf32>
    %cst_208 = arith.constant 1.000000e+00 : f32
    %418 = vector.broadcast %cst_208 : f32 to vector<32x16xf32>
    %419 = arith.subf %417, %418 : vector<32x16xf32>
    %420 = arith.select %414, %412, %419 : vector<32x16xi1>, vector<32x16xf32>
    %c2_209 = arith.constant 2 : index
    %c0_210 = arith.constant 0 : index
    %c0_211 = arith.constant 0 : index
    %421 = vector.load %arg13[%c2_209, %c0_210, %c0_211] : memref<4x16x32xf32, #tpu.memory_space<vmem>>, vector<1x16x32xf32>
    %422 = vector.shape_cast %421 : vector<1x16x32xf32> to vector<16x32xf32>
    %cst_212 = arith.constant dense<0.000000e+00> : vector<16x16xf32>
    %423 = tpu.matmul %422, %420, %cst_212 {dimension_numbers = #tpu.dot_dimension_numbers<[1], [0], [0], [1], [0, 0, 1, 1], [], []>} : vector<16x32xf32>, vector<32x16xf32>, vector<16x16xf32> -> vector<16x16xf32>
    %c2_213 = arith.constant 2 : index
    %c0_214 = arith.constant 0 : index
    %c0_215 = arith.constant 0 : index
    %424 = vector.load %arg14[%c2_213, %c0_214, %c0_215] : memref<4x16x1xf32, #tpu.memory_space<vmem>>, vector<1x16x1xf32>
    %425 = vector.shape_cast %424 : vector<1x16x1xf32> to vector<16x1xf32>
    %426 = vector.broadcast %425 : vector<16x1xf32> to vector<16x16xf32>
    %427 = arith.addf %423, %426 : vector<16x16xf32>
    %c2_216 = arith.constant 2 : index
    %c0_217 = arith.constant 0 : index
    %c0_218 = arith.constant 0 : index
    %428 = vector.load %arg15[%c2_216, %c0_217, %c0_218] : memref<4x16x1xf32, #tpu.memory_space<vmem>>, vector<1x16x1xf32>
    %429 = vector.shape_cast %428 : vector<1x16x1xf32> to vector<16x1xf32>
    %c2_219 = arith.constant 2 : index
    %c0_220 = arith.constant 0 : index
    %c0_221 = arith.constant 0 : index
    %430 = vector.load %arg16[%c2_219, %c0_220, %c0_221] : memref<4x16x1xf32, #tpu.memory_space<vmem>>, vector<1x16x1xf32>
    %431 = vector.shape_cast %430 : vector<1x16x1xf32> to vector<16x1xf32>
    %cst_222 = arith.constant dense<0.000000e+00> : vector<16xf32>
    %432 = vector.multi_reduction <add>, %427, %cst_222 [1] : vector<16x16xf32> to vector<16xf32>
    %433 = vector.shape_cast %432 : vector<16xf32> to vector<16x1xf32>
    %cst_223 = arith.constant 1.600000e+01 : f32
    %434 = vector.broadcast %cst_223 : f32 to vector<16x1xf32>
    %435 = arith.divf %433, %434 : vector<16x1xf32>
    %436 = vector.broadcast %435 : vector<16x1xf32> to vector<16x16xf32>
    %437 = arith.subf %427, %436 : vector<16x16xf32>
    %438 = arith.mulf %437, %437 : vector<16x16xf32>
    %cst_224 = arith.constant dense<0.000000e+00> : vector<16xf32>
    %439 = vector.multi_reduction <add>, %438, %cst_224 [1] : vector<16x16xf32> to vector<16xf32>
    %440 = vector.shape_cast %439 : vector<16xf32> to vector<16x1xf32>
    %cst_225 = arith.constant 1.600000e+01 : f32
    %441 = vector.broadcast %cst_225 : f32 to vector<16x1xf32>
    %442 = arith.divf %440, %441 : vector<16x1xf32>
    %443 = vector.broadcast %435 : vector<16x1xf32> to vector<16x16xf32>
    %444 = arith.subf %427, %443 : vector<16x16xf32>
    %cst_226 = arith.constant 9.99999997E-7 : f32
    %445 = vector.broadcast %cst_226 : f32 to vector<16x1xf32>
    %446 = arith.addf %442, %445 : vector<16x1xf32>
    %447 = math.rsqrt %446 : vector<16x1xf32>
    %448 = vector.broadcast %447 : vector<16x1xf32> to vector<16x16xf32>
    %449 = arith.mulf %444, %448 : vector<16x16xf32>
    %450 = vector.broadcast %429 : vector<16x1xf32> to vector<16x16xf32>
    %451 = arith.mulf %449, %450 : vector<16x16xf32>
    %452 = vector.broadcast %431 : vector<16x1xf32> to vector<16x16xf32>
    %453 = arith.addf %451, %452 : vector<16x16xf32>
    %cst_227 = arith.constant 0.000000e+00 : f32
    %454 = vector.broadcast %cst_227 : f32 to vector<16x16xf32>
    %455 = arith.cmpf ogt, %453, %454 : vector<16x16xf32>
    %cst_228 = arith.constant 0.000000e+00 : f32
    %456 = vector.broadcast %cst_228 : f32 to vector<16x16xf32>
    %457 = arith.minimumf %453, %456 : vector<16x16xf32>
    %458 = math.exp %457 : vector<16x16xf32>
    %cst_229 = arith.constant 1.000000e+00 : f32
    %459 = vector.broadcast %cst_229 : f32 to vector<16x16xf32>
    %460 = arith.subf %458, %459 : vector<16x16xf32>
    %461 = arith.select %455, %453, %460 : vector<16x16xi1>, vector<16x16xf32>
    %cst_230 = arith.constant 0.000000e+00 : f32
    %462 = vector.broadcast %cst_230 : f32 to vector<16x4xf32>
    %463 = tpu.concatenate %462, %461, %462 in 1 : vector<16x4xf32>, vector<16x16xf32>, vector<16x4xf32> -> vector<16x24xf32>
    %464 = vector.extract_strided_slice %463 {offsets = [0, 0], sizes = [16, 16], strides = [1, 1]} : vector<16x24xf32> to vector<16x16xf32>
    %465 = vector.extract_strided_slice %463 {offsets = [0, 4], sizes = [16, 16], strides = [1, 1]} : vector<16x24xf32> to vector<16x16xf32>
    %466 = vector.extract_strided_slice %463 {offsets = [0, 8], sizes = [16, 16], strides = [1, 1]} : vector<16x24xf32> to vector<16x16xf32>
    %467 = tpu.concatenate %464, %465, %466 in 0 : vector<16x16xf32>, vector<16x16xf32>, vector<16x16xf32> -> vector<48x16xf32>
    %c2_231 = arith.constant 2 : index
    %c0_232 = arith.constant 0 : index
    %c0_233 = arith.constant 0 : index
    %468 = vector.load %arg17[%c2_231, %c0_232, %c0_233] : memref<4x16x48xf32, #tpu.memory_space<vmem>>, vector<1x16x48xf32>
    %469 = vector.shape_cast %468 : vector<1x16x48xf32> to vector<16x48xf32>
    %cst_234 = arith.constant dense<0.000000e+00> : vector<16x16xf32>
    %470 = tpu.matmul %469, %467, %cst_234 {dimension_numbers = #tpu.dot_dimension_numbers<[1], [0], [0], [1], [0, 0, 1, 1], [], []>} : vector<16x48xf32>, vector<48x16xf32>, vector<16x16xf32> -> vector<16x16xf32>
    %c2_235 = arith.constant 2 : index
    %c0_236 = arith.constant 0 : index
    %c0_237 = arith.constant 0 : index
    %471 = vector.load %arg18[%c2_235, %c0_236, %c0_237] : memref<4x16x1xf32, #tpu.memory_space<vmem>>, vector<1x16x1xf32>
    %472 = vector.shape_cast %471 : vector<1x16x1xf32> to vector<16x1xf32>
    %473 = vector.broadcast %472 : vector<16x1xf32> to vector<16x16xf32>
    %474 = arith.addf %470, %473 : vector<16x16xf32>
    %c2_238 = arith.constant 2 : index
    %c0_239 = arith.constant 0 : index
    %c0_240 = arith.constant 0 : index
    %475 = vector.load %arg19[%c2_238, %c0_239, %c0_240] : memref<4x16x1xf32, #tpu.memory_space<vmem>>, vector<1x16x1xf32>
    %476 = vector.shape_cast %475 : vector<1x16x1xf32> to vector<16x1xf32>
    %c2_241 = arith.constant 2 : index
    %c0_242 = arith.constant 0 : index
    %c0_243 = arith.constant 0 : index
    %477 = vector.load %arg20[%c2_241, %c0_242, %c0_243] : memref<4x16x1xf32, #tpu.memory_space<vmem>>, vector<1x16x1xf32>
    %478 = vector.shape_cast %477 : vector<1x16x1xf32> to vector<16x1xf32>
    %cst_244 = arith.constant dense<0.000000e+00> : vector<16xf32>
    %479 = vector.multi_reduction <add>, %474, %cst_244 [1] : vector<16x16xf32> to vector<16xf32>
    %480 = vector.shape_cast %479 : vector<16xf32> to vector<16x1xf32>
    %cst_245 = arith.constant 1.600000e+01 : f32
    %481 = vector.broadcast %cst_245 : f32 to vector<16x1xf32>
    %482 = arith.divf %480, %481 : vector<16x1xf32>
    %483 = vector.broadcast %482 : vector<16x1xf32> to vector<16x16xf32>
    %484 = arith.subf %474, %483 : vector<16x16xf32>
    %485 = arith.mulf %484, %484 : vector<16x16xf32>
    %cst_246 = arith.constant dense<0.000000e+00> : vector<16xf32>
    %486 = vector.multi_reduction <add>, %485, %cst_246 [1] : vector<16x16xf32> to vector<16xf32>
    %487 = vector.shape_cast %486 : vector<16xf32> to vector<16x1xf32>
    %cst_247 = arith.constant 1.600000e+01 : f32
    %488 = vector.broadcast %cst_247 : f32 to vector<16x1xf32>
    %489 = arith.divf %487, %488 : vector<16x1xf32>
    %490 = vector.broadcast %482 : vector<16x1xf32> to vector<16x16xf32>
    %491 = arith.subf %474, %490 : vector<16x16xf32>
    %cst_248 = arith.constant 9.99999997E-7 : f32
    %492 = vector.broadcast %cst_248 : f32 to vector<16x1xf32>
    %493 = arith.addf %489, %492 : vector<16x1xf32>
    %494 = math.rsqrt %493 : vector<16x1xf32>
    %495 = vector.broadcast %494 : vector<16x1xf32> to vector<16x16xf32>
    %496 = arith.mulf %491, %495 : vector<16x16xf32>
    %497 = vector.broadcast %476 : vector<16x1xf32> to vector<16x16xf32>
    %498 = arith.mulf %496, %497 : vector<16x16xf32>
    %499 = vector.broadcast %478 : vector<16x1xf32> to vector<16x16xf32>
    %500 = arith.addf %498, %499 : vector<16x16xf32>
    %cst_249 = arith.constant 0.000000e+00 : f32
    %501 = vector.broadcast %cst_249 : f32 to vector<16x16xf32>
    %502 = arith.cmpf ogt, %500, %501 : vector<16x16xf32>
    %cst_250 = arith.constant 0.000000e+00 : f32
    %503 = vector.broadcast %cst_250 : f32 to vector<16x16xf32>
    %504 = arith.minimumf %500, %503 : vector<16x16xf32>
    %505 = math.exp %504 : vector<16x16xf32>
    %cst_251 = arith.constant 1.000000e+00 : f32
    %506 = vector.broadcast %cst_251 : f32 to vector<16x16xf32>
    %507 = arith.subf %505, %506 : vector<16x16xf32>
    %508 = arith.select %502, %500, %507 : vector<16x16xi1>, vector<16x16xf32>
    %c2_252 = arith.constant 2 : index
    %c0_253 = arith.constant 0 : index
    %c0_254 = arith.constant 0 : index
    %509 = vector.load %arg21[%c2_252, %c0_253, %c0_254] : memref<4x32x16xf32, #tpu.memory_space<vmem>>, vector<1x32x16xf32>
    %510 = vector.shape_cast %509 : vector<1x32x16xf32> to vector<32x16xf32>
    %cst_255 = arith.constant dense<0.000000e+00> : vector<32x16xf32>
    %511 = tpu.matmul %510, %508, %cst_255 {dimension_numbers = #tpu.dot_dimension_numbers<[1], [0], [0], [1], [0, 0, 1, 1], [], []>} : vector<32x16xf32>, vector<16x16xf32>, vector<32x16xf32> -> vector<32x16xf32>
    %c2_256 = arith.constant 2 : index
    %c0_257 = arith.constant 0 : index
    %c0_258 = arith.constant 0 : index
    %512 = vector.load %arg22[%c2_256, %c0_257, %c0_258] : memref<4x32x1xf32, #tpu.memory_space<vmem>>, vector<1x32x1xf32>
    %513 = vector.shape_cast %512 : vector<1x32x1xf32> to vector<32x1xf32>
    %514 = vector.broadcast %513 : vector<32x1xf32> to vector<32x16xf32>
    %515 = arith.addf %511, %514 : vector<32x16xf32>
    %cst_259 = arith.constant dense<0.000000e+00> : vector<32xf32>
    %516 = vector.multi_reduction <add>, %515, %cst_259 [1] : vector<32x16xf32> to vector<32xf32>
    %cst_260 = arith.constant 1.600000e+01 : f32
    %517 = vector.broadcast %cst_260 : f32 to vector<32xf32>
    %518 = arith.divf %516, %517 : vector<32xf32>
    %c2_261 = arith.constant 2 : index
    %c0_262 = arith.constant 0 : index
    %c0_263 = arith.constant 0 : index
    %519 = vector.load %arg23[%c2_261, %c0_262, %c0_263] : memref<4x2x32xf32, #tpu.memory_space<vmem>>, vector<1x2x32xf32>
    %520 = vector.shape_cast %519 : vector<1x2x32xf32> to vector<2x32xf32>
    %521 = vector.shape_cast %518 : vector<32xf32> to vector<1x32xf32>
    %522 = vector.broadcast %521 : vector<1x32xf32> to vector<2x32xf32>
    %523 = arith.mulf %520, %522 : vector<2x32xf32>
    %cst_264 = arith.constant dense<0.000000e+00> : vector<2xf32>
    %524 = vector.multi_reduction <add>, %523, %cst_264 [1] : vector<2x32xf32> to vector<2xf32>
    %c2_265 = arith.constant 2 : index
    %c0_266 = arith.constant 0 : index
    %c0_267 = arith.constant 0 : index
    %525 = vector.load %arg24[%c2_265, %c0_266, %c0_267] : memref<4x2x1xf32, #tpu.memory_space<vmem>>, vector<1x2x1xf32>
    %526 = vector.shape_cast %525 : vector<1x2x1xf32> to vector<2x1xf32>
    %527 = vector.shape_cast %526 : vector<2x1xf32> to vector<2xf32>
    %528 = arith.addf %524, %527 : vector<2xf32>
    %cst_268 = arith.constant 0.000000e+00 : f32
    %529 = vector.broadcast %cst_268 : f32 to vector<2xf32>
    %530 = arith.maximumf %528, %529 : vector<2xf32>
    %c2_269 = arith.constant 2 : index
    %c0_270 = arith.constant 0 : index
    %c0_271 = arith.constant 0 : index
    %531 = vector.load %arg25[%c2_269, %c0_270, %c0_271] : memref<4x32x2xf32, #tpu.memory_space<vmem>>, vector<1x32x2xf32>
    %532 = vector.shape_cast %531 : vector<1x32x2xf32> to vector<32x2xf32>
    %533 = vector.shape_cast %530 : vector<2xf32> to vector<1x2xf32>
    %534 = vector.broadcast %533 : vector<1x2xf32> to vector<32x2xf32>
    %535 = arith.mulf %532, %534 : vector<32x2xf32>
    %cst_272 = arith.constant dense<0.000000e+00> : vector<32xf32>
    %536 = vector.multi_reduction <add>, %535, %cst_272 [1] : vector<32x2xf32> to vector<32xf32>
    %c2_273 = arith.constant 2 : index
    %c0_274 = arith.constant 0 : index
    %c0_275 = arith.constant 0 : index
    %537 = vector.load %arg26[%c2_273, %c0_274, %c0_275] : memref<4x32x1xf32, #tpu.memory_space<vmem>>, vector<1x32x1xf32>
    %538 = vector.shape_cast %537 : vector<1x32x1xf32> to vector<32x1xf32>
    %539 = vector.shape_cast %538 : vector<32x1xf32> to vector<32xf32>
    %540 = arith.addf %536, %539 : vector<32xf32>
    %cst_276 = arith.constant 0.000000e+00 : f32
    %541 = vector.broadcast %cst_276 : f32 to vector<32xf32>
    %542 = arith.maximumf %540, %541 : vector<32xf32>
    %543 = arith.negf %542 : vector<32xf32>
    %544 = math.exp %543 : vector<32xf32>
    %cst_277 = arith.constant 1.000000e+00 : f32
    %545 = vector.broadcast %cst_277 : f32 to vector<32xf32>
    %546 = arith.addf %545, %544 : vector<32xf32>
    %547 = arith.divf %545, %546 : vector<32xf32>
    %548 = vector.shape_cast %547 : vector<32xf32> to vector<32x1xf32>
    %549 = vector.broadcast %548 : vector<32x1xf32> to vector<32x16xf32>
    %550 = arith.mulf %515, %549 : vector<32x16xf32>
    %551 = arith.addf %550, %386 : vector<32x16xf32>
    %c3 = arith.constant 3 : index
    %c0_278 = arith.constant 0 : index
    %c0_279 = arith.constant 0 : index
    %552 = vector.load %arg11[%c3, %c0_278, %c0_279] : memref<4x32x1xf32, #tpu.memory_space<vmem>>, vector<1x32x1xf32>
    %553 = vector.shape_cast %552 : vector<1x32x1xf32> to vector<32x1xf32>
    %c3_280 = arith.constant 3 : index
    %c0_281 = arith.constant 0 : index
    %c0_282 = arith.constant 0 : index
    %554 = vector.load %arg12[%c3_280, %c0_281, %c0_282] : memref<4x32x1xf32, #tpu.memory_space<vmem>>, vector<1x32x1xf32>
    %555 = vector.shape_cast %554 : vector<1x32x1xf32> to vector<32x1xf32>
    %cst_283 = arith.constant dense<0.000000e+00> : vector<32xf32>
    %556 = vector.multi_reduction <add>, %551, %cst_283 [1] : vector<32x16xf32> to vector<32xf32>
    %557 = vector.shape_cast %556 : vector<32xf32> to vector<32x1xf32>
    %cst_284 = arith.constant 1.600000e+01 : f32
    %558 = vector.broadcast %cst_284 : f32 to vector<32x1xf32>
    %559 = arith.divf %557, %558 : vector<32x1xf32>
    %560 = vector.broadcast %559 : vector<32x1xf32> to vector<32x16xf32>
    %561 = arith.subf %551, %560 : vector<32x16xf32>
    %562 = arith.mulf %561, %561 : vector<32x16xf32>
    %cst_285 = arith.constant dense<0.000000e+00> : vector<32xf32>
    %563 = vector.multi_reduction <add>, %562, %cst_285 [1] : vector<32x16xf32> to vector<32xf32>
    %564 = vector.shape_cast %563 : vector<32xf32> to vector<32x1xf32>
    %cst_286 = arith.constant 1.600000e+01 : f32
    %565 = vector.broadcast %cst_286 : f32 to vector<32x1xf32>
    %566 = arith.divf %564, %565 : vector<32x1xf32>
    %567 = vector.broadcast %559 : vector<32x1xf32> to vector<32x16xf32>
    %568 = arith.subf %551, %567 : vector<32x16xf32>
    %cst_287 = arith.constant 9.99999997E-7 : f32
    %569 = vector.broadcast %cst_287 : f32 to vector<32x1xf32>
    %570 = arith.addf %566, %569 : vector<32x1xf32>
    %571 = math.rsqrt %570 : vector<32x1xf32>
    %572 = vector.broadcast %571 : vector<32x1xf32> to vector<32x16xf32>
    %573 = arith.mulf %568, %572 : vector<32x16xf32>
    %574 = vector.broadcast %553 : vector<32x1xf32> to vector<32x16xf32>
    %575 = arith.mulf %573, %574 : vector<32x16xf32>
    %576 = vector.broadcast %555 : vector<32x1xf32> to vector<32x16xf32>
    %577 = arith.addf %575, %576 : vector<32x16xf32>
    %cst_288 = arith.constant 0.000000e+00 : f32
    %578 = vector.broadcast %cst_288 : f32 to vector<32x16xf32>
    %579 = arith.cmpf ogt, %577, %578 : vector<32x16xf32>
    %cst_289 = arith.constant 0.000000e+00 : f32
    %580 = vector.broadcast %cst_289 : f32 to vector<32x16xf32>
    %581 = arith.minimumf %577, %580 : vector<32x16xf32>
    %582 = math.exp %581 : vector<32x16xf32>
    %cst_290 = arith.constant 1.000000e+00 : f32
    %583 = vector.broadcast %cst_290 : f32 to vector<32x16xf32>
    %584 = arith.subf %582, %583 : vector<32x16xf32>
    %585 = arith.select %579, %577, %584 : vector<32x16xi1>, vector<32x16xf32>
    %c3_291 = arith.constant 3 : index
    %c0_292 = arith.constant 0 : index
    %c0_293 = arith.constant 0 : index
    %586 = vector.load %arg13[%c3_291, %c0_292, %c0_293] : memref<4x16x32xf32, #tpu.memory_space<vmem>>, vector<1x16x32xf32>
    %587 = vector.shape_cast %586 : vector<1x16x32xf32> to vector<16x32xf32>
    %cst_294 = arith.constant dense<0.000000e+00> : vector<16x16xf32>
    %588 = tpu.matmul %587, %585, %cst_294 {dimension_numbers = #tpu.dot_dimension_numbers<[1], [0], [0], [1], [0, 0, 1, 1], [], []>} : vector<16x32xf32>, vector<32x16xf32>, vector<16x16xf32> -> vector<16x16xf32>
    %c3_295 = arith.constant 3 : index
    %c0_296 = arith.constant 0 : index
    %c0_297 = arith.constant 0 : index
    %589 = vector.load %arg14[%c3_295, %c0_296, %c0_297] : memref<4x16x1xf32, #tpu.memory_space<vmem>>, vector<1x16x1xf32>
    %590 = vector.shape_cast %589 : vector<1x16x1xf32> to vector<16x1xf32>
    %591 = vector.broadcast %590 : vector<16x1xf32> to vector<16x16xf32>
    %592 = arith.addf %588, %591 : vector<16x16xf32>
    %c3_298 = arith.constant 3 : index
    %c0_299 = arith.constant 0 : index
    %c0_300 = arith.constant 0 : index
    %593 = vector.load %arg15[%c3_298, %c0_299, %c0_300] : memref<4x16x1xf32, #tpu.memory_space<vmem>>, vector<1x16x1xf32>
    %594 = vector.shape_cast %593 : vector<1x16x1xf32> to vector<16x1xf32>
    %c3_301 = arith.constant 3 : index
    %c0_302 = arith.constant 0 : index
    %c0_303 = arith.constant 0 : index
    %595 = vector.load %arg16[%c3_301, %c0_302, %c0_303] : memref<4x16x1xf32, #tpu.memory_space<vmem>>, vector<1x16x1xf32>
    %596 = vector.shape_cast %595 : vector<1x16x1xf32> to vector<16x1xf32>
    %cst_304 = arith.constant dense<0.000000e+00> : vector<16xf32>
    %597 = vector.multi_reduction <add>, %592, %cst_304 [1] : vector<16x16xf32> to vector<16xf32>
    %598 = vector.shape_cast %597 : vector<16xf32> to vector<16x1xf32>
    %cst_305 = arith.constant 1.600000e+01 : f32
    %599 = vector.broadcast %cst_305 : f32 to vector<16x1xf32>
    %600 = arith.divf %598, %599 : vector<16x1xf32>
    %601 = vector.broadcast %600 : vector<16x1xf32> to vector<16x16xf32>
    %602 = arith.subf %592, %601 : vector<16x16xf32>
    %603 = arith.mulf %602, %602 : vector<16x16xf32>
    %cst_306 = arith.constant dense<0.000000e+00> : vector<16xf32>
    %604 = vector.multi_reduction <add>, %603, %cst_306 [1] : vector<16x16xf32> to vector<16xf32>
    %605 = vector.shape_cast %604 : vector<16xf32> to vector<16x1xf32>
    %cst_307 = arith.constant 1.600000e+01 : f32
    %606 = vector.broadcast %cst_307 : f32 to vector<16x1xf32>
    %607 = arith.divf %605, %606 : vector<16x1xf32>
    %608 = vector.broadcast %600 : vector<16x1xf32> to vector<16x16xf32>
    %609 = arith.subf %592, %608 : vector<16x16xf32>
    %cst_308 = arith.constant 9.99999997E-7 : f32
    %610 = vector.broadcast %cst_308 : f32 to vector<16x1xf32>
    %611 = arith.addf %607, %610 : vector<16x1xf32>
    %612 = math.rsqrt %611 : vector<16x1xf32>
    %613 = vector.broadcast %612 : vector<16x1xf32> to vector<16x16xf32>
    %614 = arith.mulf %609, %613 : vector<16x16xf32>
    %615 = vector.broadcast %594 : vector<16x1xf32> to vector<16x16xf32>
    %616 = arith.mulf %614, %615 : vector<16x16xf32>
    %617 = vector.broadcast %596 : vector<16x1xf32> to vector<16x16xf32>
    %618 = arith.addf %616, %617 : vector<16x16xf32>
    %cst_309 = arith.constant 0.000000e+00 : f32
    %619 = vector.broadcast %cst_309 : f32 to vector<16x16xf32>
    %620 = arith.cmpf ogt, %618, %619 : vector<16x16xf32>
    %cst_310 = arith.constant 0.000000e+00 : f32
    %621 = vector.broadcast %cst_310 : f32 to vector<16x16xf32>
    %622 = arith.minimumf %618, %621 : vector<16x16xf32>
    %623 = math.exp %622 : vector<16x16xf32>
    %cst_311 = arith.constant 1.000000e+00 : f32
    %624 = vector.broadcast %cst_311 : f32 to vector<16x16xf32>
    %625 = arith.subf %623, %624 : vector<16x16xf32>
    %626 = arith.select %620, %618, %625 : vector<16x16xi1>, vector<16x16xf32>
    %cst_312 = arith.constant 0.000000e+00 : f32
    %627 = vector.broadcast %cst_312 : f32 to vector<16x8xf32>
    %628 = tpu.concatenate %627, %626, %627 in 1 : vector<16x8xf32>, vector<16x16xf32>, vector<16x8xf32> -> vector<16x32xf32>
    %629 = vector.extract_strided_slice %628 {offsets = [0, 0], sizes = [16, 16], strides = [1, 1]} : vector<16x32xf32> to vector<16x16xf32>
    %630 = vector.extract_strided_slice %628 {offsets = [0, 8], sizes = [16, 16], strides = [1, 1]} : vector<16x32xf32> to vector<16x16xf32>
    %631 = vector.extract_strided_slice %628 {offsets = [0, 16], sizes = [16, 16], strides = [1, 1]} : vector<16x32xf32> to vector<16x16xf32>
    %632 = tpu.concatenate %629, %630, %631 in 0 : vector<16x16xf32>, vector<16x16xf32>, vector<16x16xf32> -> vector<48x16xf32>
    %c3_313 = arith.constant 3 : index
    %c0_314 = arith.constant 0 : index
    %c0_315 = arith.constant 0 : index
    %633 = vector.load %arg17[%c3_313, %c0_314, %c0_315] : memref<4x16x48xf32, #tpu.memory_space<vmem>>, vector<1x16x48xf32>
    %634 = vector.shape_cast %633 : vector<1x16x48xf32> to vector<16x48xf32>
    %cst_316 = arith.constant dense<0.000000e+00> : vector<16x16xf32>
    %635 = tpu.matmul %634, %632, %cst_316 {dimension_numbers = #tpu.dot_dimension_numbers<[1], [0], [0], [1], [0, 0, 1, 1], [], []>} : vector<16x48xf32>, vector<48x16xf32>, vector<16x16xf32> -> vector<16x16xf32>
    %c3_317 = arith.constant 3 : index
    %c0_318 = arith.constant 0 : index
    %c0_319 = arith.constant 0 : index
    %636 = vector.load %arg18[%c3_317, %c0_318, %c0_319] : memref<4x16x1xf32, #tpu.memory_space<vmem>>, vector<1x16x1xf32>
    %637 = vector.shape_cast %636 : vector<1x16x1xf32> to vector<16x1xf32>
    %638 = vector.broadcast %637 : vector<16x1xf32> to vector<16x16xf32>
    %639 = arith.addf %635, %638 : vector<16x16xf32>
    %c3_320 = arith.constant 3 : index
    %c0_321 = arith.constant 0 : index
    %c0_322 = arith.constant 0 : index
    %640 = vector.load %arg19[%c3_320, %c0_321, %c0_322] : memref<4x16x1xf32, #tpu.memory_space<vmem>>, vector<1x16x1xf32>
    %641 = vector.shape_cast %640 : vector<1x16x1xf32> to vector<16x1xf32>
    %c3_323 = arith.constant 3 : index
    %c0_324 = arith.constant 0 : index
    %c0_325 = arith.constant 0 : index
    %642 = vector.load %arg20[%c3_323, %c0_324, %c0_325] : memref<4x16x1xf32, #tpu.memory_space<vmem>>, vector<1x16x1xf32>
    %643 = vector.shape_cast %642 : vector<1x16x1xf32> to vector<16x1xf32>
    %cst_326 = arith.constant dense<0.000000e+00> : vector<16xf32>
    %644 = vector.multi_reduction <add>, %639, %cst_326 [1] : vector<16x16xf32> to vector<16xf32>
    %645 = vector.shape_cast %644 : vector<16xf32> to vector<16x1xf32>
    %cst_327 = arith.constant 1.600000e+01 : f32
    %646 = vector.broadcast %cst_327 : f32 to vector<16x1xf32>
    %647 = arith.divf %645, %646 : vector<16x1xf32>
    %648 = vector.broadcast %647 : vector<16x1xf32> to vector<16x16xf32>
    %649 = arith.subf %639, %648 : vector<16x16xf32>
    %650 = arith.mulf %649, %649 : vector<16x16xf32>
    %cst_328 = arith.constant dense<0.000000e+00> : vector<16xf32>
    %651 = vector.multi_reduction <add>, %650, %cst_328 [1] : vector<16x16xf32> to vector<16xf32>
    %652 = vector.shape_cast %651 : vector<16xf32> to vector<16x1xf32>
    %cst_329 = arith.constant 1.600000e+01 : f32
    %653 = vector.broadcast %cst_329 : f32 to vector<16x1xf32>
    %654 = arith.divf %652, %653 : vector<16x1xf32>
    %655 = vector.broadcast %647 : vector<16x1xf32> to vector<16x16xf32>
    %656 = arith.subf %639, %655 : vector<16x16xf32>
    %cst_330 = arith.constant 9.99999997E-7 : f32
    %657 = vector.broadcast %cst_330 : f32 to vector<16x1xf32>
    %658 = arith.addf %654, %657 : vector<16x1xf32>
    %659 = math.rsqrt %658 : vector<16x1xf32>
    %660 = vector.broadcast %659 : vector<16x1xf32> to vector<16x16xf32>
    %661 = arith.mulf %656, %660 : vector<16x16xf32>
    %662 = vector.broadcast %641 : vector<16x1xf32> to vector<16x16xf32>
    %663 = arith.mulf %661, %662 : vector<16x16xf32>
    %664 = vector.broadcast %643 : vector<16x1xf32> to vector<16x16xf32>
    %665 = arith.addf %663, %664 : vector<16x16xf32>
    %cst_331 = arith.constant 0.000000e+00 : f32
    %666 = vector.broadcast %cst_331 : f32 to vector<16x16xf32>
    %667 = arith.cmpf ogt, %665, %666 : vector<16x16xf32>
    %cst_332 = arith.constant 0.000000e+00 : f32
    %668 = vector.broadcast %cst_332 : f32 to vector<16x16xf32>
    %669 = arith.minimumf %665, %668 : vector<16x16xf32>
    %670 = math.exp %669 : vector<16x16xf32>
    %cst_333 = arith.constant 1.000000e+00 : f32
    %671 = vector.broadcast %cst_333 : f32 to vector<16x16xf32>
    %672 = arith.subf %670, %671 : vector<16x16xf32>
    %673 = arith.select %667, %665, %672 : vector<16x16xi1>, vector<16x16xf32>
    %c3_334 = arith.constant 3 : index
    %c0_335 = arith.constant 0 : index
    %c0_336 = arith.constant 0 : index
    %674 = vector.load %arg21[%c3_334, %c0_335, %c0_336] : memref<4x32x16xf32, #tpu.memory_space<vmem>>, vector<1x32x16xf32>
    %675 = vector.shape_cast %674 : vector<1x32x16xf32> to vector<32x16xf32>
    %cst_337 = arith.constant dense<0.000000e+00> : vector<32x16xf32>
    %676 = tpu.matmul %675, %673, %cst_337 {dimension_numbers = #tpu.dot_dimension_numbers<[1], [0], [0], [1], [0, 0, 1, 1], [], []>} : vector<32x16xf32>, vector<16x16xf32>, vector<32x16xf32> -> vector<32x16xf32>
    %c3_338 = arith.constant 3 : index
    %c0_339 = arith.constant 0 : index
    %c0_340 = arith.constant 0 : index
    %677 = vector.load %arg22[%c3_338, %c0_339, %c0_340] : memref<4x32x1xf32, #tpu.memory_space<vmem>>, vector<1x32x1xf32>
    %678 = vector.shape_cast %677 : vector<1x32x1xf32> to vector<32x1xf32>
    %679 = vector.broadcast %678 : vector<32x1xf32> to vector<32x16xf32>
    %680 = arith.addf %676, %679 : vector<32x16xf32>
    %cst_341 = arith.constant dense<0.000000e+00> : vector<32xf32>
    %681 = vector.multi_reduction <add>, %680, %cst_341 [1] : vector<32x16xf32> to vector<32xf32>
    %cst_342 = arith.constant 1.600000e+01 : f32
    %682 = vector.broadcast %cst_342 : f32 to vector<32xf32>
    %683 = arith.divf %681, %682 : vector<32xf32>
    %c3_343 = arith.constant 3 : index
    %c0_344 = arith.constant 0 : index
    %c0_345 = arith.constant 0 : index
    %684 = vector.load %arg23[%c3_343, %c0_344, %c0_345] : memref<4x2x32xf32, #tpu.memory_space<vmem>>, vector<1x2x32xf32>
    %685 = vector.shape_cast %684 : vector<1x2x32xf32> to vector<2x32xf32>
    %686 = vector.shape_cast %683 : vector<32xf32> to vector<1x32xf32>
    %687 = vector.broadcast %686 : vector<1x32xf32> to vector<2x32xf32>
    %688 = arith.mulf %685, %687 : vector<2x32xf32>
    %cst_346 = arith.constant dense<0.000000e+00> : vector<2xf32>
    %689 = vector.multi_reduction <add>, %688, %cst_346 [1] : vector<2x32xf32> to vector<2xf32>
    %c3_347 = arith.constant 3 : index
    %c0_348 = arith.constant 0 : index
    %c0_349 = arith.constant 0 : index
    %690 = vector.load %arg24[%c3_347, %c0_348, %c0_349] : memref<4x2x1xf32, #tpu.memory_space<vmem>>, vector<1x2x1xf32>
    %691 = vector.shape_cast %690 : vector<1x2x1xf32> to vector<2x1xf32>
    %692 = vector.shape_cast %691 : vector<2x1xf32> to vector<2xf32>
    %693 = arith.addf %689, %692 : vector<2xf32>
    %cst_350 = arith.constant 0.000000e+00 : f32
    %694 = vector.broadcast %cst_350 : f32 to vector<2xf32>
    %695 = arith.maximumf %693, %694 : vector<2xf32>
    %c3_351 = arith.constant 3 : index
    %c0_352 = arith.constant 0 : index
    %c0_353 = arith.constant 0 : index
    %696 = vector.load %arg25[%c3_351, %c0_352, %c0_353] : memref<4x32x2xf32, #tpu.memory_space<vmem>>, vector<1x32x2xf32>
    %697 = vector.shape_cast %696 : vector<1x32x2xf32> to vector<32x2xf32>
    %698 = vector.shape_cast %695 : vector<2xf32> to vector<1x2xf32>
    %699 = vector.broadcast %698 : vector<1x2xf32> to vector<32x2xf32>
    %700 = arith.mulf %697, %699 : vector<32x2xf32>
    %cst_354 = arith.constant dense<0.000000e+00> : vector<32xf32>
    %701 = vector.multi_reduction <add>, %700, %cst_354 [1] : vector<32x2xf32> to vector<32xf32>
    %c3_355 = arith.constant 3 : index
    %c0_356 = arith.constant 0 : index
    %c0_357 = arith.constant 0 : index
    %702 = vector.load %arg26[%c3_355, %c0_356, %c0_357] : memref<4x32x1xf32, #tpu.memory_space<vmem>>, vector<1x32x1xf32>
    %703 = vector.shape_cast %702 : vector<1x32x1xf32> to vector<32x1xf32>
    %704 = vector.shape_cast %703 : vector<32x1xf32> to vector<32xf32>
    %705 = arith.addf %701, %704 : vector<32xf32>
    %cst_358 = arith.constant 0.000000e+00 : f32
    %706 = vector.broadcast %cst_358 : f32 to vector<32xf32>
    %707 = arith.maximumf %705, %706 : vector<32xf32>
    %708 = arith.negf %707 : vector<32xf32>
    %709 = math.exp %708 : vector<32xf32>
    %cst_359 = arith.constant 1.000000e+00 : f32
    %710 = vector.broadcast %cst_359 : f32 to vector<32xf32>
    %711 = arith.addf %710, %709 : vector<32xf32>
    %712 = arith.divf %710, %711 : vector<32xf32>
    %713 = vector.shape_cast %712 : vector<32xf32> to vector<32x1xf32>
    %714 = vector.broadcast %713 : vector<32x1xf32> to vector<32x16xf32>
    %715 = arith.mulf %680, %714 : vector<32x16xf32>
    %716 = arith.addf %715, %551 : vector<32x16xf32>
    %cst_360 = arith.constant 0.000000e+00 : f32
    %717 = vector.broadcast %cst_360 : f32 to vector<32x16xf32>
    %718 = arith.cmpf ogt, %716, %717 : vector<32x16xf32>
    %cst_361 = arith.constant 0.000000e+00 : f32
    %719 = vector.broadcast %cst_361 : f32 to vector<32x16xf32>
    %720 = arith.minimumf %716, %719 : vector<32x16xf32>
    %721 = math.exp %720 : vector<32x16xf32>
    %cst_362 = arith.constant 1.000000e+00 : f32
    %722 = vector.broadcast %cst_362 : f32 to vector<32x16xf32>
    %723 = arith.subf %721, %722 : vector<32x16xf32>
    %724 = arith.select %718, %716, %723 : vector<32x16xi1>, vector<32x16xf32>
    %c0_363 = arith.constant 0 : index
    %c0_364 = arith.constant 0 : index
    %c0_365 = arith.constant 0 : index
    %725 = vector.load %arg27[%c0_363, %c0_364, %c0_365] : memref<1x32x16xf32, #tpu.memory_space<vmem>>, vector<1x32x16xf32>
    %726 = vector.shape_cast %725 : vector<1x32x16xf32> to vector<32x16xf32>
    %727 = vector.shape_cast %724 : vector<32x16xf32> to vector<1x32x16xf32>
    tpu.vector_store %arg27[%c0_363, %c0_364, %c0_365], %727 {strides = array<i32>} : memref<1x32x16xf32, #tpu.memory_space<vmem>>, vector<1x32x16xf32>,
    return
  }
  func.func @transform_0(%arg0: i32) -> (i32, i32, i32) {
    %c0_i32 = arith.constant 0 : i32
    %c0_i32_0 = arith.constant 0 : i32
    %c0_i32_1 = arith.constant 0 : i32
    return %arg0, %c0_i32, %c0_i32_0 : i32, i32, i32
  }
  func.func @transform_1(%arg0: i32) -> (i32, i32, i32) {
    %c0_i32 = arith.constant 0 : i32
    %c0_i32_0 = arith.constant 0 : i32
    %c0_i32_1 = arith.constant 0 : i32
    return %arg0, %c0_i32, %c0_i32_0 : i32, i32, i32
  }
  func.func @transform_2(%arg0: i32) -> (i32, i32) {
    %c0_i32 = arith.constant 0 : i32
    %c0_i32_0 = arith.constant 0 : i32
    %c0_i32_1 = arith.constant 0 : i32
    return %c0_i32, %c0_i32_0 : i32, i32
  }
  func.func @transform_3(%arg0: i32) -> (i32, i32) {
    %c0_i32 = arith.constant 0 : i32
    %c0_i32_0 = arith.constant 0 : i32
    %c0_i32_1 = arith.constant 0 : i32
    return %c0_i32, %c0_i32_0 : i32, i32
  }
  func.func @transform_4(%arg0: i32) -> (i32, i32) {
    %c0_i32 = arith.constant 0 : i32
    %c0_i32_0 = arith.constant 0 : i32
    %c0_i32_1 = arith.constant 0 : i32
    return %c0_i32, %c0_i32_0 : i32, i32
  }
  func.func @transform_5(%arg0: i32) -> (i32, i32) {
    %c0_i32 = arith.constant 0 : i32
    %c0_i32_0 = arith.constant 0 : i32
    %c0_i32_1 = arith.constant 0 : i32
    return %c0_i32, %c0_i32_0 : i32, i32
  }
  func.func @transform_6(%arg0: i32) -> (i32, i32) {
    %c0_i32 = arith.constant 0 : i32
    %c0_i32_0 = arith.constant 0 : i32
    %c0_i32_1 = arith.constant 0 : i32
    return %c0_i32, %c0_i32_0 : i32, i32
  }
  func.func @transform_7(%arg0: i32) -> (i32, i32) {
    %c0_i32 = arith.constant 0 : i32
    %c0_i32_0 = arith.constant 0 : i32
    %c0_i32_1 = arith.constant 0 : i32
    return %c0_i32, %c0_i32_0 : i32, i32
  }
  func.func @transform_8(%arg0: i32) -> (i32, i32) {
    %c0_i32 = arith.constant 0 : i32
    %c0_i32_0 = arith.constant 0 : i32
    %c0_i32_1 = arith.constant 0 : i32
    return %c0_i32, %c0_i32_0 : i32, i32
  }
  func.func @transform_9(%arg0: i32) -> (i32, i32) {
    %c0_i32 = arith.constant 0 : i32
    %c0_i32_0 = arith.constant 0 : i32
    %c0_i32_1 = arith.constant 0 : i32
    return %c0_i32, %c0_i32_0 : i32, i32
  }
  func.func @transform_10(%arg0: i32) -> (i32, i32, i32) {
    %c0_i32 = arith.constant 0 : i32
    %c0_i32_0 = arith.constant 0 : i32
    %c0_i32_1 = arith.constant 0 : i32
    %c0_i32_2 = arith.constant 0 : i32
    return %c0_i32, %c0_i32_0, %c0_i32_1 : i32, i32, i32
  }
  func.func @transform_11(%arg0: i32) -> (i32, i32, i32) {
    %c0_i32 = arith.constant 0 : i32
    %c0_i32_0 = arith.constant 0 : i32
    %c0_i32_1 = arith.constant 0 : i32
    %c0_i32_2 = arith.constant 0 : i32
    return %c0_i32, %c0_i32_0, %c0_i32_1 : i32, i32, i32
  }
  func.func @transform_12(%arg0: i32) -> (i32, i32, i32) {
    %c0_i32 = arith.constant 0 : i32
    %c0_i32_0 = arith.constant 0 : i32
    %c0_i32_1 = arith.constant 0 : i32
    %c0_i32_2 = arith.constant 0 : i32
    return %c0_i32, %c0_i32_0, %c0_i32_1 : i32, i32, i32
  }
  func.func @transform_13(%arg0: i32) -> (i32, i32, i32) {
    %c0_i32 = arith.constant 0 : i32
    %c0_i32_0 = arith.constant 0 : i32
    %c0_i32_1 = arith.constant 0 : i32
    %c0_i32_2 = arith.constant 0 : i32
    return %c0_i32, %c0_i32_0, %c0_i32_1 : i32, i32, i32
  }
  func.func @transform_14(%arg0: i32) -> (i32, i32, i32) {
    %c0_i32 = arith.constant 0 : i32
    %c0_i32_0 = arith.constant 0 : i32
    %c0_i32_1 = arith.constant 0 : i32
    %c0_i32_2 = arith.constant 0 : i32
    return %c0_i32, %c0_i32_0, %c0_i32_1 : i32, i32, i32
  }
  func.func @transform_15(%arg0: i32) -> (i32, i32, i32) {
    %c0_i32 = arith.constant 0 : i32
    %c0_i32_0 = arith.constant 0 : i32
    %c0_i32_1 = arith.constant 0 : i32
    %c0_i32_2 = arith.constant 0 : i32
    return %c0_i32, %c0_i32_0, %c0_i32_1 : i32, i32, i32
  }
  func.func @transform_16(%arg0: i32) -> (i32, i32, i32) {
    %c0_i32 = arith.constant 0 : i32
    %c0_i32_0 = arith.constant 0 : i32
    %c0_i32_1 = arith.constant 0 : i32
    %c0_i32_2 = arith.constant 0 : i32
    return %c0_i32, %c0_i32_0, %c0_i32_1 : i32, i32, i32
  }
  func.func @transform_17(%arg0: i32) -> (i32, i32, i32) {
    %c0_i32 = arith.constant 0 : i32
    %c0_i32_0 = arith.constant 0 : i32
    %c0_i32_1 = arith.constant 0 : i32
    %c0_i32_2 = arith.constant 0 : i32
    return %c0_i32, %c0_i32_0, %c0_i32_1 : i32, i32, i32
  }
  func.func @transform_18(%arg0: i32) -> (i32, i32, i32) {
    %c0_i32 = arith.constant 0 : i32
    %c0_i32_0 = arith.constant 0 : i32
    %c0_i32_1 = arith.constant 0 : i32
    %c0_i32_2 = arith.constant 0 : i32
    return %c0_i32, %c0_i32_0, %c0_i32_1 : i32, i32, i32
  }
  func.func @transform_19(%arg0: i32) -> (i32, i32, i32) {
    %c0_i32 = arith.constant 0 : i32
    %c0_i32_0 = arith.constant 0 : i32
    %c0_i32_1 = arith.constant 0 : i32
    %c0_i32_2 = arith.constant 0 : i32
    return %c0_i32, %c0_i32_0, %c0_i32_1 : i32, i32, i32
  }
  func.func @transform_20(%arg0: i32) -> (i32, i32, i32) {
    %c0_i32 = arith.constant 0 : i32
    %c0_i32_0 = arith.constant 0 : i32
    %c0_i32_1 = arith.constant 0 : i32
    %c0_i32_2 = arith.constant 0 : i32
    return %c0_i32, %c0_i32_0, %c0_i32_1 : i32, i32, i32
  }
  func.func @transform_21(%arg0: i32) -> (i32, i32, i32) {
    %c0_i32 = arith.constant 0 : i32
    %c0_i32_0 = arith.constant 0 : i32
    %c0_i32_1 = arith.constant 0 : i32
    %c0_i32_2 = arith.constant 0 : i32
    return %c0_i32, %c0_i32_0, %c0_i32_1 : i32, i32, i32
  }
  func.func @transform_22(%arg0: i32) -> (i32, i32, i32) {
    %c0_i32 = arith.constant 0 : i32
    %c0_i32_0 = arith.constant 0 : i32
    %c0_i32_1 = arith.constant 0 : i32
    %c0_i32_2 = arith.constant 0 : i32
    return %c0_i32, %c0_i32_0, %c0_i32_1 : i32, i32, i32
  }
  func.func @transform_23(%arg0: i32) -> (i32, i32, i32) {
    %c0_i32 = arith.constant 0 : i32
    %c0_i32_0 = arith.constant 0 : i32
    %c0_i32_1 = arith.constant 0 : i32
    %c0_i32_2 = arith.constant 0 : i32
    return %c0_i32, %c0_i32_0, %c0_i32_1 : i32, i32, i32
  }
  func.func @transform_24(%arg0: i32) -> (i32, i32, i32) {
    %c0_i32 = arith.constant 0 : i32
    %c0_i32_0 = arith.constant 0 : i32
    %c0_i32_1 = arith.constant 0 : i32
    %c0_i32_2 = arith.constant 0 : i32
    return %c0_i32, %c0_i32_0, %c0_i32_1 : i32, i32, i32
  }
  func.func @transform_25(%arg0: i32) -> (i32, i32, i32) {
    %c0_i32 = arith.constant 0 : i32
    %c0_i32_0 = arith.constant 0 : i32
    %c0_i32_1 = arith.constant 0 : i32
    %c0_i32_2 = arith.constant 0 : i32
    return %c0_i32, %c0_i32_0, %c0_i32_1 : i32, i32, i32
  }
  func.func @transform_26(%arg0: i32) -> (i32, i32, i32) {
    %c0_i32 = arith.constant 0 : i32
    %c0_i32_0 = arith.constant 0 : i32
    %c0_i32_1 = arith.constant 0 : i32
    return %arg0, %c0_i32, %c0_i32_0 : i32, i32, i32
  }
}

</mosaic_0001>

<bundles_post_ra>
// kernel: tpu_custom_call.1
= control target key start
LH: loop header
LB: loop body
LE: loop exit
PB: predicated region body
PF: predicated region fallthrough
CT: control target
= control target key end

     0   :  { %s4890_s27 = smov 0   ;;  %s6163_s0 = inlined_call_operand.vmem [shape: f32[2,8,256], index: 0, kind: input, shape index: {}]   ;;  %s6164_s1 = inlined_call_operand.vmem [shape: f32[2,1,256], index: 1, kind: input, shape index: {}]   ;;  %s6165_s2 = inlined_call_operand.vmem [shape: f32[4,256], index: 2, kind: input, shape index: {}]   ;;  %s6166_s3 = inlined_call_operand.vmem [shape: f32[256,16], index: 3, kind: input, shape index: {}]   ;;  %s6167_s4 = inlined_call_operand.vmem [shape: f32[8,8], index: 4, kind: input, shape index: {}]   ;;  %s6168_s5 = inlined_call_operand.vmem [shape: f32[8,1], index: 5, kind: input, shape index: {}]   ;;  %s6169_s6 = inlined_call_operand.vmem [shape: f32[32,1], index: 6, kind: input, shape index: {}]   ;;  %s6170_s7 = inlined_call_operand.vmem [shape: f32[32,1], index: 7, kind: input, shape index: {}]   ;;  %s6171_s8 = inlined_call_operand.vmem [shape: f32[32,32], index: 8, kind: input, shape index: {}]   ;;  %s6172_s9 = inlined_call_operand.vmem [shape: f32[32,1], index: 9, kind: input, shape index: {}]   ;;  %s6173_s10 = inlined_call_operand.vmem [shape: f32[4,32,1], index: 10, kind: input, shape index: {}]   ;;  %s6174_s11 = inlined_call_operand.vmem [shape: f32[4,32,1], index: 11, kind: input, shape index: {}]   ;;  %s6175_s12 = inlined_call_operand.vmem [shape: f32[4,16,32], index: 12, kind: input, shape index: {}]   ;;  %s6176_s13 = inlined_call_operand.vmem [shape: f32[4,16,1], index: 13, kind: input, shape index: {}]   ;;  %s6177_s14 = inlined_call_operand.vmem [shape: f32[4,16,1], index: 14, kind: input, shape index: {}]   ;;  %s6178_s15 = inlined_call_operand.vmem [shape: f32[4,16,1], index: 15, kind: input, shape index: {}]   ;;  %s6179_s16 = inlined_call_operand.vmem [shape: f32[4,16,48], index: 16, kind: input, shape index: {}]   ;;  %s6180_s17 = inlined_call_operand.vmem [shape: f32[4,16,1], index: 17, kind: input, shape index: {}]   ;;  %s6181_s18 = inlined_call_operand.vmem [shape: f32[4,16,1], index: 18, kind: input, shape index: {}]   ;;  %s6182_s19 = inlined_call_operand.vmem [shape: f32[4,16,1], index: 19, kind: input, shape index: {}]   ;;  %s6183_s20 = inlined_call_operand.vmem [shape: f32[4,32,16], index: 20, kind: input, shape index: {}]   ;;  %s6184_s21 = inlined_call_operand.vmem [shape: f32[4,32,1], index: 21, kind: input, shape index: {}]   ;;  %s6185_s22 = inlined_call_operand.vmem [shape: f32[4,2,32], index: 22, kind: input, shape index: {}]   ;;  %s6186_s23 = inlined_call_operand.vmem [shape: f32[4,2,1], index: 23, kind: input, shape index: {}]   ;;  %s6187_s24 = inlined_call_operand.vmem [shape: f32[4,32,2], index: 24, kind: input, shape index: {}]   ;;  %s6188_s25 = inlined_call_operand.vmem [shape: f32[4,32,1], index: 25, kind: input, shape index: {}]   ;;  %s6189_s26 = inlined_call_operand.vmem [shape: f32[2,32,16], index: 26, kind: output, shape index: {}]  }
   0x1   :  { %6203 = sst [smem:[#allocation2_spill]] %s6163_s0 }
   0x2   :  { %6204 = sst [smem:[#allocation3_spill]] %s6164_s1 }
   0x3   :  { %6205 = sst [smem:[#allocation4_spill]] %s6165_s2 }
   0x4   :  { %6206 = sst [smem:[#allocation5_spill]] %s6166_s3 }
   0x5   :  { %6207 = sst [smem:[#allocation6_spill]] %s6167_s4 }
   0x6   :  { %6208 = sst [smem:[#allocation7_spill]] %s6168_s5 }
   0x7   :  { %6209 = sst [smem:[#allocation8_spill]] %s6169_s6 }
   0x8   :  { %6210 = sst [smem:[#allocation9_spill]] %s6170_s7 }
   0x9   :  { %6211 = sst [smem:[#allocation10_spill]] %s6171_s8 }
   0xa   :  { %6212 = sst [smem:[#allocation11_spill]] %s6172_s9 }
   0xb   :  { %6213 = sst [smem:[#allocation12_spill]] %s6173_s10 }
   0xc LB: > { %s4212_s3 = sadd.s32 4294967295, %s4742_s27   ;;  %p4216_p0 = scmp.ge.s32.totalorder %s4742_s27, 1  ;;  %s4742_s27 = sphi %s4890_s27, %s36_s27  }
   0xd   : > { %p721_p1 = scmp.lt.s32.totalorder %s4742_s27, 3 }
   0xf   : > { %p722_p2 = pnand %p4216_p0, %p721_p1 }
  0x10   : > { %p795_p3 = scmp.lt.s32.totalorder (!%p722_p2), %s4212_s3, 1  ;;  %s6214_s8 = sld [smem:[#allocation7_spill]] (!%p722_p2) }
  0x11   : > { %725 = sbr.rel (%p722_p2) target bundleno = 9481 (0x2509), region = 124  ;;  %s6215_s0 = sld [smem:[#allocation5_spill]] (!%p722_p2) }
  0x12   : > { %s6216_s30 = sld [smem:[#allocation2_spill]] (!%p722_p2)  ;;  %s4746_s9 = smov (!%p722_p2), 1  }
  0x13   : > { %s6217_s6 = sld [smem:[#allocation6_spill]] (!%p722_p2)  ;;  %s4754_s7 = smov (!%p722_p2), 112  }
  0x14   : > { %s6220_s28 = sld [smem:[#allocation8_spill]] (!%p722_p2) }
  0x15   : > { %s6223_s10 = sld [smem:[#allocation12_spill]] (!%p722_p2) }
  0x16   : > { %v812_v0 = vld [vmem:[%s6214_s8] sm:$0xff]  ;;  %v4744_v2 = vmov 0   ;;  %s6235_s3 = smov (!%p795_p3, %s4212_s3), 1  ;;  %vm6200_vm0 = vcmask 64512   ;;  %vm873_vm1 = vcmask 1040384   ;;  %vm875_vm2 = vcmask 1041409  }
  0x17   : > { %v923_v1 = vld [vmem:[%s6215_s0 + $0x78] sm:$0xff]  ;;  %4475 = vset.pattern.permute.xlu0 %v4744_v2  ;;  %v922_v4 = vld [vmem:[%s6215_s0 + $0x70] sm:$0xff]  ;;  %v921_v6 = vld [vmem:[%s6215_s0 + $0x68] sm:$0xff]  ;;  %4477 = vset.pattern.permute.xlu1 %v4744_v2  ;;  %s4452_s4 = sshll.u32 %s6235_s3, 4  ;;  %vm878_vm3 = vcmask 1042434   ;;  %vm881_vm4 = vcmask 1043459  }
  0x18   : > { %940 = vmatpush.msra.mxu2 %v923_v1  ;;  %v939_v3 = vld [vmem:[%s6215_s0 + $0xf8] sm:$0xff]  ;;  %v938_v5 = vld [vmem:[%s6215_s0 + $0xf0] sm:$0xff]  ;;  %815 = vperm.xlu0 %4475, %v812_v0   ;;  %v937_v7 = vld [vmem:[%s6215_s0 + $0xe8] sm:$0xff]  ;;  %s799_s2 = scalar_lea.vmem %s6216_s30, %s4452_s4  ;;  %s4219_s4 = sshll.u32 %s6235_s3, 1  ;;  %vm1006_vm5 = vcmask 130048  }
  0x19   : > { %969 = vmatpush.msra.mxu3 %v939_v3  ;;  %4476 = vset.pattern.permute.xlu2 %v4744_v2  ;;  %v811_v8 = vld [vmem:[%s6217_s6] sm:$0xff]  ;;  %v810_v11 = vld [vmem:[%s799_s2 + $0x8] sm:$0xff]  ;;  %v919_v13 = vld [vmem:[%s6215_s0 + $0x58] sm:$0xff]  ;;  %s6218_s30 = sld [smem:[#allocation3_spill]] }
  0x1a   : > { %941 = vmatpush.msra.mxu2 %v922_v4  ;;  %v920_v9 = vld [vmem:[%s6215_s0 + $0x60] sm:$0xff]  ;;  %857 = vmatpush.msra.mxu1 %v810_v11  ;;  %v935_v14 = vld [vmem:[%s6215_s0 + $0xd8] sm:$0xff]  ;;  %v918_v15 = vld [vmem:[%s6215_s0 + $0x50] sm:$0xff]  ;;  %s6219_s6 = sld [smem:[#allocation4_spill]] }
  0x1b   : > { %970 = vmatpush.msra.mxu3 %v938_v5  ;;  %v809_v10 = vld [vmem:[%s799_s2] sm:$0xff]  ;;  %4223 = vmatmul.msk.f32.vlgmr.msra.gmra.mxu1 %vm6200_vm0, %v811_v8  ;;  %v934_v16 = vld [vmem:[%s6215_s0 + $0xd0] sm:$0xff]  ;;  %v917_v17 = vld [vmem:[%s6215_s0 + $0x48] sm:$0xff]  ;;  %s6224_s1 = sld [smem:[#allocation10_spill]] }
  0x1c   : > { %942 = vmatpush.msra.mxu2 %v921_v6  ;;  %v936_v12 = vld [vmem:[%s6215_s0 + $0xe0] sm:$0xff]  ;;  %837 = vmatpush.msra.mxu0 %v809_v10  ;;  %v933_v18 = vld [vmem:[%s6215_s0 + $0xc8] sm:$0xff]  ;;  %v915_v21 = vld [vmem:[%s6215_s0 + $0x38] sm:$0xff] }
  0x1d   : > { %971 = vmatpush.msra.mxu3 %v937_v7  ;;  %4222 = vmatmul.msk.f32.vlgmr.msra.gmra.mxu0 %vm6200_vm0, %v811_v8  ;;  %v916_v19 = vld [vmem:[%s6215_s0 + $0x40] sm:$0xff]  ;;  %v931_v22 = vld [vmem:[%s6215_s0 + $0xb8] sm:$0xff]  ;;  %v914_v23 = vld [vmem:[%s6215_s0 + $0x30] sm:$0xff] }
  0x1e   : > { %943 = vmatpush.msra.mxu2 %v920_v9  ;;  %v932_v20 = vld [vmem:[%s6215_s0 + $0xc0] sm:$0xff]  ;;  %v930_v24 = vld [vmem:[%s6215_s0 + $0xb0] sm:$0xff]  ;;  %v913_v25 = vld [vmem:[%s6215_s0 + $0x28] sm:$0xff] }
  0x1f   : > { %972 = vmatpush.msra.mxu3 %v936_v12  ;;  %v929_v26 = vld [vmem:[%s6215_s0 + $0xa8] sm:$0xff]  ;;  %v912_v27 = vld [vmem:[%s6215_s0 + $0x20] sm:$0xff]  ;;  %v911_v29 = vld [vmem:[%s6215_s0 + $0x18] sm:$0xff]  ;;  %s803_s2 = scalar_lea.vmem %s6218_s30, %s4219_s4  ;;  %s6221_s30 = sld [smem:[#allocation9_spill]] }
  0x20   : > { %944 = vmatpush.msra.mxu2 %v919_v13  ;;  %v928_v28 = vld [vmem:[%s6215_s0 + $0xa0] sm:$0xff]  ;;  %v927_v30 = vld [vmem:[%s6215_s0 + $0x98] sm:$0xff]  ;;  %v910_v31 = vld [vmem:[%s6215_s0 + $0x10] sm:$0xff] }
  0x21   : > { %973 = vmatpush.msra.mxu3 %v935_v14  ;;  %v926_v32 = vld [vmem:[%s6215_s0 + $0x90] sm:$0xff]  ;;  %v909_v33 = vld [vmem:[%s6215_s0 + $0x8] sm:$0xff]  ;;  %v908_v35 = vld [vmem:[%s6215_s0] sm:$0xff] }
  0x22   : > { %945 = vmatpush.msra.mxu2 %v918_v15  ;;  %v925_v34 = vld [vmem:[%s6215_s0 + $0x88] sm:$0xff]  ;;  %v924_v36 = vld [vmem:[%s6215_s0 + $0x80] sm:$0xff]  ;;  %s6222_s0 = sld [smem:[#allocation11_spill]] }
  0x23   : > { %974 = vmatpush.msra.mxu3 %v934_v16  ;;  %v870_v37 = vld [vmem:[%s6219_s6] sm:$0xff]  ;;  %s6199_s6 = smov 126  }
  0x24   : > { %946 = vmatpush.msra.mxu2 %v917_v17  ;;  %v862_v38 = vld [vmem:[%s803_s2] sm:$0x3]  ;;  %v872_v39 = vrot.slane %v870_v37, 3  ;;  %s6202_s2 = smov 124  }
  0x25   : > { %975 = vmatpush.msra.mxu3 %v933_v18  ;;  %v864_v42 = vperm.slane %v862_v38, 0  ;;  %v865_v43 = vperm.slane %v862_v38, 1 }
  0x26   : > { %947 = vmatpush.msra.mxu2 %v916_v19  ;;  %v874_v41 = vsel %vm873_vm1, %v870_v37, %v872_v39  ;;  %v876_v50 = vsel %vm875_vm2, %v870_v37, %v872_v39  ;;  %v879_v58 = vsel %vm878_vm3, %v870_v37, %v872_v39  ;;  %v882_v0 = vsel %vm881_vm4, %v870_v37, %v872_v39 }
  0x27   : > { %976 = vmatpush.msra.mxu3 %v932_v20  ;;  %v884_v48 = vperm.slane %v874_v41, 0  ;;  %v885_v49 = vperm.slane %v874_v41, 1  ;;  %v877_v55 = vrot.slane %v876_v50, 1  ;;  %v880_v61 = vrot.slane %v879_v58, 2 }
  0x28   : > { %948 = vmatpush.msra.mxu2 %v915_v21  ;;  %v883_v3 = vrot.slane %v882_v0, 3  ;;  %v1246_v0 = vld [vmem:[%s6223_s10 + $0x10] sm:$0xff] }
  0x29   : > { %977 = vmatpush.msra.mxu3 %v931_v22  ;;  %v886_v56 = vperm.slane %v877_v55, 0  ;;  %v887_v57 = vperm.slane %v877_v55, 1  ;;  %v888_v62 = vperm.slane %v880_v61, 0  ;;  %v889_v63 = vperm.slane %v880_v61, 1  ;;  %v1179_v61 = vld [vmem:[%s6222_s0 + $0x8] sm:$0xff] }
  0x2a   : > { %949 = vmatpush.msra.mxu2 %v914_v23  ;;  %v890_v4 = vperm.slane %v883_v3, 0  ;;  %v891_v5 = vperm.slane %v883_v3, 1 }
  0x2b   : > { %978 = vmatpush.msra.mxu3 %v930_v24  ;;  %v1001_v24 = vld [vmem:[%s6220_s28 + $0x18] sm:$0xff] }
  0x2c   : > { %950 = vmatpush.msra.mxu2 %v913_v25  ;;  %v999_v25 = vld [vmem:[%s6220_s28 + $0x8] sm:$0xff] }
  0x2d   : > { %979 = vmatpush.msra.mxu3 %v929_v26  ;;  %v1005_v26 = vld [vmem:[%s6221_s30 + $0x18] sm:$0xff] }
  0x2e   : > { %951 = vmatpush.msra.mxu2 %v912_v27  ;;  %v1000_v27 = vld [vmem:[%s6220_s28 + $0x10] sm:$0xff] }
  0x2f   : > { %980 = vmatpush.msra.mxu3 %v928_v28  ;;  %v1181_v28 = vld [vmem:[%s6222_s0 + $0x18] sm:$0xff] }
  0x30   : > { %952 = vmatpush.msra.mxu2 %v911_v29  ;;  %v1004_v29 = vld [vmem:[%s6221_s30 + $0x10] sm:$0xff] }
  0x31   : > { %981 = vmatpush.msra.mxu3 %v927_v30  ;;  %v998_v30 = vld [vmem:[%s6220_s28] sm:$0xff]  ;;  %s4747_s28 = smov 127  }
  0x32   : > { %953 = vmatpush.msra.mxu2 %v910_v31  ;;  %v1178_v31 = vld [vmem:[%s6222_s0] sm:$0xff] }
  0x33   : > { %982 = vmatpush.msra.mxu3 %v926_v32  ;;  %v1247_v32 = vld [vmem:[%s6223_s10 + $0x18] sm:$0xff] }
  0x34   : > { %954 = vmatpush.msra.mxu2 %v909_v33  ;;  %v4745_v33 = vmov 16.0  }
  0x35   : > { %983 = vmatpush.msra.mxu3 %v925_v34  ;;  %4518 = vrcp.f32 %v4745_v33 }
  0x36   : > { %955 = vmatpush.msra.mxu2 %v908_v35 }
  0x37   : > { %984 = vmatpush.msra.mxu3 %v924_v36 }
  0x3b   : > { %v4519_v34 = vpop.eup %4518 }
  0x3c   : > { %v1020_v35 = vmul.f32 16.0, %v4519_v34  ;;  %vm1024_vm6 = vweird.f32 %v4519_v34 }
  0x3e   : > { %v1021_v36 = vsub.f32 1.0, %v1020_v35 }
  0x40   : > { %v1022_v37 = vmul.f32 %v4519_v34, %v1021_v36 }
  0x42   : > { %v1023_v38 = vadd.f32 %v4519_v34, %v1022_v37 }
  0x44   : > { %v5046_v39 = vsel %vm1024_vm6, %v4519_v34, %v1023_v38 }
  0x8a   : > { %v816_v40 = vpop.permute.xlu0 %815 }
  0x98   : > { %v859_v45 = vpop.f32.mrf.mxu1 }
  0x99   : > { %v860_v47 = vadd.f32 %v859_v45, %v816_v40 }
  0x9a   : > { %v839_v44 = vpop.f32.mrf.mxu0 }
  0x9b   : > { %v840_v46 = vadd.f32 %v839_v44, %v816_v40  ;;  %v869_v52 = vmul.f32 %v865_v43, %v860_v47 }
  0x9d   : > { %v868_v51 = vmul.f32 %v864_v42, %v840_v46  ;;  %v901_v54 = vmul.f32 %v885_v49, %v869_v52  ;;  %v903_v60 = vmul.f32 %v887_v57, %v869_v52  ;;  %v905_v2 = vmul.f32 %v889_v63, %v869_v52  ;;  %v1180_v63 = vld [vmem:[%s6222_s0 + $0x10] sm:$0xff]  ;;  %s4752_s0 = smov 120  }
  0x9e   : > { %v907_v7 = vmul.f32 %v891_v5, %v869_v52 }
  0x9f   : > { %v900_v53 = vmul.f32 %v884_v48, %v868_v51  ;;  %985 = vmatmul.f32.vlgmr.msra.gmra.mxu3 %v901_v54  ;;  %v902_v59 = vmul.f32 %v886_v56, %v868_v51  ;;  %v904_v1 = vmul.f32 %v888_v62, %v868_v51  ;;  %v906_v6 = vmul.f32 %v890_v4, %v868_v51  ;;  %v1003_v62 = vld [vmem:[%s6221_s30 + $0x8] sm:$0xff] }
  0xa1   : > { %956 = vmatmul.f32.vlgmr.msra.gmra.mxu2 %v900_v53 }
  0xa7   : > { %988 = vmatmul.f32.gmra.mxu3 %v903_v60  ;;  %v1002_v60 = vld [vmem:[%s6221_s30] sm:$0xff] }
  0xa9   : > { %959 = vmatmul.f32.gmra.mxu2 %v902_v59 }
  0xaf   : > { %991 = vmatmul.f32.gmra.mxu3 %v905_v2 }
  0xb1   : > { %962 = vmatmul.f32.gmra.mxu2 %v904_v1 }
  0xb7   : > { %994 = vmatmul.f32.gmra.mxu3 %v907_v7 }
  0xb9   : > { %965 = vmatmul.f32.gmra.mxu2 %v906_v6 }
 0x122   : > { %v986_v9 = vpop.f32.mrf.mxu3 }
 0x124   : > { %v957_v8 = vpop.f32.mrf.mxu2 }
 0x125   : > { %v987_v10 = vadd.f32 %v986_v9, %v957_v8 }
 0x127   : > { %v1007_v11 = vsel %vm1006_vm5, %v987_v10, 0.0 }
 0x128   : > { %1008 = vadd.xlane.f32.xlu2 %v1007_v11 }
 0x12a   : > { %v989_v13 = vpop.f32.mrf.mxu3 }
 0x12c   : > { %v960_v12 = vpop.f32.mrf.mxu2 }
 0x12d   : > { %v990_v18 = vadd.f32 %v989_v13, %v960_v12 }
 0x12f   : > { %v1010_v22 = vsel %vm1006_vm5, %v990_v18, 0.0 }
 0x132   : > { %v992_v15 = vpop.f32.mrf.mxu3 }
 0x134   : > { %v963_v14 = vpop.f32.mrf.mxu2 }
 0x135   : > { %v993_v16 = vadd.f32 %v992_v15, %v963_v14 }
 0x137   : > { %v1013_v17 = vsel %vm1006_vm5, %v993_v16, 0.0 }
 0x138   : > { %1014 = vadd.xlane.f32.xlu1 %v1013_v17 }
 0x13a   : > { %v995_v20 = vpop.f32.mrf.mxu3 }
 0x13c   : > { %v966_v19 = vpop.f32.mrf.mxu2 }
 0x13d   : > { %v996_v21 = vadd.f32 %v995_v20, %v966_v19 }
 0x13f   : > { %v1016_v23 = vsel %vm1006_vm5, %v996_v21, 0.0 }
 0x140   : > { %1011 = vadd.xlane.f32.xlu1 %v1010_v22  ;;  %1017 = vadd.xlane.f32.xlu0 %v1016_v23 }
 0x141   : > { %1119 = vperm.xlu2 %4476, %v1001_v24  }
 0x149   : > { %1143 = vperm.xlu2 %4476, %v1005_v26  }
 0x151   : > { %1138 = vperm.xlu2 %4476, %v1004_v29  }
 0x154   : > { %1109 = vperm.xlu0 %4475, %v999_v25  }
 0x159   : > { %1114 = vperm.xlu1 %4477, %v1000_v27  }
 0x15c   : > { %1199 = vperm.xlu0 %4475, %v1181_v28  }
 0x161   : > { %1104 = vperm.xlu1 %4477, %v998_v30  }
 0x164   : > { %1184 = vperm.xlu0 %4475, %v1178_v31  }
 0x16c   : > { %1357 = vperm.xlu0 %4475, %v1247_v32  }
 0x19b   : > { %v1009_v40 = vpop.xlane.xlu2 %1008 }
 0x19c   : > { %v1026_v41 = vmul.f32 %v5046_v39, %v1009_v40 }
 0x19e   : > { %v5049_v42 = vsub.f32 %v987_v10, %v1026_v41 }
 0x1a0   : > { %v1034_v43 = vmul.f32 %v5049_v42, %v5049_v42 }
 0x1a2   : > { %v1038_v44 = vsel %vm1006_vm5, %v1034_v43, 0.0 }
 0x1a3   : > { %1039 = vadd.xlane.f32.xlu1 %v1038_v44  ;;  %v5087_v2 = vpop.permute.xlu2 %1119 }
 0x1ab   : > { %v1015_v45 = vpop.xlane.xlu1 %1014  ;;  %v5091_v4 = vpop.permute.xlu2 %1143 }
 0x1ac   : > { %v1028_v46 = vmul.f32 %v5046_v39, %v1015_v45 }
 0x1ae   : > { %v5055_v47 = vsub.f32 %v993_v16, %v1028_v46 }
 0x1b0   : > { %v1036_v48 = vmul.f32 %v5055_v47, %v5055_v47 }
 0x1b2   : > { %v1044_v49 = vsel %vm1006_vm5, %v1036_v48, 0.0 }
 0x1b3   : > { %1045 = vadd.xlane.f32.xlu1 %v1044_v49  ;;  %v1012_v50 = vpop.xlane.xlu1 %1011  ;;  %v1018_v51 = vpop.xlane.xlu0 %1017 }
 0x1b4   : > { %v1027_v52 = vmul.f32 %v5046_v39, %v1012_v50  ;;  %v1029_v54 = vmul.f32 %v5046_v39, %v1018_v51  ;;  %v1139_v8 = vpop.permute.xlu2 %1138 }
 0x1b6   : > { %v5061_v53 = vsub.f32 %v990_v18, %v1027_v52  ;;  %v5066_v56 = vsub.f32 %v996_v21, %v1029_v54 }
 0x1b8   : > { %v1035_v55 = vmul.f32 %v5061_v53, %v5061_v53  ;;  %v1037_v58 = vmul.f32 %v5066_v56, %v5066_v56 }
 0x1ba   : > { %v1041_v57 = vsel %vm1006_vm5, %v1035_v55, 0.0  ;;  %v1047_v59 = vsel %vm1006_vm5, %v1037_v58, 0.0 }
 0x1bb   : > { %1042 = vadd.xlane.f32.xlu2 %v1041_v57 }
 0x1c3   : > { %1048 = vadd.xlane.f32.xlu2 %v1047_v59 }
 0x1c6   : > { %v1110_v48 = vpop.permute.xlu0 %1109 }
 0x1cb   : > { %v1115_v1 = vpop.permute.xlu1 %1114 }
 0x1cc   : > { %1128 = vperm.xlu1 %4477, %v1002_v60  }
 0x1d3   : > { %v5089_v3 = vpop.permute.xlu1 %1104 }
 0x1d4   : > { %1189 = vperm.xlu1 %4477, %v1179_v61  }
 0x1db   : > { %1133 = vperm.xlu2 %4476, %v1003_v62  }
 0x1e3   : > { %1194 = vperm.xlu2 %4476, %v1180_v63  }
 0x1eb   : > { %1352 = vperm.xlu2 %4476, %v1246_v0  }
 0x216   : > { %v1040_v5 = vpop.xlane.xlu1 %1039 }
 0x217   : > { %v1050_v6 = vmul.f32 %v1040_v5, %v5046_v39 }
 0x219   : > { %v1054_v7 = vadd.f32 1e-06, %v1050_v6 }
 0x21b   : > { %4520 = vrsqrt.f32 %v1054_v7  ;;  %vm1064_vm12 = vweird.f32 %v1054_v7 }
 0x221   : > { %v4521_v12 = vpop.eup %4520 }
 0x222   : > { %v1059_v15 = vmul.f32 %v4521_v12, %v1054_v7  ;;  %vm1065_vm10 = vweird.f32 %v4521_v12 }
 0x223   : > { %vm1066_vm13 = vmor %vm1064_vm12, %vm1065_vm10 }
 0x224   : > { %v1060_v19 = vmul.f32 %v4521_v12, %v1059_v15 }
 0x226   : > { %v1046_v9 = vpop.xlane.xlu1 %1045  ;;  %v1061_v24 = vmul.f32 0.5, %v1060_v19  ;;  %v1175_v19 = vld [vmem:[%s6224_s1 + $0x8] sm:$0xff] }
 0x227   : > { %v1052_v10 = vmul.f32 %v1046_v9, %v5046_v39 }
 0x228   : > { %v1062_v30 = vsub.f32 1.5, %v1061_v24 }
 0x229   : > { %v1056_v11 = vadd.f32 1e-06, %v1052_v10 }
 0x22a   : > { %v1063_v35 = vmul.f32 %v4521_v12, %v1062_v30 }
 0x22b   : > { %4522 = vrsqrt.f32 %v1056_v11  ;;  %vm1084_vm8 = vweird.f32 %v1056_v11 }
 0x22c   : > { %v1067_v43 = vsel %vm1066_vm13, %v4521_v12, %v1063_v35 }
 0x22d   : > { %v1098_v50 = vmul.f32 %v1067_v43, %v5049_v42 }
 0x22e   : > { %v1043_v13 = vpop.xlane.xlu2 %1042 }
 0x22f   : > { %v1051_v14 = vmul.f32 %v1043_v13, %v5046_v39  ;;  %v1122_v59 = vmul.f32 %v5089_v3, %v1098_v50 }
 0x231   : > { %v4523_v16 = vpop.eup %4522  ;;  %v1055_v17 = vadd.f32 1e-06, %v1051_v14 }
 0x232   : > { %v1079_v18 = vmul.f32 %v4523_v16, %v1056_v11  ;;  %vm1085_vm7 = vweird.f32 %v4523_v16 }
 0x233   : > { %4524 = vrsqrt.f32 %v1055_v17  ;;  %vm1086_vm9 = vmor %vm1084_vm8, %vm1085_vm7  ;;  %vm1074_vm14 = vweird.f32 %v1055_v17 }
 0x234   : > { %v1080_v20 = vmul.f32 %v4523_v16, %v1079_v18 }
 0x236   : > { %v1081_v21 = vmul.f32 0.5, %v1080_v20  ;;  %v1049_v22 = vpop.xlane.xlu2 %1048  ;;  %v1176_v20 = vld [vmem:[%s6224_s1 + $0x10] sm:$0xff] }
 0x237   : > { %v1053_v23 = vmul.f32 %v1049_v22, %v5046_v39  ;;  %v1200_v22 = vpop.permute.xlu0 %1199 }
 0x238   : > { %v1082_v25 = vsub.f32 1.5, %v1081_v21  ;;  %v1177_v21 = vld [vmem:[%s6224_s1 + $0x18] sm:$0xff] }
 0x239   : > { %v4525_v26 = vpop.eup %4524  ;;  %v1057_v27 = vadd.f32 1e-06, %v1053_v23 }
 0x23a   : > { %v1083_v28 = vmul.f32 %v4523_v16, %v1082_v25  ;;  %v1069_v29 = vmul.f32 %v4525_v26, %v1055_v17  ;;  %vm1075_vm11 = vweird.f32 %v4525_v26  ;;  %v1174_v17 = vld [vmem:[%s6224_s1] sm:$0xff] }
 0x23b   : > { %4526 = vrsqrt.f32 %v1057_v27  ;;  %vm1076_vm15 = vmor %vm1074_vm14, %vm1075_vm11  ;;  %vm1094_vm2 = vweird.f32 %v1057_v27 }
 0x23c   : > { %v1070_v31 = vmul.f32 %v4525_v26, %v1069_v29  ;;  %v1087_v33 = vsel %vm1086_vm9, %v4523_v16, %v1083_v28  ;;  %vm1202_vm9 = vcmask 261120  }
 0x23d   : > { %v1100_v37 = vmul.f32 %v1087_v33, %v5055_v47 }
 0x23e   : > { %v1071_v32 = vmul.f32 0.5, %v1070_v31  ;;  %v1134_v54 = vpop.permute.xlu2 %1133  ;;  %v1129_v57 = vpop.permute.xlu1 %1128 }
 0x23f   : > { %v1124_v46 = vmul.f32 %v1115_v1, %v1100_v37  ;;  %v1146_v61 = vadd.f32 %v1129_v57, %v1122_v59  ;;  %v1185_v23 = vpop.permute.xlu0 %1184 }
 0x240   : > { %v1072_v34 = vsub.f32 1.5, %v1071_v32 }
 0x241   : > { %v4527_v36 = vpop.eup %4526  ;;  %v1148_v47 = vadd.f32 %v1139_v8, %v1124_v46  ;;  %v1154_v0 = vmin.f32 %v1146_v61, 0.0  ;;  %vm1150_vm8 = vcmp.gt.f32.partialorder %v1146_v61, 0.0 }
 0x242   : > { %v1089_v38 = vmul.f32 %v4527_v36, %v1057_v27  ;;  %v1073_v40 = vmul.f32 %v4525_v26, %v1072_v34  ;;  %vm1095_vm1 = vweird.f32 %v4527_v36 }
 0x243   : > { %vm1096_vm3 = vmor %vm1094_vm2, %vm1095_vm1  ;;  %v1156_v62 = vmin.f32 %v1148_v47, 0.0  ;;  %v1158_v8 = vmul.f32 1.442695, %v1154_v0  ;;  %vm1152_vm6 = vcmp.gt.f32.partialorder %v1148_v47, 0.0 }
 0x244   : > { %v1090_v41 = vmul.f32 %v4527_v36, %v1089_v38  ;;  %v1077_v44 = vsel %vm1076_vm15, %v4525_v26, %v1073_v40  ;;  %v1245_v38 = vld [vmem:[%s6223_s10 + $0x8] sm:$0xff]  ;;  %v1251_v40 = vld [vmem:[%s6174_s11 + $0x18] sm:$0xff] }
 0x245   : > { %v1099_v45 = vmul.f32 %v1077_v44, %v5061_v53  ;;  %v1162_v5 = vmul.f32 1.442695, %v1156_v62 }
 0x246   : > { %v1091_v49 = vmul.f32 0.5, %v1090_v41  ;;  %v1190_v27 = vpop.permute.xlu1 %1189  ;;  %v1195_v31 = vpop.permute.xlu2 %1194  ;;  %v1250_v41 = vld [vmem:[%s6174_s11 + $0x10] sm:$0xff] }
 0x247   : > { %v1123_v51 = vmul.f32 %v1110_v48, %v1099_v45  ;;  %4528 = vpow2.f32 %v1162_v5  ;;  %v5147_v44 = vpop.permute.xlu0 %1357  ;;  %v1244_v5 = vld [vmem:[%s6223_s10] sm:$0xff] }
 0x248   : > { %v1092_v52 = vsub.f32 1.5, %v1091_v49 }
 0x249   : > { %v1147_v58 = vadd.f32 %v1134_v54, %v1123_v51 }
 0x24a   : > { %v1093_v55 = vmul.f32 %v4527_v36, %v1092_v52 }
 0x24b   : > { %v1155_v63 = vmin.f32 %v1147_v58, 0.0  ;;  %vm1151_vm7 = vcmp.gt.f32.partialorder %v1147_v58, 0.0 }
 0x24c   : > { %v1097_v60 = vsel %vm1096_vm3, %v4527_v36, %v1093_v55 }
 0x24d   : > { %v1101_v53 = vmul.f32 %v1097_v60, %v5066_v56  ;;  %v1160_v6 = vmul.f32 1.442695, %v1155_v63  ;;  %v4529_v3 = vpop.eup %4528 }
 0x24e   : > { %v4226_v12 = vadd.f32 -1.0, %v4529_v3  ;;  %v5145_v43 = vpop.permute.xlu2 %1352 }
 0x24f   : > { %v1125_v42 = vmul.f32 %v5087_v2, %v1101_v53  ;;  %4530 = vpow2.f32 %v1160_v6  ;;  %v1415_v6 = vld [vmem:[%s6176_s13 + $0x8] sm:$0xff] }
 0x251   : > { %v1149_v1 = vadd.f32 %v5091_v4, %v1125_v42  ;;  %v1172_v4 = vsel %vm1152_vm6, %v1148_v47, %v4226_v12 }
 0x253   : > { %v1157_v7 = vmin.f32 %v1149_v1, 0.0  ;;  %vm1153_vm4 = vcmp.gt.f32.partialorder %v1149_v1, 0.0 }
 0x255   : > { %v1164_v9 = vmul.f32 1.442695, %v1157_v7  ;;  %v4531_v10 = vpop.eup %4530  ;;  %v1249_v7 = vld [vmem:[%s6174_s11 + $0x8] sm:$0xff] }
 0x256   : > { %v4225_v14 = vadd.f32 -1.0, %v4531_v10 }
 0x257   : > { %4532 = vpow2.f32 %v1164_v9 }
 0x258   : > { %4534 = vpow2.f32 %v1158_v8  ;;  %v1171_v16 = vsel %vm1151_vm7, %v1147_v58, %v4225_v14  ;;  %v1414_v8 = vld [vmem:[%s6176_s13] sm:$0xff] }
 0x25d   : > { %v4533_v11 = vpop.eup %4532 }
 0x25e   : > { %v4227_v56 = vadd.f32 -1.0, %v4533_v11  ;;  %v4535_v13 = vpop.eup %4534 }
 0x25f   : > { %v4224_v15 = vadd.f32 -1.0, %v4535_v13 }
 0x260   : > { %v1173_v2 = vsel %vm1153_vm4, %v1149_v1, %v4227_v56  ;;  %v1248_v1 = vld [vmem:[%s6174_s11] sm:$0xff] }
 0x261   : > { %1227 = vmatpush.msrb.mxu0 %v1173_v2  ;;  %v1170_v18 = vsel %vm1150_vm8, %v1146_v61, %v4224_v15 }
 0x263   : > { %1228 = vmatpush.msrb.mxu0 %v1172_v4 }
 0x265   : > { %1229 = vmatpush.msrb.mxu0 %v1171_v16 }
 0x267   : > { %1230 = vmatpush.msrb.mxu0 %v1170_v18 }
 0x268   : > { %4228 = vmatmul.msk.f32.vlgmr.msrb.gmra.mxu0 %vm1202_vm9, %v1174_v17 }
 0x270   : > { %4229 = vmatmul.msk.f32.gmra.mxu0 %vm1202_vm9, %v1175_v19 }
 0x278   : > { %4230 = vmatmul.msk.f32.gmra.mxu0 %vm1202_vm9, %v1176_v20 }
 0x280   : > { %4231 = vmatmul.msk.f32.gmra.mxu0 %vm1202_vm9, %v1177_v21 }
 0x2e5   : > { %v1232_v24 = vpop.f32.mrf.mxu0 }
 0x2e6   : > { %v5120_v25 = vadd.f32 %v1232_v24, %v1185_v23 }
 0x2e8   : > { %v1252_v26 = vsel %vm1006_vm5, %v5120_v25, 0.0 }
 0x2e9   : > { %1253 = vadd.xlane.f32.xlu2 %v1252_v26 }
 0x2ed   : > { %v1235_v28 = vpop.f32.mrf.mxu0 }
 0x2ee   : > { %v5124_v29 = vadd.f32 %v1235_v28, %v1190_v27 }
 0x2f0   : > { %v1255_v30 = vsel %vm1006_vm5, %v5124_v29, 0.0 }
 0x2f1   : > { %1256 = vadd.xlane.f32.xlu0 %v1255_v30 }
 0x2f5   : > { %v1238_v32 = vpop.f32.mrf.mxu0 }
 0x2f6   : > { %v5128_v33 = vadd.f32 %v1238_v32, %v1195_v31 }
 0x2f8   : > { %v1258_v34 = vsel %vm1006_vm5, %v5128_v33, 0.0 }
 0x2f9   : > { %1259 = vadd.xlane.f32.xlu1 %v1258_v34 }
 0x2fd   : > { %v1241_v35 = vpop.f32.mrf.mxu0 }
 0x2fe   : > { %v5132_v36 = vadd.f32 %v1241_v35, %v1200_v22 }
 0x300   : > { %v1261_v37 = vsel %vm1006_vm5, %v5132_v36, 0.0 }
 0x301   : > { %1262 = vadd.xlane.f32.xlu2 %v1261_v37 }
 0x305   : > { %1347 = vperm.xlu0 %4475, %v1245_v38  }
 0x312   : > { %1381 = vperm.xlu1 %4477, %v1251_v40  }
 0x319   : > { %1376 = vperm.xlu2 %4476, %v1250_v41  }
 0x35c   : > { %v1254_v45 = vpop.xlane.xlu2 %1253 }
 0x35d   : > { %v1264_v46 = vmul.f32 %v1254_v45, %v5046_v39 }
 0x35f   : > { %v5151_v48 = vsub.f32 %v5120_v25, %v1264_v46 }
 0x361   : > { %v1272_v49 = vmul.f32 %v5151_v48, %v5151_v48 }
 0x363   : > { %v1276_v50 = vsel %vm1006_vm5, %v1272_v49, 0.0 }
 0x364   : > { %1277 = vadd.xlane.f32.xlu1 %v1276_v50  ;;  %v1257_v51 = vpop.xlane.xlu0 %1256 }
 0x365   : > { %v1265_v52 = vmul.f32 %v1257_v51, %v5046_v39 }
 0x367   : > { %v5158_v54 = vsub.f32 %v5124_v29, %v1265_v52 }
 0x369   : > { %v1273_v47 = vmul.f32 %v5158_v54, %v5158_v54 }
 0x36b   : > { %v1279_v55 = vsel %vm1006_vm5, %v1273_v47, 0.0 }
 0x36c   : > { %v1260_v57 = vpop.xlane.xlu1 %1259  ;;  %1280 = vadd.xlane.f32.xlu2 %v1279_v55 }
 0x36d   : > { %v1266_v58 = vmul.f32 %v1260_v57, %v5046_v39 }
 0x36f   : > { %v5165_v59 = vsub.f32 %v5128_v33, %v1266_v58 }
 0x371   : > { %v1274_v60 = vmul.f32 %v5165_v59, %v5165_v59 }
 0x373   : > { %v1282_v61 = vsel %vm1006_vm5, %v1274_v60, 0.0 }
 0x374   : > { %1283 = vadd.xlane.f32.xlu0 %v1282_v61  ;;  %v1263_v53 = vpop.xlane.xlu2 %1262 }
 0x375   : > { %v1267_v62 = vmul.f32 %v1263_v53, %v5046_v39 }
 0x377   : > { %v5172_v63 = vsub.f32 %v5132_v36, %v1267_v62  ;;  %v5195_v12 = vpop.permute.xlu0 %1347 }
 0x379   : > { %v1275_v42 = vmul.f32 %v5172_v63, %v5172_v63 }
 0x37b   : > { %v1285_v0 = vsel %vm1006_vm5, %v1275_v42, 0.0 }
 0x37c   : > { %1286 = vadd.xlane.f32.xlu1 %v1285_v0  ;;  %v1377_v3 = vpop.permute.xlu2 %1376 }
 0x384   : > { %1366 = vperm.xlu2 %4476, %v1248_v1   ;;  %v5192_v9 = vpop.permute.xlu1 %1381 }
 0x388   : > { %1342 = vperm.xlu0 %4475, %v1244_v5  }
 0x390   : > { %1423 = vperm.xlu0 %4475, %v1415_v6  }
 0x395   : > { %1371 = vperm.xlu1 %4477, %v1249_v7  }
 0x39d   : > { %1418 = vperm.xlu1 %4477, %v1414_v8  }
 0x3d7   : > { %v1278_v10 = vpop.xlane.xlu1 %1277 }
 0x3d8   : > { %v1288_v11 = vmul.f32 %v1278_v10, %v5046_v39 }
 0x3da   : > { %v1292_v56 = vadd.f32 1e-06, %v1288_v11 }
 0x3dc   : > { %4536 = vrsqrt.f32 %v1292_v56  ;;  %vm1302_vm12 = vweird.f32 %v1292_v56 }
 0x3df   : > { %v1281_v13 = vpop.xlane.xlu2 %1280 }
 0x3e0   : > { %v1289_v2 = vmul.f32 %v1281_v13, %v5046_v39 }
 0x3e2   : > { %v1293_v14 = vadd.f32 1e-06, %v1289_v2  ;;  %v4537_v4 = vpop.eup %4536 }
 0x3e3   : > { %v1297_v17 = vmul.f32 %v4537_v4, %v1292_v56  ;;  %vm1303_vm10 = vweird.f32 %v4537_v4 }
 0x3e4   : > { %4538 = vrsqrt.f32 %v1293_v14  ;;  %vm1304_vm15 = vmor %vm1302_vm12, %vm1303_vm10  ;;  %vm1312_vm2 = vweird.f32 %v1293_v14 }
 0x3e5   : > { %v1298_v21 = vmul.f32 %v4537_v4, %v1297_v17 }
 0x3e7   : > { %v1284_v15 = vpop.xlane.xlu0 %1283  ;;  %v1299_v26 = vmul.f32 0.5, %v1298_v21  ;;  %v1367_v5 = vpop.permute.xlu2 %1366 }
 0x3e8   : > { %v1290_v16 = vmul.f32 %v1284_v15, %v5046_v39 }
 0x3e9   : > { %v1300_v32 = vsub.f32 1.5, %v1299_v26  ;;  %v1413_v26 = vld [vmem:[%s6175_s12 + $0x8] sm:$0xff] }
 0x3ea   : > { %v4539_v18 = vpop.eup %4538  ;;  %v1294_v19 = vadd.f32 1e-06, %v1290_v16 }
 0x3eb   : > { %v1307_v20 = vmul.f32 %v4539_v18, %v1293_v14  ;;  %v1301_v40 = vmul.f32 %v4537_v4, %v1300_v32  ;;  %vm1313_vm13 = vweird.f32 %v4539_v18 }
 0x3ec   : > { %4540 = vrsqrt.f32 %v1294_v19  ;;  %vm1322_vm14 = vweird.f32 %v1294_v19  ;;  %vm1314_vm3 = vmor %vm1312_vm2, %vm1313_vm13 }
 0x3ed   : > { %v1308_v22 = vmul.f32 %v4539_v18, %v1307_v20  ;;  %v1305_v51 = vsel %vm1304_vm15, %v4537_v4, %v1301_v40  ;;  %v1457_v40 = vld [vmem:[%s6178_s15] sm:$0xff] }
 0x3ee   : > { %v1336_v60 = vmul.f32 %v1305_v51, %v5151_v48 }
 0x3ef   : > { %v1287_v23 = vpop.xlane.xlu1 %1286  ;;  %v1309_v30 = vmul.f32 0.5, %v1308_v22 }
 0x3f0   : > { %v1291_v24 = vmul.f32 %v1287_v23, %v5046_v39  ;;  %v1412_v23 = vld [vmem:[%s6175_s12] sm:$0xff] }
 0x3f1   : > { %v1310_v35 = vsub.f32 1.5, %v1309_v30 }
 0x3f2   : > { %v4541_v27 = vpop.eup %4540  ;;  %v1295_v28 = vadd.f32 1e-06, %v1291_v24 }
 0x3f3   : > { %v1317_v31 = vmul.f32 %v4541_v27, %v1294_v19  ;;  %vm1323_vm11 = vweird.f32 %v4541_v27  ;;  %v1311_v49 = vmul.f32 %v4539_v18, %v1310_v35 }
 0x3f4   : > { %4542 = vrsqrt.f32 %v1295_v28  ;;  %vm1324_vm1 = vmor %vm1322_vm14, %vm1323_vm11  ;;  %vm1332_vm6 = vweird.f32 %v1295_v28 }
 0x3f5   : > { %v1318_v34 = vmul.f32 %v4541_v27, %v1317_v31  ;;  %v1315_v58 = vsel %vm1314_vm3, %v4539_v18, %v1311_v49 }
 0x3f6   : > { %v1337_v42 = vmul.f32 %v1315_v58, %v5158_v54  ;;  %v1458_v58 = vld [vmem:[%s6178_s15 + $0x8] sm:$0xff] }
 0x3f7   : > { %v1319_v37 = vmul.f32 0.5, %v1318_v34 }
 0x3f9   : > { %v1320_v38 = vsub.f32 1.5, %v1319_v37 }
 0x3fa   : > { %v4543_v41 = vpop.eup %4542  ;;  %v1343_v57 = vpop.permute.xlu0 %1342 }
 0x3fb   : > { %v1321_v45 = vmul.f32 %v4541_v27, %v1320_v38  ;;  %v1327_v46 = vmul.f32 %v4543_v41, %v1295_v28  ;;  %vm1333_vm4 = vweird.f32 %v4543_v41  ;;  %v1360_v62 = vmul.f32 %v1343_v57, %v1336_v60  ;;  %v1456_v38 = vld [vmem:[%s6177_s14 + $0x8] sm:$0xff]  ;;  %v1455_v60 = vld [vmem:[%s6177_s14] sm:$0xff] }
 0x3fc   : > { %vm1334_vm7 = vmor %vm1332_vm6, %vm1333_vm4 }
 0x3fd   : > { %v1328_v50 = vmul.f32 %v4543_v41, %v1327_v46  ;;  %v1325_v52 = vsel %vm1324_vm1, %v4541_v27, %v1321_v45  ;;  %v1384_v7 = vadd.f32 %v1367_v5, %v1360_v62 }
 0x3fe   : > { %v1338_v47 = vmul.f32 %v1325_v52, %v5165_v59  ;;  %v1361_v59 = vmul.f32 %v5195_v12, %v1337_v42 }
 0x3ff   : > { %v1329_v55 = vmul.f32 0.5, %v1328_v50  ;;  %vm1388_vm12 = vcmp.gt.f32.partialorder %v1384_v7, 0.0 }
 0x400   : > { %v1362_v61 = vmul.f32 %v5145_v43, %v1338_v47 }
 0x401   : > { %v1330_v53 = vsub.f32 1.5, %v1329_v55 }
 0x402   : > { %v1386_v0 = vadd.f32 %v1377_v3, %v1362_v61  ;;  %v1392_v3 = vmin.f32 %v1384_v7, 0.0  ;;  %v1424_v32 = vpop.permute.xlu0 %1423 }
 0x403   : > { %v1331_v1 = vmul.f32 %v4543_v41, %v1330_v53 }
 0x404   : > { %v1394_v10 = vmin.f32 %v1386_v0, 0.0  ;;  %v1396_v15 = vmul.f32 1.442695, %v1392_v3  ;;  %vm1390_vm10 = vcmp.gt.f32.partialorder %v1386_v0, 0.0 }
 0x405   : > { %v1335_v6 = vsel %vm1334_vm7, %v4543_v41, %v1331_v1  ;;  %vm1547_vm7 = vcmask 7168  }
 0x406   : > { %v1339_v8 = vmul.f32 %v1335_v6, %v5172_v63  ;;  %v1400_v54 = vmul.f32 1.442695, %v1394_v10 }
 0x407   : > { %v1372_v48 = vpop.permute.xlu1 %1371 }
 0x408   : > { %v1385_v11 = vadd.f32 %v1372_v48, %v1361_v59  ;;  %v1363_v43 = vmul.f32 %v5147_v44, %v1339_v8  ;;  %4544 = vpow2.f32 %v1400_v54 }
 0x40a   : > { %v1393_v56 = vmin.f32 %v1385_v11, 0.0  ;;  %v1387_v13 = vadd.f32 %v5192_v9, %v1363_v43  ;;  %vm1389_vm11 = vcmp.gt.f32.partialorder %v1385_v11, 0.0 }
 0x40c   : > { %v1398_v2 = vmul.f32 1.442695, %v1393_v56  ;;  %v1395_v14 = vmin.f32 %v1387_v13, 0.0  ;;  %vm1391_vm8 = vcmp.gt.f32.partialorder %v1387_v13, 0.0 }
 0x40e   : > { %v1402_v4 = vmul.f32 1.442695, %v1395_v14  ;;  %4546 = vpow2.f32 %v1398_v2  ;;  %v4545_v12 = vpop.eup %4544 }
 0x40f   : > { %v4234_v18 = vadd.f32 -1.0, %v4545_v12  ;;  %v1419_v27 = vpop.permute.xlu1 %1418 }
 0x410   : > { %4548 = vpow2.f32 %v1402_v4 }
 0x411   : > { %4550 = vpow2.f32 %v1396_v15  ;;  %v1410_v9 = vsel %vm1390_vm10, %v1386_v0, %v4234_v18  ;;  %vm1581_vm10 = vcmask 392192  }
 0x414   : > { %v4547_v63 = vpop.eup %4546 }
 0x415   : > { %v4233_v20 = vadd.f32 -1.0, %v4547_v63 }
 0x416   : > { %v4549_v16 = vpop.eup %4548 }
 0x417   : > { %v4235_v17 = vadd.f32 -1.0, %v4549_v16  ;;  %v4551_v19 = vpop.eup %4550  ;;  %v1409_v22 = vsel %vm1389_vm11, %v1385_v11, %v4233_v20 }
 0x418   : > { %v4232_v21 = vadd.f32 -1.0, %v4551_v19 }
 0x419   : > { %v1411_v44 = vsel %vm1391_vm8, %v1387_v13, %v4235_v17  ;;  %vm1550_vm8 = vcmask 138240  }
 0x41a   : > { %1444 = vmatpush.msrb.mxu1 %v1411_v44  ;;  %v1408_v24 = vsel %vm1388_vm12, %v1384_v7, %v4232_v21 }
 0x41c   : > { %1445 = vmatpush.msrb.mxu1 %v1410_v9 }
 0x41e   : > { %1446 = vmatpush.msrb.mxu1 %v1409_v22 }
 0x420   : > { %1447 = vmatpush.msrb.mxu1 %v1408_v24 }
 0x421   : > { %4236 = vmatmul.msk.f32.vlgmr.msrb.gmra.mxu1 %vm1202_vm9, %v1412_v23 }
 0x429   : > { %4237 = vmatmul.msk.f32.gmra.mxu1 %vm1202_vm9, %v1413_v26 }
 0x49e   : > { %v1449_v28 = vpop.f32.mrf.mxu1 }
 0x49f   : > { %v1450_v30 = vadd.f32 %v1449_v28, %v1419_v27 }
 0x4a1   : > { %v1459_v31 = vsel %vm1006_vm5, %v1450_v30, 0.0 }
 0x4a2   : > { %1460 = vadd.xlane.f32.xlu0 %v1459_v31  ;;  %v1570_v31 = vld [vmem:[%s6180_s17 + $0x8] sm:$0xff] }
 0x4a6   : > { %v1452_v34 = vpop.f32.mrf.mxu1 }
 0x4a7   : > { %v1453_v35 = vadd.f32 %v1452_v34, %v1424_v32 }
 0x4a9   : > { %v1462_v37 = vsel %vm1006_vm5, %v1453_v35, 0.0 }
 0x4aa   : > { %1463 = vadd.xlane.f32.xlu2 %v1462_v37 }
 0x4b6   : > { %1510 = vperm.xlu0 %4475, %v1456_v38  }
 0x4be   : > { %1517 = vperm.xlu0 %4475, %v1457_v40  }
 0x515   : > { %v1461_v41 = vpop.xlane.xlu0 %1460 }
 0x516   : > { %v1465_v45 = vmul.f32 %v1461_v41, %v5046_v39 }
 0x518   : > { %v1467_v46 = vsub.f32 %v1450_v30, %v1465_v45  ;;  %v1569_v45 = vld [vmem:[%s6180_s17] sm:$0xff] }
 0x51a   : > { %v1469_v49 = vmul.f32 %v1467_v46, %v1467_v46 }
 0x51c   : > { %v1471_v50 = vsel %vm1006_vm5, %v1469_v49, 0.0 }
 0x51d   : > { %v1464_v51 = vpop.xlane.xlu2 %1463  ;;  %1472 = vadd.xlane.f32.xlu2 %v1471_v50 }
 0x51e   : > { %v1466_v52 = vmul.f32 %v1464_v51, %v5046_v39 }
 0x520   : > { %v1468_v47 = vsub.f32 %v1453_v35, %v1466_v52 }
 0x522   : > { %v1470_v55 = vmul.f32 %v1468_v47, %v1468_v47 }
 0x524   : > { %v1474_v57 = vsel %vm1006_vm5, %v1470_v55, 0.0  ;;  %v1567_v55 = vld [vmem:[%s6179_s16] sm:$0xff] }
 0x525   : > { %1475 = vadd.xlane.f32.xlu1 %v1474_v57  ;;  %v1568_v57 = vld [vmem:[%s6179_s16 + $0x8] sm:$0xff] }
 0x528   : > { %v1511_v43 = vpop.permute.xlu0 %1510 }
 0x530   : > { %v1518_v17 = vpop.permute.xlu0 %1517 }
 0x535   : > { %1522 = vperm.xlu2 %4476, %v1458_v58  }
 0x53e   : > { %1505 = vperm.xlu1 %4477, %v1455_v60  }
 0x590   : > { %v1473_v61 = vpop.xlane.xlu2 %1472 }
 0x591   : > { %v1477_v53 = vmul.f32 %v1473_v61, %v5046_v39 }
 0x593   : > { %v1479_v62 = vadd.f32 1e-06, %v1477_v53 }
 0x595   : > { %4552 = vrsqrt.f32 %v1479_v62  ;;  %vm1487_vm14 = vweird.f32 %v1479_v62 }
 0x598   : > { %v1476_v42 = vpop.xlane.xlu1 %1475  ;;  %v1523_v18 = vpop.permute.xlu2 %1522 }
 0x599   : > { %v1478_v0 = vmul.f32 %v1476_v42, %v5046_v39 }
 0x59b   : > { %v4553_v1 = vpop.eup %4552  ;;  %v1480_v5 = vadd.f32 1e-06, %v1478_v0 }
 0x59c   : > { %v1482_v6 = vmul.f32 %v4553_v1, %v1479_v62  ;;  %vm1488_vm13 = vweird.f32 %v4553_v1 }
 0x59d   : > { %4554 = vrsqrt.f32 %v1480_v5  ;;  %vm1489_vm1 = vmor %vm1487_vm14, %vm1488_vm13  ;;  %vm1497_vm2 = vweird.f32 %v1480_v5 }
 0x59e   : > { %v1483_v7 = vmul.f32 %v4553_v1, %v1482_v6  ;;  %v1613_v6 = vld [vmem:[%s6182_s19] sm:$0xff] }
 0x5a0   : > { %v1484_v59 = vmul.f32 0.5, %v1483_v7  ;;  %v1700_v7 = vld [vmem:[%s6184_s21 + $0x8] sm:$0xff] }
 0x5a2   : > { %v1485_v10 = vsub.f32 1.5, %v1484_v59 }
 0x5a3   : > { %v4555_v8 = vpop.eup %4554 }
 0x5a4   : > { %v1492_v48 = vmul.f32 %v4555_v8, %v1480_v5  ;;  %v1486_v13 = vmul.f32 %v4553_v1, %v1485_v10  ;;  %vm1498_vm15 = vweird.f32 %v4555_v8  ;;  %v1611_v5 = vld [vmem:[%s6181_s18] sm:$0xff] }
 0x5a5   : > { %vm1499_vm3 = vmor %vm1497_vm2, %vm1498_vm15 }
 0x5a6   : > { %v1493_v11 = vmul.f32 %v4555_v8, %v1492_v48  ;;  %v1490_v2 = vsel %vm1489_vm1, %v4553_v1, %v1486_v13 }
 0x5a7   : > { %v1501_v15 = vmul.f32 %v1490_v2, %v1467_v46  ;;  %v1614_v2 = vld [vmem:[%s6182_s19 + $0x8] sm:$0xff] }
 0x5a8   : > { %v1494_v56 = vmul.f32 0.5, %v1493_v11 }
 0x5aa   : > { %v1495_v54 = vsub.f32 1.5, %v1494_v56 }
 0x5ac   : > { %v1496_v3 = vmul.f32 %v4555_v8, %v1495_v54 }
 0x5ae   : > { %v1500_v14 = vsel %vm1499_vm3, %v4555_v8, %v1496_v3 }
 0x5af   : > { %v1502_v4 = vmul.f32 %v1500_v14, %v1468_v47  ;;  %v1612_v14 = vld [vmem:[%s6181_s18 + $0x8] sm:$0xff] }
 0x5b0   : > { %v1506_v12 = vpop.permute.xlu1 %1505 }
 0x5b1   : > { %v1514_v63 = vmul.f32 %v1511_v43, %v1502_v4  ;;  %v1513_v16 = vmul.f32 %v1506_v12, %v1501_v15  ;;  %v1701_v4 = vld [vmem:[%s6184_s21 + $0x10] sm:$0xff]  ;;  %v1699_v15 = vld [vmem:[%s6184_s21] sm:$0xff]  ;;  %v1702_v12 = vld [vmem:[%s6184_s21 + $0x18] sm:$0xff] }
 0x5b3   : > { %v1526_v19 = vadd.f32 %v1523_v18, %v1514_v63  ;;  %v1525_v44 = vadd.f32 %v1518_v17, %v1513_v16 }
 0x5b5   : > { %v1530_v20 = vmin.f32 %v1526_v19, 0.0  ;;  %v1529_v9 = vmin.f32 %v1525_v44, 0.0  ;;  %vm1528_vm4 = vcmp.gt.f32.partialorder %v1526_v19, 0.0  ;;  %vm1527_vm6 = vcmp.gt.f32.partialorder %v1525_v44, 0.0 }
 0x5b7   : > { %v1533_v21 = vmul.f32 1.442695, %v1530_v20  ;;  %v1531_v22 = vmul.f32 1.442695, %v1529_v9 }
 0x5b9   : > { %4556 = vpow2.f32 %v1533_v21 }
 0x5ba   : > { %4558 = vpow2.f32 %v1531_v22 }
 0x5bf   : > { %v4557_v23 = vpop.eup %4556 }
 0x5c0   : > { %v4559_v24 = vpop.eup %4558  ;;  %v4239_v26 = vadd.f32 -1.0, %v4557_v23 }
 0x5c1   : > { %v4238_v27 = vadd.f32 -1.0, %v4559_v24 }
 0x5c2   : > { %v1538_v28 = vsel %vm1528_vm4, %v1526_v19, %v4239_v26  ;;  %vm1790_vm4 = vcmask 130112  }
 0x5c3   : > { %1543 = vrot.lane.b32.xlu1 %v1538_v28, %s4746_s9  ;;  %v1537_v30 = vsel %vm1527_vm6, %v1525_v44, %v4238_v27  ;;  %vm1794_vm6 = vcmask 195712  }
 0x5c4   : > { %1541 = vrot.lane.b32.xlu0 %v1537_v30, %s4746_s9  ;;  %s6227_s9 = smov 126  }
 0x5cc   : > { %1578 = vperm.xlu0 %4475, %v1570_v31  }
 0x635   : > { %v1544_v32 = vpop.permute.xlu1 %1543 }
 0x636   : > { %v1549_v34 = vsel %vm1547_vm7, 0.0, %v1544_v32  ;;  %v1542_v35 = vpop.permute.xlu0 %1541 }
 0x637   : > { %v1552_v37 = vsel %vm1550_vm8, %v1549_v34, 0.0  ;;  %v1548_v38 = vsel %vm1547_vm7, 0.0, %v1542_v35  ;;  %vm1798_vm7 = vcmask 261312  }
 0x638   : > { %v1551_v40 = vsel %vm1550_vm8, %v1548_v38, 0.0 }
 0x639   : > { %v4483_v41 = vpack.i.bf16 %v1551_v40, %v1552_v37 }
 0x63b   : > { %4484 = vrot.lane.b32.xlu1 %v4483_v41, %s4747_s28  ;;  %4479 = vrot.lane.b32.xlu2 %v4483_v41, %s6199_s6  ;;  %s4749_s6 = smov 2  }
 0x63e   : > { %v1579_v62 = vpop.permute.xlu0 %1578 }
 0x643   : > { %1573 = vperm.xlu2 %4476, %v1569_v45  }
 0x695   : > { %v4480_v46 = vpop.permute.xlu2 %4479 }
 0x696   : > { %v4481_v49 = vunpack.i.l.bf16 %v4480_v46  ;;  %v4482_v50 = vunpack.i.h.bf16 %v4480_v46 }
 0x698   : > { %1598 = vmatpush.msra.mxu1 %v4481_v49 }
 0x69a   : > { %1599 = vmatpush.msra.mxu1 %v4482_v50 }
 0x69d   : > { %v1574_v58 = vpop.permute.xlu2 %1573 }
 0x6ad   : > { %v4485_v51 = vpop.permute.xlu1 %4484 }
 0x6ae   : > { %v4486_v52 = vunpack.i.l.bf16 %v4485_v51  ;;  %v4487_v47 = vunpack.i.h.bf16 %v4485_v51 }
 0x6b0   : > { %1600 = vmatpush.msra.mxu1 %v4486_v52 }
 0x6b2   : > { %1601 = vmatpush.msra.mxu1 %v4487_v47 }
 0x6b4   : > { %4240 = vmatpush.msk.msra.mxu1 %vm1550_vm8, %v1549_v34 }
 0x6b6   : > { %4241 = vmatpush.msk.msra.mxu1 %vm1550_vm8, %v1548_v38  ;;  %vm6201_vm8 = vcmask 254976  }
 0x6b7   : > { %4242 = vmatmul.msk.f32.vlgmr.msra.gmra.mxu1 %vm1581_vm10, %v1567_v55 }
 0x6bf   : > { %4243 = vmatmul.msk.f32.gmra.mxu1 %vm1581_vm10, %v1568_v57 }
 0x734   : > { %v1605_v60 = vpop.f32.mrf.mxu1 }
 0x735   : > { %v1606_v61 = vadd.f32 %v1605_v60, %v1574_v58 }
 0x737   : > { %v1615_v53 = vsel %vm1006_vm5, %v1606_v61, 0.0 }
 0x738   : > { %1616 = vadd.xlane.f32.xlu0 %v1615_v53 }
 0x73c   : > { %v1608_v42 = vpop.f32.mrf.mxu1 }
 0x73d   : > { %v1609_v0 = vadd.f32 %v1608_v42, %v1579_v62 }
 0x73f   : > { %v1618_v1 = vsel %vm1006_vm5, %v1609_v0, 0.0 }
 0x740   : > { %1619 = vadd.xlane.f32.xlu1 %v1618_v1 }
 0x74c   : > { %1661 = vperm.xlu0 %4475, %v1611_v5   ;;  %v1696_v5 = vld [vmem:[%s6183_s20 + $0x8] sm:$0xff] }
 0x754   : > { %1673 = vperm.xlu0 %4475, %v1613_v6   ;;  %v1697_v6 = vld [vmem:[%s6183_s20 + $0x10] sm:$0xff] }
 0x75c   : > { %1710 = vperm.xlu0 %4475, %v1700_v7   ;;  %v1698_v7 = vld [vmem:[%s6183_s20 + $0x18] sm:$0xff] }
 0x7ab   : > { %v1617_v59 = vpop.xlane.xlu0 %1616 }
 0x7ac   : > { %v1621_v8 = vmul.f32 %v1617_v59, %v5046_v39 }
 0x7ae   : > { %v1623_v10 = vsub.f32 %v1606_v61, %v1621_v8 }
 0x7b0   : > { %v1625_v48 = vmul.f32 %v1623_v10, %v1623_v10 }
 0x7b2   : > { %v1627_v11 = vsel %vm1006_vm5, %v1625_v48, 0.0 }
 0x7b3   : > { %v1620_v43 = vpop.xlane.xlu1 %1619  ;;  %1628 = vadd.xlane.f32.xlu1 %v1627_v11 }
 0x7b4   : > { %v1622_v56 = vmul.f32 %v1620_v43, %v5046_v39 }
 0x7b6   : > { %v1624_v13 = vsub.f32 %v1609_v0, %v1622_v56  ;;  %v1695_v0 = vld [vmem:[%s6183_s20] sm:$0xff] }
 0x7b8   : > { %v1626_v54 = vmul.f32 %v1624_v13, %v1624_v13 }
 0x7ba   : > { %v1630_v3 = vsel %vm1006_vm5, %v1626_v54, 0.0 }
 0x7bb   : > { %1631 = vadd.xlane.f32.xlu2 %v1630_v3 }
 0x7be   : > { %v1662_v22 = vpop.permute.xlu0 %1661 }
 0x7c6   : > { %v1674_v37 = vpop.permute.xlu0 %1673 }
 0x7cc   : > { %1678 = vperm.xlu1 %4477, %v1614_v2  }
 0x7ce   : > { %v1711_v11 = vpop.permute.xlu0 %1710 }
 0x7d3   : > { %1666 = vperm.xlu2 %4476, %v1612_v14  }
 0x7d4   : > { %1715 = vperm.xlu1 %4477, %v1701_v4  }
 0x7db   : > { %1705 = vperm.xlu2 %4476, %v1699_v15  }
 0x7e3   : > { %1720 = vperm.xlu2 %4476, %v1702_v12  }
 0x826   : > { %v1629_v63 = vpop.xlane.xlu1 %1628 }
 0x827   : > { %v1633_v16 = vmul.f32 %v1629_v63, %v5046_v39 }
 0x829   : > { %v1635_v17 = vadd.f32 1e-06, %v1633_v16  ;;  %v1785_v16 = vlaneseq }
 0x82b   : > { %4560 = vrsqrt.f32 %v1635_v17  ;;  %vm1643_vm12 = vweird.f32 %v1635_v17 }
 0x82e   : > { %v1632_v18 = vpop.xlane.xlu2 %1631 }
 0x82f   : > { %v1634_v19 = vmul.f32 %v1632_v18, %v5046_v39 }
 0x831   : > { %v4561_v44 = vpop.eup %4560  ;;  %v1636_v20 = vadd.f32 1e-06, %v1634_v19  ;;  %v5319_v19 = vand.u32 127, %v1785_v16 }
 0x832   : > { %v1638_v9 = vmul.f32 %v4561_v44, %v1635_v17  ;;  %vm1644_vm11 = vweird.f32 %v4561_v44 }
 0x833   : > { %4562 = vrsqrt.f32 %v1636_v20  ;;  %vm1645_vm13 = vmor %vm1643_vm12, %vm1644_vm11  ;;  %vm1653_vm15 = vweird.f32 %v1636_v20  ;;  %vm1833_vm11 = vcmask 15360  }
 0x834   : > { %v1639_v21 = vmul.f32 %v4561_v44, %v1638_v9 }
 0x836   : > { %v1640_v23 = vmul.f32 0.5, %v1639_v21  ;;  %v1667_v50 = vpop.permute.xlu2 %1666  ;;  %v5326_v21 = vadd.s32 4294967280, %v5319_v19 }
 0x838   : > { %v1641_v24 = vsub.f32 1.5, %v1640_v23 }
 0x839   : > { %v4563_v26 = vpop.eup %4562 }
 0x83a   : > { %v1642_v27 = vmul.f32 %v4561_v44, %v1641_v24  ;;  %v1648_v28 = vmul.f32 %v4563_v26, %v1636_v20  ;;  %vm1654_vm14 = vweird.f32 %v4563_v26  ;;  %v5322_v20 = vadd.s32 4294967288, %v5319_v19 }
 0x83b   : > { %vm1655_vm1 = vmor %vm1653_vm15, %vm1654_vm14 }
 0x83c   : > { %v1646_v30 = vsel %vm1645_vm13, %v4561_v44, %v1642_v27  ;;  %v1649_v31 = vmul.f32 %v4563_v26, %v1648_v28 }
 0x83d   : > { %v1657_v32 = vmul.f32 %v1646_v30, %v1623_v10 }
 0x83e   : > { %v1650_v34 = vmul.f32 0.5, %v1649_v31  ;;  %v1679_v52 = vpop.permute.xlu1 %1678  ;;  %v1706_v59 = vpop.permute.xlu2 %1705 }
 0x83f   : > { %v1669_v35 = vmul.f32 %v1662_v22, %v1657_v32 }
 0x840   : > { %v1651_v38 = vsub.f32 1.5, %v1650_v34  ;;  %v1780_v34 = vld [vmem:[%s6185_s22] sm:$0x3] }
 0x841   : > { %v1681_v40 = vadd.f32 %v1674_v37, %v1669_v35 }
 0x842   : > { %v1652_v41 = vmul.f32 %v4563_v26, %v1651_v38 }
 0x843   : > { %v1685_v49 = vmin.f32 %v1681_v40, 0.0  ;;  %vm1683_vm3 = vcmp.gt.f32.partialorder %v1681_v40, 0.0 }
 0x844   : > { %v1656_v45 = vsel %vm1655_vm1, %v4563_v26, %v1652_v41  ;;  %v5332_v26 = vadd.s32 4294967272, %v5319_v19 }
 0x845   : > { %v1658_v46 = vmul.f32 %v1656_v45, %v1624_v13  ;;  %v1687_v55 = vmul.f32 1.442695, %v1685_v49  ;;  %v1806_v45 = vld [vmem:[%s6186_s23] sm:$0x3] }
 0x846   : > { %v1716_v54 = vpop.permute.xlu1 %1715  ;;  %v1721_v4 = vpop.permute.xlu2 %1720 }
 0x847   : > { %v1670_v51 = vmul.f32 %v1667_v50, %v1658_v46  ;;  %4564 = vpow2.f32 %v1687_v55  ;;  %v1811_v55 = vld [vmem:[%s6187_s24 + $0x10] sm:$0xff] }
 0x849   : > { %v1682_v47 = vadd.f32 %v1679_v52, %v1670_v51  ;;  %v4257_v51 = vld [vmem:[%s6223_s10 + $0x38] sm:$0xff] }
 0x84b   : > { %v1686_v57 = vmin.f32 %v1682_v47, 0.0  ;;  %vm1684_vm2 = vcmp.gt.f32.partialorder %v1682_v47, 0.0 }
 0x84d   : > { %v1689_v58 = vmul.f32 1.442695, %v1686_v57  ;;  %v4565_v60 = vpop.eup %4564 }
 0x84e   : > { %v4244_v62 = vadd.f32 -1.0, %v4565_v60 }
 0x84f   : > { %4566 = vpow2.f32 %v1689_v58 }
 0x850   : > { %v1693_v1 = vsel %vm1683_vm3, %v1681_v40, %v4244_v62  ;;  %v1810_v62 = vld [vmem:[%s6187_s24 + $0x8] sm:$0xff] }
 0x855   : > { %v4567_v61 = vpop.eup %4566 }
 0x856   : > { %v4245_v53 = vadd.f32 -1.0, %v4567_v61 }
 0x858   : > { %v1694_v42 = vsel %vm1684_vm2, %v1682_v47, %v4245_v53  ;;  %v1812_v47 = vld [vmem:[%s6187_s24 + $0x18] sm:$0xff] }
 0x859   : > { %1749 = vmatpush.msra.mxu0 %v1694_v42  ;;  %v1809_v42 = vld [vmem:[%s6187_s24] sm:$0xff] }
 0x85b   : > { %1750 = vmatpush.msra.mxu0 %v1693_v1 }
 0x85c   : > { %4246 = vmatmul.msk.f32.vlgmr.msra.gmra.mxu0 %vm1006_vm5, %v1695_v0 }
 0x864   : > { %4247 = vmatmul.msk.f32.gmra.mxu0 %vm1006_vm5, %v1696_v5 }
 0x86c   : > { %4248 = vmatmul.msk.f32.gmra.mxu0 %vm1006_vm5, %v1697_v6 }
 0x874   : > { %4249 = vmatmul.msk.f32.gmra.mxu0 %vm1006_vm5, %v1698_v7  ;;  %v1849_v7 = vld [vmem:[%s6188_s25 + $0x18] sm:$0xff] }
 0x8d9   : > { %v1752_v8 = vpop.f32.mrf.mxu0 }
 0x8da   : > { %v5303_v10 = vadd.f32 %v1752_v8, %v1706_v59  ;;  %v1848_v59 = vld [vmem:[%s6188_s25 + $0x10] sm:$0xff] }
 0x8dc   : > { %v1764_v48 = vsel %vm1006_vm5, %v5303_v10, 0.0 }
 0x8dd   : > { %1765 = vadd.xlane.f32.xlu0 %v1764_v48 }
 0x8e1   : > { %v1755_v43 = vpop.f32.mrf.mxu0 }
 0x8e2   : > { %v5307_v56 = vadd.f32 %v1755_v43, %v1711_v11 }
 0x8e4   : > { %v1767_v13 = vsel %vm1006_vm5, %v5307_v56, 0.0 }
 0x8e5   : > { %1768 = vadd.xlane.f32.xlu1 %v1767_v13 }
 0x8e9   : > { %v1758_v3 = vpop.f32.mrf.mxu0 }
 0x8ea   : > { %v5311_v2 = vadd.f32 %v1758_v3, %v1716_v54 }
 0x8ec   : > { %v1770_v14 = vsel %vm1006_vm5, %v5311_v2, 0.0 }
 0x8ed   : > { %1771 = vadd.xlane.f32.xlu2 %v1770_v14 }
 0x8f1   : > { %v1761_v15 = vpop.f32.mrf.mxu0 }
 0x8f2   : > { %v5315_v12 = vadd.f32 %v1761_v15, %v1721_v4  ;;  %v1847_v4 = vld [vmem:[%s6188_s25 + $0x8] sm:$0xff]  ;;  %v1846_v15 = vld [vmem:[%s6188_s25] sm:$0xff] }
 0x8f4   : > { %v1773_v63 = vsel %vm1006_vm5, %v5315_v12, 0.0 }
 0x8f5   : > { %1774 = vadd.xlane.f32.xlu0 %v1773_v63 }
 0x950   : > { %v1766_v17 = vpop.xlane.xlu0 %1765 }
 0x951   : > { %v1776_v23 = vmul.f32 %v1766_v17, %v5046_v39 }
 0x953   : > { %v1787_v30 = vperm.slane %v1776_v23, %v5319_v19 }
 0x958   : > { %v1769_v18 = vpop.xlane.xlu1 %1768 }
 0x959   : > { %v1777_v9 = vmul.f32 %v1769_v18, %v5046_v39 }
 0x95b   : > { %v1789_v24 = vperm.slane %v1777_v9, %v5322_v20 }
 0x95d   : > { %v1791_v35 = vsel %vm1790_vm4, %v1789_v24, %v1787_v30 }
 0x960   : > { %v1772_v44 = vpop.xlane.xlu2 %1771 }
 0x961   : > { %v1778_v22 = vmul.f32 %v1772_v44, %v5046_v39 }
 0x963   : > { %v1793_v27 = vperm.slane %v1778_v22, %v5326_v21 }
 0x965   : > { %v1795_v37 = vsel %vm1794_vm6, %v1793_v27, %v1791_v35 }
 0x968   : > { %v1775_v28 = vpop.xlane.xlu0 %1774 }
 0x969   : > { %v1779_v31 = vmul.f32 %v1775_v28, %v5046_v39 }
 0x96b   : > { %v1797_v32 = vperm.slane %v1779_v31, %v5332_v26 }
 0x96d   : > { %v1799_v38 = vsel %vm1798_vm7, %v1797_v32, %v1795_v37 }
 0x96e   : > { %v1801_v40 = vmul.f32 %v1799_v38, %v1780_v34 }
 0x970   : > { %v1803_v41 = vsel %vm6201_vm8, %v1801_v40, 0.0 }
 0x971   : > { %1804 = vadd.xlane.f32.xlu1 %v1803_v41 }
 0x9e4   : > { %v1805_v46 = vpop.xlane.xlu1 %1804 }
 0x9e5   : > { %v1807_v49 = vadd.f32 %v1806_v45, %v1805_v46 }
 0x9e7   : > { %v1808_v50 = vmax.f32 %v1807_v49, 0.0 }
 0x9e9   : > { %1815 = vperm.xlu2 %4476, %v1808_v50  }
 0x9f1   : > { %2077 = vperm.xlu2 %4476, %v4257_v51  }
 0xa43   : > { %v1816_v52 = vpop.permute.xlu2 %1815 }
 0xa44   : > { %v1817_v57 = vperm.slane %v1816_v52, %v5319_v19 }
 0xa46   : > { %v1832_v58 = vmul.f32 %v1817_v57, %v1812_v47  ;;  %v1831_v60 = vmul.f32 %v1817_v57, %v1811_v55  ;;  %v1830_v0 = vmul.f32 %v1817_v57, %v1810_v62  ;;  %v1829_v1 = vmul.f32 %v1817_v57, %v1809_v42 }
 0xa48   : > { %v1843_v61 = vsel %vm1833_vm11, %v1832_v58, 0.0  ;;  %v1840_v53 = vsel %vm1833_vm11, %v1831_v60, 0.0  ;;  %v1837_v5 = vsel %vm1833_vm11, %v1830_v0, 0.0  ;;  %v1834_v6 = vsel %vm1833_vm11, %v1829_v1, 0.0 }
 0xa49   : > { %1844 = vadd.xlane.f32.xlu0 %v1843_v61  ;;  %1841 = vadd.xlane.f32.xlu1 %v1840_v53 }
 0xa51   : > { %1838 = vadd.xlane.f32.xlu0 %v1837_v5  ;;  %1835 = vadd.xlane.f32.xlu1 %v1834_v6 }
 0xabc   : > { %v1845_v8 = vpop.xlane.xlu0 %1844  ;;  %v1842_v48 = vpop.xlane.xlu1 %1841 }
 0xabd   : > { %v1853_v11 = vadd.f32 %v1849_v7, %v1845_v8  ;;  %v1852_v43 = vadd.f32 %v1848_v59, %v1842_v48 }
 0xabf   : > { %v1857_v13 = vmax.f32 %v1853_v11, 0.0  ;;  %v1856_v54 = vmax.f32 %v1852_v43, 0.0 }
 0xac1   : > { %v4253_v3 = vmul.f32 -1.442695, %v1857_v13  ;;  %v4252_v14 = vmul.f32 -1.442695, %v1856_v54 }
 0xac3   : > { %4568 = vpow2.f32 %v4253_v3 }
 0xac4   : > { %4570 = vpow2.f32 %v4252_v14  ;;  %v1839_v63 = vpop.xlane.xlu0 %1838  ;;  %v1836_v16 = vpop.xlane.xlu1 %1835 }
 0xac5   : > { %v1851_v17 = vadd.f32 %v1847_v4, %v1839_v63  ;;  %v1850_v18 = vadd.f32 %v1846_v15, %v1836_v16 }
 0xac7   : > { %v1855_v44 = vmax.f32 %v1851_v17, 0.0  ;;  %v1854_v9 = vmax.f32 %v1850_v18, 0.0 }
 0xac9   : > { %v4569_v22 = vpop.eup %4568  ;;  %v4251_v23 = vmul.f32 -1.442695, %v1855_v44  ;;  %v4250_v28 = vmul.f32 -1.442695, %v1854_v9  ;;  %v5380_v9 = vpop.permute.xlu2 %2077 }
 0xaca   : > { %v4571_v24 = vpop.eup %4570  ;;  %v1873_v27 = vadd.f32 1.0, %v4569_v22 }
 0xacb   : > { %v1872_v30 = vadd.f32 1.0, %v4571_v24  ;;  %4572 = vpow2.f32 %v4251_v23 }
 0xacc   : > { %4574 = vrcp.f32 %v1873_v27  ;;  %v1928_v46 = vand.u32 2147483647, %v1873_v27  ;;  %v1930_v49 = vand.u32 2147483648, %v1873_v27  ;;  %vm1924_vm14 = vweird.f32 %v1873_v27 }
 0xacd   : > { %4576 = vrcp.f32 %v1872_v30  ;;  %v1915_v52 = vand.u32 2147483648, %v1872_v30  ;;  %v1913_v55 = vand.u32 2147483647, %v1872_v30  ;;  %vm1909_vm1 = vweird.f32 %v1872_v30 }
 0xace   : > { %4578 = vpow2.f32 %v4250_v28  ;;  %v1931_v60 = vor.u32 1.1754944e-38, %v1930_v49  ;;  %vm1929_vm2 = vcmp.eq.f32.partialorder %v1928_v46, 8.507059e+37 }
 0xacf   : > { %v1916_v62 = vor.u32 1.1754944e-38, %v1915_v52  ;;  %vm1914_vm0 = vcmp.eq.f32.partialorder %v1913_v55, 8.507059e+37 }
 0xad1   : > { %v4573_v31 = vpop.eup %4572 }
 0xad2   : > { %v4575_v32 = vpop.eup %4574  ;;  %v1871_v34 = vadd.f32 1.0, %v4573_v31 }
 0xad3   : > { %v4577_v35 = vpop.eup %4576  ;;  %v1920_v37 = vmul.f32 %v4575_v32, %v1873_v27  ;;  %vm1925_vm12 = vweird.f32 %v4575_v32 }
 0xad4   : > { %v4579_v38 = vpop.eup %4578  ;;  %4580 = vrcp.f32 %v1871_v34  ;;  %v1905_v40 = vmul.f32 %v4577_v35, %v1872_v30  ;;  %vm1910_vm13 = vweird.f32 %v4577_v35  ;;  %vm1926_vm15 = vmor %vm1924_vm14, %vm1925_vm12  ;;  %v1900_v59 = vand.u32 2147483648, %v1871_v34 }
 0xad5   : > { %v1870_v41 = vadd.f32 1.0, %v4579_v38  ;;  %v1921_v45 = vsub.f32 1.0, %v1920_v37  ;;  %vm1911_vm3 = vmor %vm1909_vm1, %vm1910_vm13  ;;  %v1898_v11 = vand.u32 2147483647, %v1871_v34  ;;  %vm1894_vm14 = vweird.f32 %v1871_v34 }
 0xad6   : > { %v1906_v50 = vsub.f32 1.0, %v1905_v40  ;;  %v1901_v54 = vor.u32 1.1754944e-38, %v1900_v59  ;;  %v4258_v59 = vld [vmem:[%s6174_s11 + $0x20] sm:$0xff] }
 0xad7   : > { %4582 = vrcp.f32 %v1870_v41  ;;  %v1922_v51 = vmul.f32 %v4575_v32, %v1921_v45  ;;  %vm1899_vm13 = vcmp.eq.f32.partialorder %v1898_v11, 8.507059e+37  ;;  %v1885_v63 = vand.u32 2147483648, %v1870_v41  ;;  %v4272_v11 = vld [vmem:[%s6177_s14 + $0x10] sm:$0xff] }
 0xad8   : > { %v1907_v47 = vmul.f32 %v4577_v35, %v1906_v50  ;;  %v1883_v16 = vand.u32 2147483647, %v1870_v41 }
 0xad9   : > { %v1923_v57 = vadd.f32 %v4575_v32, %v1922_v51  ;;  %v1886_v18 = vor.u32 1.1754944e-38, %v1885_v63 }
 0xada   : > { %v4581_v58 = vpop.eup %4580  ;;  %v1908_v61 = vadd.f32 %v4577_v35, %v1907_v47 }
 0xadb   : > { %v1927_v53 = vsel %vm1926_vm15, %v4575_v32, %v1923_v57  ;;  %v1890_v42 = vmul.f32 %v4581_v58, %v1871_v34  ;;  %vm1895_vm12 = vweird.f32 %v4581_v58 }
 0xadc   : > { %v1932_v0 = vsel %vm1929_vm2, %v1931_v60, %v1927_v53  ;;  %v1912_v1 = vsel %vm1911_vm3, %v4577_v35, %v1908_v61  ;;  %vm1896_vm15 = vmor %vm1894_vm14, %vm1895_vm12  ;;  %vm1884_vm3 = vcmp.eq.f32.partialorder %v1883_v16, 8.507059e+37 }
 0xadd   : > { %v4583_v5 = vpop.eup %4582  ;;  %1951 = vperm.xlu0 %4475, %v1932_v0   ;;  %v1917_v6 = vsel %vm1914_vm0, %v1916_v62, %v1912_v1  ;;  %v1891_v7 = vsub.f32 1.0, %v1890_v42  ;;  %vm1879_vm0 = vweird.f32 %v1870_v41 }
 0xade   : > { %1946 = vperm.xlu1 %4477, %v1917_v6   ;;  %v1875_v8 = vmul.f32 %v4583_v5, %v1870_v41  ;;  %vm1880_vm1 = vweird.f32 %v4583_v5 }
 0xadf   : > { %v1892_v48 = vmul.f32 %v4581_v58, %v1891_v7  ;;  %vm1881_vm2 = vmor %vm1879_vm0, %vm1880_vm1  ;;  %v4269_v7 = vld [vmem:[%s6176_s13 + $0x18] sm:$0xff] }
 0xae0   : > { %v1876_v43 = vsub.f32 1.0, %v1875_v8  ;;  %v4259_v8 = vld [vmem:[%s6174_s11 + $0x28] sm:$0xff] }
 0xae1   : > { %v1893_v13 = vadd.f32 %v4581_v58, %v1892_v48  ;;  %v4268_v48 = vld [vmem:[%s6176_s13 + $0x10] sm:$0xff] }
 0xae2   : > { %v1877_v3 = vmul.f32 %v4583_v5, %v1876_v43 }
 0xae3   : > { %v1897_v14 = vsel %vm1896_vm15, %v4581_v58, %v1893_v13 }
 0xae4   : > { %v1902_v4 = vsel %vm1899_vm13, %v1901_v54, %v1897_v14  ;;  %v1878_v15 = vadd.f32 %v4583_v5, %v1877_v3 }
 0xae5   : > { %1941 = vperm.xlu2 %4476, %v1902_v4  }
 0xae6   : > { %v1882_v17 = vsel %vm1881_vm2, %v4583_v5, %v1878_v15  ;;  %v4254_v5 = vld [vmem:[%s6223_s10 + $0x20] sm:$0xff] }
 0xae7   : > { %v1887_v44 = vsel %vm1884_vm3, %v1886_v18, %v1882_v17 }
 0xaed   : > { %1936 = vperm.xlu2 %4476, %v1887_v44  }
 0xb3f   : > { %v1942_v22 = vpop.permute.xlu2 %1941 }
 0xb40   : > { %v1955_v23 = vmul.f32 %v1942_v22, %v5307_v56 }
 0xb42   : > { %v5384_v24 = vadd.f32 %v1955_v23, %v5124_v29 }
 0xb44   : > { %v1975_v27 = vsel %vm1006_vm5, %v5384_v24, 0.0 }
 0xb45   : > { %1976 = vadd.xlane.f32.xlu1 %v1975_v27 }
 0xb47   : > { %v1937_v32 = vpop.permute.xlu2 %1936 }
 0xb48   : > { %v1954_v29 = vmul.f32 %v1937_v32, %v5303_v10  ;;  %v4261_v10 = vld [vmem:[%s6174_s11 + $0x38] sm:$0xff] }
 0xb4f   : > { %v1952_v28 = vpop.permute.xlu0 %1951 }
 0xb50   : > { %v1957_v30 = vmul.f32 %v1952_v28, %v5315_v12  ;;  %v1947_v31 = vpop.permute.xlu1 %1946  ;;  %v5402_v12 = vadd.f32 %v1954_v29, %v5120_v25  ;;  %v4260_v25 = vld [vmem:[%s6174_s11 + $0x30] sm:$0xff] }
 0xb51   : > { %v1956_v34 = vmul.f32 %v1947_v31, %v5311_v2  ;;  %v4255_v2 = vld [vmem:[%s6223_s10 + $0x28] sm:$0xff] }
 0xb52   : > { %v5391_v35 = vadd.f32 %v1957_v30, %v5132_v36  ;;  %v4256_v36 = vld [vmem:[%s6223_s10 + $0x30] sm:$0xff] }
 0xb53   : > { %v5394_v37 = vadd.f32 %v1956_v34, %v5128_v33  ;;  %v1972_v33 = vsel %vm1006_vm5, %v5402_v12, 0.0 }
 0xb54   : > { %v1981_v56 = vsel %vm1006_vm5, %v5391_v35, 0.0 }
 0xb55   : > { %1982 = vadd.xlane.f32.xlu2 %v1981_v56  ;;  %v1978_v38 = vsel %vm1006_vm5, %v5394_v37, 0.0 }
 0xb56   : > { %1979 = vadd.xlane.f32.xlu0 %v1978_v38 }
 0xb5d   : > { %1973 = vadd.xlane.f32.xlu2 %v1972_v33 }
 0xb5e   : > { %2072 = vperm.xlu1 %4477, %v4256_v36  }
 0xb6a   : > { %2101 = vperm.xlu0 %4475, %v4261_v10  }
 0xb72   : > { %2067 = vperm.xlu0 %4475, %v4255_v2  }
 0xb75   : > { %2096 = vperm.xlu2 %4476, %v4260_v25  }
 0xbb8   : > { %v1977_v40 = vpop.xlane.xlu1 %1976 }
 0xbb9   : > { %v1985_v41 = vmul.f32 %v1977_v40, %v5046_v39 }
 0xbbb   : > { %v5420_v45 = vsub.f32 %v5384_v24, %v1985_v41 }
 0xbbd   : > { %v1993_v46 = vmul.f32 %v5420_v45, %v5420_v45 }
 0xbbf   : > { %v1999_v49 = vsel %vm1006_vm5, %v1993_v46, 0.0 }
 0xbc0   : > { %2000 = vadd.xlane.f32.xlu1 %v1999_v49 }
 0xbc8   : > { %v1983_v50 = vpop.xlane.xlu2 %1982 }
 0xbc9   : > { %v1980_v51 = vpop.xlane.xlu0 %1979  ;;  %v1987_v52 = vmul.f32 %v1983_v50, %v5046_v39 }
 0xbca   : > { %v1986_v47 = vmul.f32 %v1980_v51, %v5046_v39 }
 0xbcb   : > { %v5428_v55 = vsub.f32 %v5391_v35, %v1987_v52 }
 0xbcc   : > { %v5431_v57 = vsub.f32 %v5394_v37, %v1986_v47 }
 0xbcd   : > { %v1995_v58 = vmul.f32 %v5428_v55, %v5428_v55 }
 0xbce   : > { %v1994_v60 = vmul.f32 %v5431_v57, %v5431_v57 }
 0xbcf   : > { %v2005_v61 = vsel %vm1006_vm5, %v1995_v58, 0.0 }
 0xbd0   : > { %v2002_v53 = vsel %vm1006_vm5, %v1994_v60, 0.0  ;;  %2006 = vadd.xlane.f32.xlu0 %v2005_v61  ;;  %v1974_v62 = vpop.xlane.xlu2 %1973  ;;  %v2073_v43 = vpop.permute.xlu1 %2072 }
 0xbd1   : > { %2003 = vadd.xlane.f32.xlu2 %v2002_v53  ;;  %v1984_v42 = vmul.f32 %v1974_v62, %v5046_v39 }
 0xbd3   : > { %v5441_v0 = vsub.f32 %v5402_v12, %v1984_v42 }
 0xbd5   : > { %v1992_v1 = vmul.f32 %v5441_v0, %v5441_v0 }
 0xbd7   : > { %v1996_v6 = vsel %vm1006_vm5, %v1992_v1, 0.0 }
 0xbd8   : > { %1997 = vadd.xlane.f32.xlu0 %v1996_v6  ;;  %v2097_v15 = vpop.permute.xlu2 %2096 }
 0xbd9   : > { %2062 = vperm.xlu1 %4477, %v4254_v5  }
 0xbdc   : > { %v2102_v13 = vpop.permute.xlu0 %2101 }
 0xbe1   : > { %2145 = vperm.xlu1 %4477, %v4269_v7  }
 0xbe4   : > { %v2068_v4 = vpop.permute.xlu0 %2067 }
 0xbe9   : > { %2086 = vperm.xlu2 %4476, %v4258_v59  }
 0xbec   : > { %2091 = vperm.xlu0 %4475, %v4259_v8  }
 0xbf4   : > { %2140 = vperm.xlu0 %4475, %v4268_v48  }
 0xbfc   : > { %2229 = vperm.xlu0 %4475, %v4272_v11  }
 0xc33   : > { %v2001_v54 = vpop.xlane.xlu1 %2000 }
 0xc34   : > { %v2009_v3 = vmul.f32 %v2001_v54, %v5046_v39 }
 0xc36   : > { %v2013_v14 = vadd.f32 1e-06, %v2009_v3 }
 0xc38   : > { %4584 = vrsqrt.f32 %v2013_v14  ;;  %vm2032_vm14 = vweird.f32 %v2013_v14 }
 0xc3e   : > { %v4585_v63 = vpop.eup %4584 }
 0xc3f   : > { %v2027_v16 = vmul.f32 %v4585_v63, %v2013_v14  ;;  %vm2033_vm12 = vweird.f32 %v4585_v63 }
 0xc40   : > { %vm5468_vm15 = vmor %vm2032_vm14, %vm2033_vm12 }
 0xc41   : > { %v2028_v23 = vmul.f32 %v4585_v63, %v2027_v16 }
 0xc43   : > { %v2007_v17 = vpop.xlane.xlu0 %2006  ;;  %v2029_v30 = vmul.f32 0.5, %v2028_v23 }
 0xc44   : > { %v2011_v18 = vmul.f32 %v2007_v17, %v5046_v39  ;;  %v2004_v44 = vpop.xlane.xlu2 %2003 }
 0xc45   : > { %v2010_v22 = vmul.f32 %v2004_v44, %v5046_v39  ;;  %v2030_v29 = vsub.f32 1.5, %v2029_v30 }
 0xc46   : > { %v2015_v27 = vadd.f32 1e-06, %v2011_v18 }
 0xc47   : > { %v2014_v28 = vadd.f32 1e-06, %v2010_v22  ;;  %v2031_v25 = vmul.f32 %v4585_v63, %v2030_v29 }
 0xc48   : > { %4586 = vrsqrt.f32 %v2015_v27  ;;  %vm2052_vm0 = vweird.f32 %v2015_v27 }
 0xc49   : > { %4588 = vrsqrt.f32 %v2014_v28  ;;  %v2035_v52 = vsel %vm5468_vm15, %v4585_v63, %v2031_v25  ;;  %vm2042_vm3 = vweird.f32 %v2014_v28 }
 0xc4a   : > { %v2057_v62 = vmul.f32 %v2035_v52, %v5420_v45 }
 0xc4b   : > { %v1998_v31 = vpop.xlane.xlu0 %1997  ;;  %v2063_v44 = vpop.permute.xlu1 %2062 }
 0xc4c   : > { %v2008_v32 = vmul.f32 %v1998_v31, %v5046_v39  ;;  %v2081_v8 = vmul.f32 %v2068_v4, %v2057_v62 }
 0xc4e   : > { %v4587_v34 = vpop.eup %4586  ;;  %v2012_v56 = vadd.f32 1e-06, %v2008_v32 }
 0xc4f   : > { %v4589_v38 = vpop.eup %4588  ;;  %v2047_v36 = vmul.f32 %v4587_v34, %v2015_v27  ;;  %vm2053_vm13 = vweird.f32 %v4587_v34 }
 0xc50   : > { %v2037_v33 = vmul.f32 %v4589_v38, %v2014_v28  ;;  %4590 = vrsqrt.f32 %v2012_v56  ;;  %vm2043_vm1 = vweird.f32 %v4589_v38  ;;  %vm2054_vm2 = vmor %vm2052_vm0, %vm2053_vm13  ;;  %vm2022_vm14 = vweird.f32 %v2012_v56 }
 0xc51   : > { %v2048_v10 = vmul.f32 %v4587_v34, %v2047_v36  ;;  %vm2044_vm8 = vmor %vm2042_vm3, %vm2043_vm1 }
 0xc52   : > { %v2038_v2 = vmul.f32 %v4589_v38, %v2037_v33  ;;  %v4266_v33 = vld [vmem:[%s6175_s12 + $0x10] sm:$0xff] }
 0xc53   : > { %v2049_v40 = vmul.f32 0.5, %v2048_v10 }
 0xc54   : > { %v2039_v41 = vmul.f32 0.5, %v2038_v2  ;;  %v4267_v2 = vld [vmem:[%s6175_s12 + $0x18] sm:$0xff] }
 0xc55   : > { %v2050_v49 = vsub.f32 1.5, %v2049_v40 }
 0xc56   : > { %v4591_v50 = vpop.eup %4590  ;;  %v2040_v51 = vsub.f32 1.5, %v2039_v41 }
 0xc57   : > { %v2051_v47 = vmul.f32 %v4587_v34, %v2050_v49  ;;  %v2017_v58 = vmul.f32 %v4591_v50, %v2012_v56  ;;  %vm2023_vm12 = vweird.f32 %v4591_v50  ;;  %v2146_v49 = vpop.permute.xlu1 %2145 }
 0xc58   : > { %v2041_v60 = vmul.f32 %v4589_v38, %v2040_v51  ;;  %vm2024_vm15 = vmor %vm2022_vm14, %vm2023_vm12 }
 0xc59   : > { %v2055_v61 = vsel %vm2054_vm2, %v4587_v34, %v2051_v47  ;;  %v2018_v53 = vmul.f32 %v4591_v50, %v2017_v58  ;;  %v4273_v47 = vld [vmem:[%s6177_s14 + $0x18] sm:$0xff] }
 0xc5a   : > { %v2059_v42 = vmul.f32 %v2055_v61, %v5428_v55  ;;  %v2045_v1 = vsel %vm2044_vm8, %v4589_v38, %v2041_v60 }
 0xc5b   : > { %v2019_v5 = vmul.f32 0.5, %v2018_v53  ;;  %v2058_v6 = vmul.f32 %v2045_v1, %v5431_v57 }
 0xc5c   : > { %v2083_v7 = vmul.f32 %v5380_v9, %v2059_v42 }
 0xc5d   : > { %v2020_v59 = vsub.f32 1.5, %v2019_v5  ;;  %v2082_v48 = vmul.f32 %v2073_v43, %v2058_v6  ;;  %v2087_v43 = vpop.permute.xlu2 %2086 }
 0xc5e   : > { %v2092_v11 = vpop.permute.xlu0 %2091  ;;  %v2107_v54 = vadd.f32 %v2102_v13, %v2083_v7 }
 0xc5f   : > { %v2021_v3 = vmul.f32 %v4591_v50, %v2020_v59  ;;  %v2105_v14 = vadd.f32 %v2092_v11, %v2081_v8  ;;  %v2106_v63 = vadd.f32 %v2097_v15, %v2082_v48  ;;  %v4275_v59 = vld [vmem:[%s6178_s15 + $0x18] sm:$0xff]  ;;  %v4274_v8 = vld [vmem:[%s6178_s15 + $0x10] sm:$0xff] }
 0xc60   : > { %v2115_v45 = vmin.f32 %v2107_v54, 0.0  ;;  %vm2111_vm8 = vcmp.gt.f32.partialorder %v2107_v54, 0.0 }
 0xc61   : > { %v2025_v16 = vsel %vm2024_vm15, %v4591_v50, %v2021_v3  ;;  %v2113_v55 = vmin.f32 %v2105_v14, 0.0  ;;  %v2114_v17 = vmin.f32 %v2106_v63, 0.0  ;;  %vm2110_vm13 = vcmp.gt.f32.partialorder %v2106_v63, 0.0 }
 0xc62   : > { %v2056_v18 = vmul.f32 %v2025_v16, %v5441_v0  ;;  %v2122_v57 = vmul.f32 1.442695, %v2115_v45  ;;  %vm2109_vm1 = vcmp.gt.f32.partialorder %v2105_v14, 0.0 }
 0xc63   : > { %v2118_v9 = vmul.f32 1.442695, %v2113_v55  ;;  %v2120_v22 = vmul.f32 1.442695, %v2114_v17 }
 0xc64   : > { %v2080_v23 = vmul.f32 %v2063_v44, %v2056_v18  ;;  %4592 = vpow2.f32 %v2122_v57 }
 0xc65   : > { %4594 = vpow2.f32 %v2118_v9 }
 0xc66   : > { %v2104_v13 = vadd.f32 %v2087_v43, %v2080_v23  ;;  %4596 = vpow2.f32 %v2120_v22  ;;  %v2141_v25 = vpop.permute.xlu0 %2140 }
 0xc68   : > { %v2112_v4 = vmin.f32 %v2104_v13, 0.0  ;;  %vm2108_vm0 = vcmp.gt.f32.partialorder %v2104_v13, 0.0 }
 0xc6a   : > { %v4593_v27 = vpop.eup %4592  ;;  %v2116_v15 = vmul.f32 1.442695, %v2112_v4 }
 0xc6b   : > { %v4595_v28 = vpop.eup %4594  ;;  %v4265_v30 = vadd.f32 -1.0, %v4593_v27 }
 0xc6c   : > { %v4597_v31 = vpop.eup %4596  ;;  %4598 = vpow2.f32 %v2116_v15  ;;  %v4263_v34 = vadd.f32 -1.0, %v4595_v28 }
 0xc6d   : > { %v2131_v32 = vsel %vm2111_vm8, %v2107_v54, %v4265_v30  ;;  %v4264_v0 = vadd.f32 -1.0, %v4597_v31 }
 0xc6e   : > { %2166 = vmatpush.msrb.mxu1 %v2131_v32  ;;  %v2129_v56 = vsel %vm2109_vm1, %v2105_v14, %v4263_v34  ;;  %v2230_v48 = vpop.permute.xlu0 %2229 }
 0xc6f   : > { %v2130_v29 = vsel %vm2110_vm13, %v2106_v63, %v4264_v0 }
 0xc70   : > { %2167 = vmatpush.msrb.mxu1 %v2130_v29 }
 0xc72   : > { %v4599_v38 = vpop.eup %4598  ;;  %2168 = vmatpush.msrb.mxu1 %v2129_v56 }
 0xc73   : > { %v4262_v36 = vadd.f32 -1.0, %v4599_v38 }
 0xc75   : > { %v2128_v10 = vsel %vm2108_vm0, %v2104_v13, %v4262_v36  ;;  %vm2273_vm0 = vcmask 146432  }
 0xc76   : > { %2169 = vmatpush.msrb.mxu1 %v2128_v10 }
 0xc77   : > { %4270 = vmatmul.msk.f32.vlgmr.msrb.gmra.mxu1 %vm1202_vm9, %v4266_v33 }
 0xc7f   : > { %4271 = vmatmul.msk.f32.gmra.mxu1 %vm1202_vm9, %v4267_v2 }
 0xcf4   : > { %v2171_v40 = vpop.f32.mrf.mxu1 }
 0xcf5   : > { %v2172_v41 = vadd.f32 %v2171_v40, %v2141_v25 }
 0xcf7   : > { %v2183_v46 = vsel %vm1006_vm5, %v2172_v41, 0.0 }
 0xcf8   : > { %2184 = vadd.xlane.f32.xlu1 %v2183_v46 }
 0xcfc   : > { %v2174_v50 = vpop.f32.mrf.mxu1 }
 0xcfd   : > { %v2175_v51 = vadd.f32 %v2174_v50, %v2146_v49  ;;  %v4281_v50 = vld [vmem:[%s6180_s17 + $0x18] sm:$0xff] }
 0xcff   : > { %v2186_v52 = vsel %vm1006_vm5, %v2175_v51, 0.0 }
 0xd00   : > { %2187 = vadd.xlane.f32.xlu2 %v2186_v52 }
 0xd11   : > { %2234 = vperm.xlu1 %4477, %v4273_v47  }
 0xd6b   : > { %v2185_v58 = vpop.xlane.xlu1 %2184 }
 0xd6c   : > { %v2189_v60 = vmul.f32 %v2185_v58, %v5046_v39 }
 0xd6e   : > { %v2191_v61 = vsub.f32 %v2172_v41, %v2189_v60 }
 0xd70   : > { %v2193_v53 = vmul.f32 %v2191_v61, %v2191_v61 }
 0xd72   : > { %v2195_v62 = vsel %vm1006_vm5, %v2193_v53, 0.0 }
 0xd73   : > { %v2188_v42 = vpop.xlane.xlu2 %2187  ;;  %2196 = vadd.xlane.f32.xlu2 %v2195_v62 }
 0xd74   : > { %v2190_v1 = vmul.f32 %v2188_v42, %v5046_v39  ;;  %v4280_v42 = vld [vmem:[%s6180_s17 + $0x10] sm:$0xff] }
 0xd76   : > { %v2192_v5 = vsub.f32 %v2175_v51, %v2190_v1 }
 0xd78   : > { %v2194_v6 = vmul.f32 %v2192_v5, %v2192_v5 }
 0xd7a   : > { %v2198_v7 = vsel %vm1006_vm5, %v2194_v6, 0.0 }
 0xd7b   : > { %2199 = vadd.xlane.f32.xlu0 %v2198_v7 }
 0xd83   : > { %v2235_v29 = vpop.permute.xlu1 %2234 }
 0xd8b   : > { %2246 = vperm.xlu2 %4476, %v4275_v59  }
 0xd8f   : > { %2241 = vperm.xlu0 %4475, %v4274_v8  }
 0xde6   : > { %v2197_v11 = vpop.xlane.xlu2 %2196 }
 0xde7   : > { %v2201_v54 = vmul.f32 %v2197_v11, %v5046_v39  ;;  %v4279_v11 = vld [vmem:[%s6179_s16 + $0x18] sm:$0xff] }
 0xde9   : > { %v2203_v3 = vadd.f32 1e-06, %v2201_v54 }
 0xdeb   : > { %4600 = vrsqrt.f32 %v2203_v3  ;;  %vm2211_vm3 = vweird.f32 %v2203_v3 }
 0xdee   : > { %v2200_v14 = vpop.xlane.xlu0 %2199  ;;  %v2247_v36 = vpop.permute.xlu2 %2246 }
 0xdef   : > { %v2202_v63 = vmul.f32 %v2200_v14, %v5046_v39 }
 0xdf1   : > { %v4601_v45 = vpop.eup %4600  ;;  %v2204_v16 = vadd.f32 1e-06, %v2202_v63 }
 0xdf2   : > { %v2206_v55 = vmul.f32 %v4601_v45, %v2203_v3  ;;  %vm2212_vm2 = vweird.f32 %v4601_v45 }
 0xdf3   : > { %4602 = vrsqrt.f32 %v2204_v16  ;;  %vm2213_vm12 = vmor %vm2211_vm3, %vm2212_vm2  ;;  %vm2221_vm15 = vweird.f32 %v2204_v16 }
 0xdf4   : > { %v2207_v17 = vmul.f32 %v4601_v45, %v2206_v55 }
 0xdf6   : > { %v2208_v18 = vmul.f32 0.5, %v2207_v17 }
 0xdf8   : > { %v2209_v57 = vsub.f32 1.5, %v2208_v18  ;;  %v4287_v18 = vld [vmem:[%s6181_s18 + $0x18] sm:$0xff] }
 0xdf9   : > { %v4603_v44 = vpop.eup %4602 }
 0xdfa   : > { %v2216_v9 = vmul.f32 %v4603_v44, %v2204_v16  ;;  %v2210_v22 = vmul.f32 %v4601_v45, %v2209_v57  ;;  %vm2222_vm14 = vweird.f32 %v4603_v44  ;;  %v4288_v57 = vld [vmem:[%s6182_s19 + $0x10] sm:$0xff] }
 0xdfb   : > { %vm2223_vm8 = vmor %vm2221_vm15, %vm2222_vm14 }
 0xdfc   : > { %v2217_v23 = vmul.f32 %v4603_v44, %v2216_v9  ;;  %v2214_v43 = vsel %vm2213_vm12, %v4601_v45, %v2210_v22 }
 0xdfd   : > { %v2225_v13 = vmul.f32 %v2214_v43, %v2191_v61 }
 0xdfe   : > { %v2218_v4 = vmul.f32 0.5, %v2217_v23 }
 0xdff   : > { %v2237_v27 = vmul.f32 %v2230_v48, %v2225_v13  ;;  %v4278_v48 = vld [vmem:[%s6179_s16 + $0x10] sm:$0xff] }
 0xe00   : > { %v2219_v15 = vsub.f32 1.5, %v2218_v4 }
 0xe01   : > { %v2242_v28 = vpop.permute.xlu0 %2241 }
 0xe02   : > { %v2220_v30 = vmul.f32 %v4603_v44, %v2219_v15  ;;  %v2249_v31 = vadd.f32 %v2242_v28, %v2237_v27 }
 0xe04   : > { %v2224_v32 = vsel %vm2223_vm8, %v4603_v44, %v2220_v30  ;;  %v2253_v0 = vmin.f32 %v2249_v31, 0.0  ;;  %vm2251_vm13 = vcmp.gt.f32.partialorder %v2249_v31, 0.0  ;;  %v4298_v44 = vld [vmem:[%s6184_s21 + $0x30] sm:$0xff] }
 0xe05   : > { %v2226_v34 = vmul.f32 %v2224_v32, %v2192_v5  ;;  %v4286_v32 = vld [vmem:[%s6181_s18 + $0x10] sm:$0xff] }
 0xe06   : > { %v2255_v56 = vmul.f32 1.442695, %v2253_v0  ;;  %v4297_v0 = vld [vmem:[%s6184_s21 + $0x28] sm:$0xff] }
 0xe07   : > { %v2238_v38 = vmul.f32 %v2235_v29, %v2226_v34  ;;  %v4296_v34 = vld [vmem:[%s6184_s21 + $0x20] sm:$0xff]  ;;  %v4299_v29 = vld [vmem:[%s6184_s21 + $0x38] sm:$0xff] }
 0xe08   : > { %4604 = vpow2.f32 %v2255_v56 }
 0xe09   : > { %v2250_v33 = vadd.f32 %v2247_v36, %v2238_v38 }
 0xe0b   : > { %v2254_v10 = vmin.f32 %v2250_v33, 0.0  ;;  %vm2252_vm1 = vcmp.gt.f32.partialorder %v2250_v33, 0.0 }
 0xe0d   : > { %v2257_v2 = vmul.f32 1.442695, %v2254_v10 }
 0xe0e   : > { %v4605_v25 = vpop.eup %4604 }
 0xe0f   : > { %4606 = vpow2.f32 %v2257_v2  ;;  %v4276_v40 = vadd.f32 -1.0, %v4605_v25 }
 0xe11   : > { %v2261_v41 = vsel %vm2251_vm13, %v2249_v31, %v4276_v40  ;;  %v4289_v31 = vld [vmem:[%s6182_s19 + $0x18] sm:$0xff] }
 0xe12   : > { %2265 = vrot.lane.b32.xlu2 %v2261_v41, %s4749_s6 }
 0xe15   : > { %v4607_v46 = vpop.eup %4606 }
 0xe16   : > { %v4277_v49 = vadd.f32 -1.0, %v4607_v46 }
 0xe18   : > { %v2262_v51 = vsel %vm2252_vm1, %v2250_v33, %v4277_v49 }
 0xe19   : > { %2267 = vrot.lane.b32.xlu1 %v2262_v51, %s4749_s6  ;;  %s6229_s6 = smov 124  }
 0xe1a   : > { %2303 = vperm.xlu2 %4476, %v4281_v50  }
 0xe6c   : > { %v2266_v52 = vpop.permute.xlu2 %2265 }
 0xe6d   : > { %v2271_v47 = vsel %vm1833_vm11, 0.0, %v2266_v52 }
 0xe6e   : > { %v2274_v61 = vsel %vm2273_vm0, %v2271_v47, 0.0 }
 0xe74   : > { %v2304_v45 = vpop.permute.xlu2 %2303 }
 0xe8b   : > { %v2268_v58 = vpop.permute.xlu1 %2267 }
 0xe8c   : > { %v2272_v60 = vsel %vm1833_vm11, 0.0, %v2268_v58 }
 0xe8d   : > { %v2275_v53 = vsel %vm2273_vm0, %v2272_v60, 0.0 }
 0xe8e   : > { %v4493_v62 = vpack.i.bf16 %v2274_v61, %v2275_v53 }
 0xe90   : > { %4494 = vrot.lane.b32.xlu1 %v4493_v62, %s6227_s9  ;;  %4489 = vrot.lane.b32.xlu0 %v4493_v62, %s6202_s2  ;;  %s4751_s2 = smov 4   ;;  %s4753_s9 = smov 8  }
 0xe98   : > { %2298 = vperm.xlu0 %4475, %v4280_v42  }
 0xf02   : > { %v4490_v1 = vpop.permute.xlu0 %4489  ;;  %v4495_v6 = vpop.permute.xlu1 %4494 }
 0xf03   : > { %v4491_v5 = vunpack.i.l.bf16 %v4490_v1  ;;  %v4492_v7 = vunpack.i.h.bf16 %v4490_v1  ;;  %v4496_v59 = vunpack.i.l.bf16 %v4495_v6  ;;  %v4497_v8 = vunpack.i.h.bf16 %v4495_v6 }
 0xf05   : > { %2322 = vmatpush.msra.mxu1 %v4491_v5 }
 0xf07   : > { %2323 = vmatpush.msra.mxu1 %v4492_v7 }
 0xf09   : > { %2324 = vmatpush.msra.mxu1 %v4496_v59 }
 0xf0a   : > { %v2299_v54 = vpop.permute.xlu0 %2298 }
 0xf0b   : > { %2325 = vmatpush.msra.mxu1 %v4497_v8 }
 0xf0d   : > { %4282 = vmatpush.msk.msra.mxu1 %vm2273_vm0, %v2272_v60 }
 0xf0f   : > { %4283 = vmatpush.msk.msra.mxu1 %vm2273_vm0, %v2271_v47  ;;  %vm6228_vm0 = vcmask 254976  }
 0xf10   : > { %4284 = vmatmul.msk.f32.vlgmr.msra.gmra.mxu1 %vm1581_vm10, %v4278_v48 }
 0xf18   : > { %4285 = vmatmul.msk.f32.gmra.mxu1 %vm1581_vm10, %v4279_v11 }
 0xf8d   : > { %v2329_v3 = vpop.f32.mrf.mxu1 }
 0xf8e   : > { %v2330_v14 = vadd.f32 %v2329_v3, %v2299_v54 }
 0xf90   : > { %v2341_v63 = vsel %vm1006_vm5, %v2330_v14, 0.0 }
 0xf91   : > { %2342 = vadd.xlane.f32.xlu2 %v2341_v63 }
 0xf95   : > { %v2332_v16 = vpop.f32.mrf.mxu1 }
 0xf96   : > { %v2333_v55 = vadd.f32 %v2332_v16, %v2304_v45 }
 0xf98   : > { %v2344_v17 = vsel %vm1006_vm5, %v2333_v55, 0.0 }
 0xf99   : > { %2345 = vadd.xlane.f32.xlu1 %v2344_v17 }
 0xfa9   : > { %2392 = vperm.xlu2 %4476, %v4287_v18  }
 0xfb1   : > { %2399 = vperm.xlu2 %4476, %v4288_v57  }
 0xfb9   : > { %2443 = vperm.xlu2 %4476, %v4298_v44   ;;  %v4292_v44 = vld [vmem:[%s6183_s20 + $0x20] sm:$0xff] }
0x1004   : > { %v2343_v9 = vpop.xlane.xlu2 %2342 }
0x1005   : > { %v2347_v22 = vmul.f32 %v2343_v9, %v5046_v39  ;;  %v4294_v9 = vld [vmem:[%s6183_s20 + $0x30] sm:$0xff] }
0x1007   : > { %v2349_v23 = vsub.f32 %v2330_v14, %v2347_v22 }
0x1009   : > { %v2351_v43 = vmul.f32 %v2349_v23, %v2349_v23 }
0x100b   : > { %v2353_v13 = vsel %vm1006_vm5, %v2351_v43, 0.0  ;;  %v4295_v43 = vld [vmem:[%s6183_s20 + $0x38] sm:$0xff] }
0x100c   : > { %v2346_v4 = vpop.xlane.xlu1 %2345  ;;  %2354 = vadd.xlane.f32.xlu1 %v2353_v13  ;;  %v2393_v51 = vpop.permute.xlu2 %2392 }
0x100d   : > { %v2348_v27 = vmul.f32 %v2346_v4, %v5046_v39 }
0x100f   : > { %v2350_v15 = vsub.f32 %v2333_v55, %v2348_v27 }
0x1011   : > { %v2352_v28 = vmul.f32 %v2350_v15, %v2350_v15 }
0x1013   : > { %v2356_v30 = vsel %vm1006_vm5, %v2352_v28, 0.0 }
0x1014   : > { %2357 = vadd.xlane.f32.xlu0 %v2356_v30  ;;  %v2400_v6 = vpop.permute.xlu2 %2399 }
0x101c   : > { %v2444_v4 = vpop.permute.xlu2 %2443 }
0x1025   : > { %2404 = vperm.xlu1 %4477, %v4289_v31  }
0x1028   : > { %2387 = vperm.xlu0 %4475, %v4286_v32  }
0x102d   : > { %2438 = vperm.xlu1 %4477, %v4297_v0  }
0x1030   : > { %2433 = vperm.xlu0 %4475, %v4296_v34  }
0x1038   : > { %2448 = vperm.xlu0 %4475, %v4299_v29  }
0x107f   : > { %v2355_v56 = vpop.xlane.xlu1 %2354 }
0x1080   : > { %v2359_v38 = vmul.f32 %v2355_v56, %v5046_v39 }
0x1082   : > { %v2361_v36 = vadd.f32 1e-06, %v2359_v38 }
0x1084   : > { %4608 = vrsqrt.f32 %v2361_v36  ;;  %vm2369_vm3 = vweird.f32 %v2361_v36 }
0x1087   : > { %v2358_v33 = vpop.xlane.xlu0 %2357 }
0x1088   : > { %v2360_v10 = vmul.f32 %v2358_v33, %v5046_v39 }
0x108a   : > { %v4609_v2 = vpop.eup %4608  ;;  %v2362_v25 = vadd.f32 1e-06, %v2360_v10 }
0x108b   : > { %v2364_v40 = vmul.f32 %v4609_v2, %v2361_v36  ;;  %vm2370_vm2 = vweird.f32 %v4609_v2 }
0x108c   : > { %4610 = vrsqrt.f32 %v2362_v25  ;;  %vm2371_vm12 = vmor %vm2369_vm3, %vm2370_vm2  ;;  %vm2379_vm15 = vweird.f32 %v2362_v25 }
0x108d   : > { %v2365_v41 = vmul.f32 %v4609_v2, %v2364_v40 }
0x108f   : > { %v2366_v46 = vmul.f32 0.5, %v2365_v41 }
0x1091   : > { %v2367_v49 = vsub.f32 1.5, %v2366_v46 }
0x1092   : > { %v4611_v50 = vpop.eup %4610 }
0x1093   : > { %v2374_v52 = vmul.f32 %v4611_v50, %v2362_v25  ;;  %v2368_v47 = vmul.f32 %v4609_v2, %v2367_v49  ;;  %vm2380_vm14 = vweird.f32 %v4611_v50 }
0x1094   : > { %vm2381_vm8 = vmor %vm2379_vm15, %vm2380_vm14 }
0x1095   : > { %v2375_v58 = vmul.f32 %v4611_v50, %v2374_v52  ;;  %v2372_v60 = vsel %vm2371_vm12, %v4609_v2, %v2368_v47 }
0x1096   : > { %v2383_v62 = vmul.f32 %v2372_v60, %v2349_v23  ;;  %v4293_v23 = vld [vmem:[%s6183_s20 + $0x28] sm:$0xff] }
0x1097   : > { %v2376_v61 = vmul.f32 0.5, %v2375_v58  ;;  %v2405_v54 = vpop.permute.xlu1 %2404 }
0x1099   : > { %v2377_v53 = vsub.f32 1.5, %v2376_v61 }
0x109a   : > { %v2388_v42 = vpop.permute.xlu0 %2387 }
0x109b   : > { %v2378_v1 = vmul.f32 %v4611_v50, %v2377_v53  ;;  %v2395_v5 = vmul.f32 %v2388_v42, %v2383_v62  ;;  %v4304_v53 = vld [vmem:[%s6185_s22 + $0x2] sm:$0x3] }
0x109d   : > { %v2382_v7 = vsel %vm2381_vm8, %v4611_v50, %v2378_v1  ;;  %v2407_v59 = vadd.f32 %v2400_v6, %v2395_v5  ;;  %v4305_v6 = vld [vmem:[%s6186_s23 + $0x2] sm:$0x3] }
0x109e   : > { %v2384_v8 = vmul.f32 %v2382_v7, %v2350_v15 }
0x109f   : > { %v2411_v48 = vmin.f32 %v2407_v59, 0.0  ;;  %vm2409_vm1 = vcmp.gt.f32.partialorder %v2407_v59, 0.0  ;;  %v2439_v0 = vpop.permute.xlu1 %2438 }
0x10a0   : > { %v2396_v11 = vmul.f32 %v2393_v51, %v2384_v8 }
0x10a1   : > { %v2413_v14 = vmul.f32 1.442695, %v2411_v48 }
0x10a2   : > { %v2408_v3 = vadd.f32 %v2405_v54, %v2396_v11  ;;  %v2434_v13 = vpop.permute.xlu0 %2433  ;;  %v4309_v11 = vld [vmem:[%s6187_s24 + $0x38] sm:$0xff]  ;;  %v4308_v54 = vld [vmem:[%s6187_s24 + $0x30] sm:$0xff] }
0x10a3   : > { %4612 = vpow2.f32 %v2413_v14 }
0x10a4   : > { %v2412_v63 = vmin.f32 %v2408_v3, 0.0  ;;  %vm2410_vm13 = vcmp.gt.f32.partialorder %v2408_v3, 0.0 }
0x10a6   : > { %v2415_v45 = vmul.f32 1.442695, %v2412_v63 }
0x10a8   : > { %4614 = vpow2.f32 %v2415_v45 }
0x10a9   : > { %v4613_v16 = vpop.eup %4612 }
0x10aa   : > { %v4290_v18 = vadd.f32 -1.0, %v4613_v16  ;;  %v2449_v34 = vpop.permute.xlu0 %2448 }
0x10ac   : > { %v2419_v22 = vsel %vm2409_vm1, %v2407_v59, %v4290_v18 }
0x10ae   : > { %v4615_v55 = vpop.eup %4614 }
0x10af   : > { %v4291_v17 = vadd.f32 -1.0, %v4615_v55  ;;  %v4307_v55 = vld [vmem:[%s6187_s24 + $0x28] sm:$0xff] }
0x10b1   : > { %v2420_v57 = vsel %vm2410_vm13, %v2408_v3, %v4291_v17  ;;  %v4306_v17 = vld [vmem:[%s6187_s24 + $0x20] sm:$0xff] }
0x10b2   : > { %2477 = vmatpush.msrb.mxu2 %v2420_v57  ;;  %4454 = vmatpush.msrb.mxu3 %v2420_v57 }
0x10b4   : > { %2478 = vmatpush.msrb.mxu2 %v2419_v22  ;;  %4455 = vmatpush.msrb.mxu3 %v2419_v22  ;;  %v4321_v22 = vld [vmem:[%s6223_s10 + $0x58] sm:$0xff] }
0x10b5   : > { %4300 = vmatmul.msk.f32.vlgmr.msrb.gmra.mxu2 %vm1006_vm5, %v4292_v44  ;;  %4302 = vmatmul.msk.f32.vlgmr.msrb.gmra.mxu3 %vm1006_vm5, %v4294_v9 }
0x10bd   : > { %4301 = vmatmul.msk.f32.gmra.mxu2 %vm1006_vm5, %v4293_v23  ;;  %4303 = vmatmul.msk.f32.gmra.mxu3 %vm1006_vm5, %v4295_v43  ;;  %v4313_v23 = vld [vmem:[%s6188_s25 + $0x38] sm:$0xff]  ;;  %v4312_v43 = vld [vmem:[%s6188_s25 + $0x30] sm:$0xff] }
0x1138   : > { %v2480_v27 = vpop.f32.mrf.mxu2  ;;  %v2486_v15 = vpop.f32.mrf.mxu3 }
0x1139   : > { %v5574_v28 = vadd.f32 %v2480_v27, %v2434_v13  ;;  %v5576_v30 = vadd.f32 %v2486_v15, %v2444_v4 }
0x113b   : > { %v2492_v31 = vsel %vm1006_vm5, %v5574_v28, 0.0  ;;  %v2498_v32 = vsel %vm1006_vm5, %v5576_v30, 0.0 }
0x113c   : > { %2493 = vadd.xlane.f32.xlu1 %v2492_v31  ;;  %2499 = vadd.xlane.f32.xlu0 %v2498_v32 }
0x1140   : > { %v2483_v29 = vpop.f32.mrf.mxu2  ;;  %v2489_v56 = vpop.f32.mrf.mxu3 }
0x1141   : > { %v5582_v38 = vadd.f32 %v2483_v29, %v2439_v0  ;;  %v5584_v36 = vadd.f32 %v2489_v56, %v2449_v34  ;;  %v4311_v29 = vld [vmem:[%s6188_s25 + $0x28] sm:$0xff]  ;;  %v4310_v56 = vld [vmem:[%s6188_s25 + $0x20] sm:$0xff] }
0x1143   : > { %v2495_v33 = vsel %vm1006_vm5, %v5582_v38, 0.0  ;;  %v2501_v10 = vsel %vm1006_vm5, %v5584_v36, 0.0 }
0x1144   : > { %2496 = vadd.xlane.f32.xlu2 %v2495_v33  ;;  %2502 = vadd.xlane.f32.xlu1 %v2501_v10 }
0x11af   : > { %v2494_v2 = vpop.xlane.xlu1 %2493  ;;  %v2500_v25 = vpop.xlane.xlu0 %2499 }
0x11b0   : > { %v2504_v40 = vmul.f32 %v2494_v2, %v5046_v39  ;;  %v2506_v41 = vmul.f32 %v2500_v25, %v5046_v39 }
0x11b2   : > { %v2514_v52 = vperm.slane %v2504_v40, %v5319_v19  ;;  %v2517_v58 = vperm.slane %v2506_v41, %v5326_v21 }
0x11b7   : > { %v2503_v46 = vpop.xlane.xlu1 %2502  ;;  %v2497_v49 = vpop.xlane.xlu2 %2496 }
0x11b8   : > { %v2507_v50 = vmul.f32 %v2503_v46, %v5046_v39  ;;  %v2505_v51 = vmul.f32 %v2497_v49, %v5046_v39 }
0x11ba   : > { %v2515_v47 = vperm.slane %v2505_v51, %v5322_v20  ;;  %v2519_v60 = vperm.slane %v2507_v50, %v5332_v26 }
0x11bc   : > { %v2516_v61 = vsel %vm1790_vm4, %v2515_v47, %v2514_v52 }
0x11bd   : > { %v2518_v62 = vsel %vm1794_vm6, %v2517_v58, %v2516_v61 }
0x11be   : > { %v2520_v42 = vsel %vm1798_vm7, %v2519_v60, %v2518_v62 }
0x11bf   : > { %v2522_v1 = vmul.f32 %v4304_v53, %v2520_v42 }
0x11c1   : > { %v2523_v5 = vsel %vm6228_vm0, %v2522_v1, 0.0 }
0x11c2   : > { %2524 = vadd.xlane.f32.xlu2 %v2523_v5 }
0x1235   : > { %v2525_v7 = vpop.xlane.xlu2 %2524 }
0x1236   : > { %v2528_v59 = vadd.f32 %v4305_v6, %v2525_v7 }
0x1238   : > { %v2529_v8 = vmax.f32 %v2528_v59, 0.0 }
0x123a   : > { %2537 = vperm.xlu0 %4475, %v2529_v8  }
0x12ac   : > { %v2538_v48 = vpop.permute.xlu0 %2537 }
0x12ad   : > { %v2539_v3 = vperm.slane %v2538_v48, %v5319_v19 }
0x12af   : > { %v2550_v14 = vmul.f32 %v4309_v11, %v2539_v3  ;;  %v2549_v63 = vmul.f32 %v4308_v54, %v2539_v3  ;;  %v2548_v18 = vmul.f32 %v4307_v55, %v2539_v3  ;;  %v2547_v57 = vmul.f32 %v4306_v17, %v2539_v3 }
0x12b1   : > { %v2560_v45 = vsel %vm1833_vm11, %v2550_v14, 0.0  ;;  %v2557_v16 = vsel %vm1833_vm11, %v2549_v63, 0.0  ;;  %v2554_v44 = vsel %vm1833_vm11, %v2548_v18, 0.0  ;;  %v2551_v9 = vsel %vm1833_vm11, %v2547_v57, 0.0 }
0x12b2   : > { %2561 = vadd.xlane.f32.xlu1 %v2560_v45  ;;  %2558 = vadd.xlane.f32.xlu2 %v2557_v16 }
0x12ba   : > { %2555 = vadd.xlane.f32.xlu1 %v2554_v44  ;;  %2552 = vadd.xlane.f32.xlu2 %v2551_v9 }
0x12d2   : > { %2795 = vperm.xlu2 %4476, %v4321_v22  }
0x1325   : > { %v2562_v13 = vpop.xlane.xlu1 %2561  ;;  %v2559_v4 = vpop.xlane.xlu2 %2558 }
0x1326   : > { %v2571_v27 = vadd.f32 %v4313_v23, %v2562_v13  ;;  %v2570_v15 = vadd.f32 %v4312_v43, %v2559_v4 }
0x1328   : > { %v2575_v31 = vmax.f32 %v2571_v27, 0.0  ;;  %v2574_v32 = vmax.f32 %v2570_v15, 0.0 }
0x132a   : > { %v4317_v0 = vmul.f32 -1.442695, %v2575_v31  ;;  %v4316_v34 = vmul.f32 -1.442695, %v2574_v32 }
0x132c   : > { %4616 = vpow2.f32 %v4317_v0 }
0x132d   : > { %4618 = vpow2.f32 %v4316_v34  ;;  %v2556_v33 = vpop.xlane.xlu1 %2555  ;;  %v2553_v10 = vpop.xlane.xlu2 %2552 }
0x132e   : > { %v2569_v2 = vadd.f32 %v4311_v29, %v2556_v33  ;;  %v2568_v25 = vadd.f32 %v4310_v56, %v2553_v10 }
0x1330   : > { %v2573_v40 = vmax.f32 %v2569_v2, 0.0  ;;  %v2572_v41 = vmax.f32 %v2568_v25, 0.0 }
0x1332   : > { %v4617_v46 = vpop.eup %4616  ;;  %v4315_v49 = vmul.f32 -1.442695, %v2573_v40  ;;  %v4314_v52 = vmul.f32 -1.442695, %v2572_v41 }
0x1333   : > { %v4619_v50 = vpop.eup %4618  ;;  %v2591_v51 = vadd.f32 1.0, %v4617_v46 }
0x1334   : > { %v2590_v47 = vadd.f32 1.0, %v4619_v50  ;;  %4620 = vpow2.f32 %v4315_v49 }
0x1335   : > { %4622 = vrcp.f32 %v2591_v51  ;;  %v2646_v7 = vand.u32 2147483647, %v2591_v51  ;;  %v2648_v59 = vand.u32 2147483648, %v2591_v51  ;;  %vm2642_vm12 = vweird.f32 %v2591_v51  ;;  %v5640_v41 = vpop.permute.xlu2 %2795 }
0x1336   : > { %4624 = vrcp.f32 %v2590_v47  ;;  %v2633_v11 = vand.u32 2147483648, %v2590_v47  ;;  %v2631_v3 = vand.u32 2147483647, %v2590_v47  ;;  %vm2627_vm15 = vweird.f32 %v2590_v47 }
0x1337   : > { %4626 = vpow2.f32 %v4314_v52  ;;  %v2649_v45 = vor.u32 1.1754944e-38, %v2648_v59  ;;  %vm2647_vm8 = vcmp.eq.f32.partialorder %v2646_v7, 8.507059e+37 }
0x1338   : > { %v2634_v17 = vor.u32 1.1754944e-38, %v2633_v11  ;;  %vm2632_vm1 = vcmp.eq.f32.partialorder %v2631_v3, 8.507059e+37 }
0x133a   : > { %v4621_v58 = vpop.eup %4620 }
0x133b   : > { %v4623_v60 = vpop.eup %4622  ;;  %v2589_v61 = vadd.f32 1.0, %v4621_v58 }
0x133c   : > { %v4625_v53 = vpop.eup %4624  ;;  %v2638_v62 = vmul.f32 %v4623_v60, %v2591_v51  ;;  %vm2643_vm2 = vweird.f32 %v4623_v60 }
0x133d   : > { %v4627_v42 = vpop.eup %4626  ;;  %4628 = vrcp.f32 %v2589_v61  ;;  %v2623_v1 = vmul.f32 %v4625_v53, %v2590_v47  ;;  %vm2628_vm3 = vweird.f32 %v4625_v53  ;;  %vm2644_vm14 = vmor %vm2642_vm12, %vm2643_vm2  ;;  %v2618_v43 = vand.u32 2147483648, %v2589_v61 }
0x133e   : > { %v2588_v5 = vadd.f32 1.0, %v4627_v42  ;;  %v2639_v6 = vsub.f32 1.0, %v2638_v62  ;;  %vm2629_vm13 = vmor %vm2627_vm15, %vm2628_vm3  ;;  %v2616_v27 = vand.u32 2147483647, %v2589_v61  ;;  %vm2612_vm2 = vweird.f32 %v2589_v61 }
0x133f   : > { %v2624_v8 = vsub.f32 1.0, %v2623_v1  ;;  %v2619_v0 = vor.u32 1.1754944e-38, %v2618_v43 }
0x1340   : > { %4630 = vrcp.f32 %v2588_v5  ;;  %v2640_v48 = vmul.f32 %v4623_v60, %v2639_v6  ;;  %v2603_v32 = vand.u32 2147483648, %v2588_v5  ;;  %v2601_v29 = vand.u32 2147483647, %v2588_v5 }
0x1341   : > { %v2625_v54 = vmul.f32 %v4625_v53, %v2624_v8  ;;  %vm2597_vm15 = vweird.f32 %v2588_v5 }
0x1342   : > { %v2641_v14 = vadd.f32 %v4623_v60, %v2640_v48  ;;  %v2604_v2 = vor.u32 1.1754944e-38, %v2603_v32 }
0x1343   : > { %v4629_v63 = vpop.eup %4628  ;;  %v2626_v16 = vadd.f32 %v4625_v53, %v2625_v54 }
0x1344   : > { %v2645_v55 = vsel %vm2644_vm14, %v4623_v60, %v2641_v14  ;;  %v2608_v18 = vmul.f32 %v4629_v63, %v2589_v61  ;;  %vm2613_vm0 = vweird.f32 %v4629_v63  ;;  %vm2617_vm14 = vcmp.eq.f32.partialorder %v2616_v27, 8.507059e+37  ;;  %v4322_v27 = vld [vmem:[%s6174_s11 + $0x40] sm:$0xff] }
0x1345   : > { %v2650_v57 = vsel %vm2647_vm8, %v2649_v45, %v2645_v55  ;;  %v2630_v44 = vsel %vm2629_vm13, %v4625_v53, %v2626_v16  ;;  %vm2614_vm3 = vmor %vm2612_vm2, %vm2613_vm0  ;;  %vm2602_vm13 = vcmp.eq.f32.partialorder %v2601_v29, 8.507059e+37 }
0x1346   : > { %v4631_v9 = vpop.eup %4630  ;;  %2669 = vperm.xlu0 %4475, %v2650_v57   ;;  %v2635_v22 = vsel %vm2632_vm1, %v2634_v17, %v2630_v44  ;;  %v2609_v23 = vsub.f32 1.0, %v2608_v18  ;;  %v4318_v17 = vld [vmem:[%s6223_s10 + $0x40] sm:$0xff]  ;;  %v4333_v18 = vld [vmem:[%s6176_s13 + $0x28] sm:$0xff] }
0x1347   : > { %2664 = vperm.xlu1 %4477, %v2635_v22   ;;  %v2593_v13 = vmul.f32 %v4631_v9, %v2588_v5  ;;  %vm2598_vm12 = vweird.f32 %v4631_v9  ;;  %v4324_v5 = vld [vmem:[%s6174_s11 + $0x50] sm:$0xff]  ;;  %v4323_v57 = vld [vmem:[%s6174_s11 + $0x48] sm:$0xff]  ;;  %v4332_v44 = vld [vmem:[%s6176_s13 + $0x20] sm:$0xff] }
0x1348   : > { %v2610_v4 = vmul.f32 %v4629_v63, %v2609_v23  ;;  %vm2599_vm8 = vmor %vm2597_vm15, %vm2598_vm12 }
0x1349   : > { %v2594_v15 = vsub.f32 1.0, %v2593_v13 }
0x134a   : > { %v2611_v31 = vadd.f32 %v4629_v63, %v2610_v4 }
0x134b   : > { %v2595_v34 = vmul.f32 %v4631_v9, %v2594_v15 }
0x134c   : > { %v2615_v56 = vsel %vm2614_vm3, %v4629_v63, %v2611_v31 }
0x134d   : > { %v2620_v33 = vsel %vm2617_vm14, %v2619_v0, %v2615_v56  ;;  %v2596_v10 = vadd.f32 %v4631_v9, %v2595_v34 }
0x134e   : > { %2659 = vperm.xlu2 %4476, %v2620_v33  }
0x134f   : > { %v2600_v25 = vsel %vm2599_vm8, %v4631_v9, %v2596_v10 }
0x1350   : > { %v2605_v40 = vsel %vm2602_vm13, %v2604_v2, %v2600_v25 }
0x1351   : > { %2654 = vperm.xlu0 %4475, %v2605_v40  }
0x13a8   : > { %v2660_v46 = vpop.permute.xlu2 %2659 }
0x13a9   : > { %v2673_v49 = vmul.f32 %v2660_v46, %v5582_v38 }
0x13ab   : > { %v5644_v50 = vadd.f32 %v2673_v49, %v5384_v24 }
0x13ad   : > { %v2693_v51 = vsel %vm1006_vm5, %v5644_v50, 0.0 }
0x13ae   : > { %2694 = vadd.xlane.f32.xlu1 %v2693_v51 }
0x13b8   : > { %v2670_v52 = vpop.permute.xlu0 %2669 }
0x13b9   : > { %v2675_v47 = vmul.f32 %v2670_v52, %v5584_v36  ;;  %v2665_v58 = vpop.permute.xlu1 %2664  ;;  %v4320_v36 = vld [vmem:[%s6223_s10 + $0x50] sm:$0xff] }
0x13ba   : > { %v2674_v60 = vmul.f32 %v2665_v58, %v5576_v30 }
0x13bb   : > { %v5651_v61 = vadd.f32 %v2675_v47, %v5391_v35  ;;  %v4325_v35 = vld [vmem:[%s6174_s11 + $0x58] sm:$0xff] }
0x13bc   : > { %v5654_v53 = vadd.f32 %v2674_v60, %v5394_v37  ;;  %v4319_v37 = vld [vmem:[%s6223_s10 + $0x48] sm:$0xff] }
0x13bd   : > { %v2699_v24 = vsel %vm1006_vm5, %v5651_v61, 0.0 }
0x13be   : > { %v2696_v38 = vsel %vm1006_vm5, %v5654_v53, 0.0  ;;  %2700 = vadd.xlane.f32.xlu0 %v2699_v24 }
0x13bf   : > { %2697 = vadd.xlane.f32.xlu2 %v2696_v38 }
0x13c3   : > { %v2655_v30 = vpop.permute.xlu0 %2654 }
0x13c4   : > { %v2672_v62 = vmul.f32 %v2655_v30, %v5574_v28 }
0x13c6   : > { %v5671_v42 = vadd.f32 %v2672_v62, %v5402_v12 }
0x13c7   : > { %2790 = vperm.xlu1 %4477, %v4320_v36  }
0x13c8   : > { %v2690_v1 = vsel %vm1006_vm5, %v5671_v42, 0.0 }
0x13d2   : > { %2819 = vperm.xlu0 %4475, %v4325_v35  }
0x13d7   : > { %2785 = vperm.xlu2 %4476, %v4319_v37  }
0x13fc   : > { %2691 = vadd.xlane.f32.xlu0 %v2690_v1 }
0x1410   : > { %2814 = vperm.xlu0 %4475, %v4324_v5  }
0x1421   : > { %v2695_v6 = vpop.xlane.xlu1 %2694 }
0x1422   : > { %v2703_v7 = vmul.f32 %v2695_v6, %v5046_v39 }
0x1424   : > { %v2707_v59 = vsub.f32 %v5644_v50, %v2703_v7 }
0x1426   : > { %v2711_v8 = vmul.f32 %v2707_v59, %v2707_v59 }
0x1428   : > { %v2717_v28 = vsel %vm1006_vm5, %v2711_v8, 0.0 }
0x1429   : > { %2718 = vadd.xlane.f32.xlu1 %v2717_v28 }
0x1431   : > { %v2701_v12 = vpop.xlane.xlu0 %2700 }
0x1432   : > { %v2705_v48 = vmul.f32 %v2701_v12, %v5046_v39  ;;  %v2698_v11 = vpop.xlane.xlu2 %2697 }
0x1433   : > { %v2704_v54 = vmul.f32 %v2698_v11, %v5046_v39 }
0x1434   : > { %v5684_v3 = vsub.f32 %v5651_v61, %v2705_v48 }
0x1435   : > { %v5687_v14 = vsub.f32 %v5654_v53, %v2704_v54 }
0x1436   : > { %v2713_v63 = vmul.f32 %v5684_v3, %v5684_v3 }
0x1437   : > { %v2712_v45 = vmul.f32 %v5687_v14, %v5687_v14 }
0x1438   : > { %v2723_v16 = vsel %vm1006_vm5, %v2713_v63, 0.0 }
0x1439   : > { %v2720_v55 = vsel %vm1006_vm5, %v2712_v45, 0.0  ;;  %v2791_v15 = vpop.permute.xlu1 %2790 }
0x143a   : > { %2721 = vadd.xlane.f32.xlu2 %v2720_v55  ;;  %2724 = vadd.xlane.f32.xlu0 %v2723_v16  ;;  %v2786_v34 = vpop.permute.xlu2 %2785 }
0x1442   : > { %2780 = vperm.xlu1 %4477, %v4318_v17  }
0x1444   : > { %v5707_v9 = vpop.permute.xlu0 %2819 }
0x144a   : > { %2863 = vperm.xlu1 %4477, %v4333_v18  }
0x1452   : > { %2809 = vperm.xlu2 %4476, %v4323_v57  }
0x145a   : > { %2858 = vperm.xlu2 %4476, %v4332_v44  }
0x146f   : > { %v2692_v22 = vpop.xlane.xlu0 %2691 }
0x1470   : > { %v2702_v23 = vmul.f32 %v2692_v22, %v5046_v39 }
0x1472   : > { %v5711_v43 = vsub.f32 %v5671_v42, %v2702_v23 }
0x1474   : > { %v2710_v13 = vmul.f32 %v5711_v43, %v5711_v43 }
0x1476   : > { %v2714_v4 = vsel %vm1006_vm5, %v2710_v13, 0.0 }
0x1477   : > { %2715 = vadd.xlane.f32.xlu0 %v2714_v4 }
0x1482   : > { %v2815_v29 = vpop.permute.xlu0 %2814 }
0x148b   : > { %2804 = vperm.xlu0 %4475, %v4322_v27  }
0x149c   : > { %v2719_v31 = vpop.xlane.xlu1 %2718 }
0x149d   : > { %v2727_v32 = vmul.f32 %v2719_v31, %v5046_v39 }
0x149f   : > { %v2731_v0 = vadd.f32 1e-06, %v2727_v32 }
0x14a1   : > { %4632 = vrsqrt.f32 %v2731_v0  ;;  %vm2750_vm0 = vweird.f32 %v2731_v0 }
0x14a7   : > { %v4633_v56 = vpop.eup %4632 }
0x14a8   : > { %v2745_v33 = vmul.f32 %v4633_v56, %v2731_v0  ;;  %vm2751_vm1 = vweird.f32 %v4633_v56 }
0x14a9   : > { %vm2752_vm2 = vmor %vm2750_vm0, %vm2751_vm1 }
0x14aa   : > { %v2746_v10 = vmul.f32 %v4633_v56, %v2745_v33 }
0x14ac   : > { %v2747_v2 = vmul.f32 0.5, %v2746_v10 }
0x14ad   : > { %v2722_v25 = vpop.xlane.xlu2 %2721  ;;  %v2725_v40 = vpop.xlane.xlu0 %2724 }
0x14ae   : > { %v2748_v46 = vsub.f32 1.5, %v2747_v2  ;;  %v2728_v49 = vmul.f32 %v2722_v25, %v5046_v39  ;;  %v2729_v51 = vmul.f32 %v2725_v40, %v5046_v39 }
0x14b0   : > { %v2732_v52 = vadd.f32 1e-06, %v2728_v49  ;;  %v2733_v47 = vadd.f32 1e-06, %v2729_v51  ;;  %v2749_v58 = vmul.f32 %v4633_v56, %v2748_v46 }
0x14b2   : > { %4634 = vrsqrt.f32 %v2732_v52  ;;  %v2753_v60 = vsel %vm2752_vm2, %v4633_v56, %v2749_v58  ;;  %vm2760_vm14 = vweird.f32 %v2732_v52  ;;  %vm2770_vm8 = vweird.f32 %v2733_v47 }
0x14b3   : > { %4636 = vrsqrt.f32 %v2733_v47  ;;  %v2775_v35 = vmul.f32 %v2753_v60, %v2707_v59 }
0x14b5   : > { %v2799_v5 = vmul.f32 %v2786_v34, %v2775_v35  ;;  %v2810_v28 = vpop.permute.xlu2 %2809 }
0x14b7   : > { %v2823_v48 = vadd.f32 %v2810_v28, %v2799_v5 }
0x14b8   : > { %v4635_v24 = vpop.eup %4634 }
0x14b9   : > { %v4637_v38 = vpop.eup %4636  ;;  %v2755_v36 = vmul.f32 %v4635_v24, %v2732_v52  ;;  %vm2761_vm3 = vweird.f32 %v4635_v24  ;;  %v2831_v16 = vmin.f32 %v2823_v48, 0.0  ;;  %vm2827_vm2 = vcmp.gt.f32.partialorder %v2823_v48, 0.0  ;;  %v2781_v52 = vpop.permute.xlu1 %2780 }
0x14ba   : > { %v2765_v37 = vmul.f32 %v4637_v38, %v2733_v47  ;;  %vm2771_vm12 = vweird.f32 %v4637_v38  ;;  %vm2762_vm15 = vmor %vm2760_vm14, %vm2761_vm3 }
0x14bb   : > { %v2756_v30 = vmul.f32 %v4635_v24, %v2755_v36  ;;  %vm2772_vm13 = vmor %vm2770_vm8, %vm2771_vm12  ;;  %v2836_v57 = vmul.f32 1.442695, %v2831_v16 }
0x14bc   : > { %v2766_v62 = vmul.f32 %v4637_v38, %v2765_v37  ;;  %v4330_v37 = vld [vmem:[%s6175_s12 + $0x20] sm:$0xff] }
0x14bd   : > { %v2757_v1 = vmul.f32 0.5, %v2756_v30  ;;  %4638 = vpow2.f32 %v2836_v57 }
0x14be   : > { %v2767_v6 = vmul.f32 0.5, %v2766_v62  ;;  %v2859_v62 = vpop.permute.xlu2 %2858 }
0x14bf   : > { %v2758_v7 = vsub.f32 1.5, %v2757_v1 }
0x14c0   : > { %v2768_v8 = vsub.f32 1.5, %v2767_v6 }
0x14c1   : > { %v2759_v12 = vmul.f32 %v4635_v24, %v2758_v7  ;;  %v2864_v7 = vpop.permute.xlu1 %2863 }
0x14c2   : > { %v2769_v11 = vmul.f32 %v4637_v38, %v2768_v8 }
0x14c3   : > { %v2763_v54 = vsel %vm2762_vm15, %v4635_v24, %v2759_v12  ;;  %v4639_v27 = vpop.eup %4638 }
0x14c4   : > { %v2776_v59 = vmul.f32 %v2763_v54, %v5687_v14  ;;  %v2773_v63 = vsel %vm2772_vm13, %v4637_v38, %v2769_v11  ;;  %v4327_v0 = vadd.f32 -1.0, %v4639_v27  ;;  %v4338_v11 = vld [vmem:[%s6178_s15 + $0x20] sm:$0xff] }
0x14c5   : > { %v2777_v45 = vmul.f32 %v2773_v63, %v5684_v3 }
0x14c6   : > { %v2800_v55 = vmul.f32 %v2791_v15, %v2776_v59 }
0x14c7   : > { %v2801_v17 = vmul.f32 %v5640_v41, %v2777_v45 }
0x14c8   : > { %v2824_v18 = vadd.f32 %v2815_v29, %v2800_v55 }
0x14c9   : > { %v2825_v44 = vadd.f32 %v5707_v9, %v2801_v17  ;;  %v2847_v9 = vsel %vm2827_vm2, %v2823_v48, %v4327_v0  ;;  %v4337_v48 = vld [vmem:[%s6177_s14 + $0x28] sm:$0xff] }
0x14ca   : > { %v2832_v22 = vmin.f32 %v2824_v18, 0.0  ;;  %vm2828_vm0 = vcmp.gt.f32.partialorder %v2824_v18, 0.0 }
0x14cb   : > { %v2833_v23 = vmin.f32 %v2825_v44, 0.0  ;;  %vm2829_vm1 = vcmp.gt.f32.partialorder %v2825_v44, 0.0 }
0x14cc   : > { %v2838_v13 = vmul.f32 1.442695, %v2832_v22  ;;  %v4339_v22 = vld [vmem:[%s6178_s15 + $0x28] sm:$0xff] }
0x14cd   : > { %v2840_v4 = vmul.f32 1.442695, %v2833_v23  ;;  %v4336_v23 = vld [vmem:[%s6177_s14 + $0x20] sm:$0xff] }
0x14ce   : > { %4640 = vpow2.f32 %v2838_v13 }
0x14cf   : > { %4642 = vpow2.f32 %v2840_v4 }
0x14d4   : > { %v4641_v14 = vpop.eup %4640 }
0x14d5   : > { %v4643_v31 = vpop.eup %4642  ;;  %v4328_v3 = vadd.f32 -1.0, %v4641_v14 }
0x14d6   : > { %v4329_v32 = vadd.f32 -1.0, %v4643_v31 }
0x14d7   : > { %v2848_v41 = vsel %vm2828_vm0, %v2824_v18, %v4328_v3 }
0x14d8   : > { %v2849_v15 = vsel %vm2829_vm1, %v2825_v44, %v4329_v32 }
0x14d9   : > { %2884 = vmatpush.msra.mxu3 %v2849_v15 }
0x14db   : > { %2885 = vmatpush.msra.mxu3 %v2848_v41 }
0x14dd   : > { %2886 = vmatpush.msra.mxu3 %v2847_v9 }
0x14ea   : > { %v2716_v34 = vpop.xlane.xlu0 %2715 }
0x14eb   : > { %v2726_v29 = vmul.f32 %v2716_v34, %v5046_v39 }
0x14ed   : > { %v2730_v56 = vadd.f32 1e-06, %v2726_v29 }
0x14ef   : > { %4644 = vrsqrt.f32 %v2730_v56  ;;  %vm2740_vm12 = vweird.f32 %v2730_v56 }
0x14f5   : > { %v4645_v33 = vpop.eup %4644 }
0x14f6   : > { %v2735_v10 = vmul.f32 %v4645_v33, %v2730_v56  ;;  %vm2741_vm3 = vweird.f32 %v4645_v33 }
0x14f7   : > { %vm2742_vm14 = vmor %vm2740_vm12, %vm2741_vm3 }
0x14f8   : > { %v2736_v2 = vmul.f32 %v4645_v33, %v2735_v10 }
0x14fa   : > { %v2737_v25 = vmul.f32 0.5, %v2736_v2 }
0x14fc   : > { %v2738_v40 = vsub.f32 1.5, %v2737_v25 }
0x14fd   : > { %v2805_v58 = vpop.permute.xlu0 %2804 }
0x14fe   : > { %v2739_v46 = vmul.f32 %v4645_v33, %v2738_v40 }
0x1500   : > { %v2743_v49 = vsel %vm2742_vm14, %v4645_v33, %v2739_v46 }
0x1501   : > { %v2774_v51 = vmul.f32 %v2743_v49, %v5711_v43  ;;  %v4331_v43 = vld [vmem:[%s6175_s12 + $0x28] sm:$0xff] }
0x1503   : > { %v2798_v47 = vmul.f32 %v2781_v52, %v2774_v51 }
0x1505   : > { %v2822_v60 = vadd.f32 %v2805_v58, %v2798_v47 }
0x1507   : > { %v2830_v24 = vmin.f32 %v2822_v60, 0.0  ;;  %vm2826_vm15 = vcmp.gt.f32.partialorder %v2822_v60, 0.0 }
0x1509   : > { %v2834_v38 = vmul.f32 1.442695, %v2830_v24 }
0x150b   : > { %4646 = vpow2.f32 %v2834_v38 }
0x1511   : > { %v4647_v36 = vpop.eup %4646 }
0x1512   : > { %v4326_v35 = vadd.f32 -1.0, %v4647_v36 }
0x1514   : > { %v2846_v30 = vsel %vm2826_vm15, %v2822_v60, %v4326_v35  ;;  %vm2989_vm15 = vcmask 31744  }
0x1515   : > { %2887 = vmatpush.msra.mxu3 %v2846_v30 }
0x1516   : > { %4334 = vmatmul.msk.f32.vlgmr.msra.gmra.mxu3 %vm1202_vm9, %v4330_v37 }
0x151e   : > { %4335 = vmatmul.msk.f32.gmra.mxu3 %vm1202_vm9, %v4331_v43 }
0x1599   : > { %v2889_v1 = vpop.f32.mrf.mxu3 }
0x159a   : > { %v2890_v5 = vadd.f32 %v2889_v1, %v2859_v62 }
0x159c   : > { %v2901_v6 = vsel %vm1006_vm5, %v2890_v5, 0.0 }
0x159d   : > { %2902 = vadd.xlane.f32.xlu1 %v2901_v6 }
0x15a1   : > { %v2892_v8 = vpop.f32.mrf.mxu3 }
0x15a2   : > { %v2893_v28 = vadd.f32 %v2892_v8, %v2864_v7 }
0x15a4   : > { %v2904_v12 = vsel %vm1006_vm5, %v2893_v28, 0.0 }
0x15a5   : > { %2905 = vadd.xlane.f32.xlu0 %v2904_v12 }
0x15b6   : > { %2952 = vperm.xlu1 %4477, %v4337_v48  }
0x15be   : > { %2959 = vperm.xlu1 %4477, %v4338_v11  }
0x1610   : > { %v2903_v54 = vpop.xlane.xlu1 %2902 }
0x1611   : > { %v2907_v59 = vmul.f32 %v2903_v54, %v5046_v39 }
0x1613   : > { %v2909_v63 = vsub.f32 %v2890_v5, %v2907_v59 }
0x1615   : > { %v2911_v45 = vmul.f32 %v2909_v63, %v2909_v63 }
0x1617   : > { %v2913_v16 = vsel %vm1006_vm5, %v2911_v45, 0.0 }
0x1618   : > { %v2906_v55 = vpop.xlane.xlu0 %2905  ;;  %2914 = vadd.xlane.f32.xlu0 %v2913_v16 }
0x1619   : > { %v2908_v17 = vmul.f32 %v2906_v55, %v5046_v39  ;;  %v4344_v55 = vld [vmem:[%s6180_s17 + $0x20] sm:$0xff] }
0x161b   : > { %v2910_v18 = vsub.f32 %v2893_v28, %v2908_v17  ;;  %v4345_v28 = vld [vmem:[%s6180_s17 + $0x28] sm:$0xff] }
0x161d   : > { %v2912_v57 = vmul.f32 %v2910_v18, %v2910_v18 }
0x161f   : > { %v2916_v44 = vsel %vm1006_vm5, %v2912_v57, 0.0 }
0x1620   : > { %2917 = vadd.xlane.f32.xlu2 %v2916_v44 }
0x1628   : > { %v2953_v41 = vpop.permute.xlu1 %2952 }
0x162c   : > { %2964 = vperm.xlu0 %4475, %v4339_v22  }
0x1630   : > { %v2960_v51 = vpop.permute.xlu1 %2959 }
0x1638   : > { %2947 = vperm.xlu2 %4476, %v4336_v23  }
0x168b   : > { %v2915_v13 = vpop.xlane.xlu0 %2914 }
0x168c   : > { %v2919_v4 = vmul.f32 %v2915_v13, %v5046_v39  ;;  %v4342_v13 = vld [vmem:[%s6179_s16 + $0x20] sm:$0xff] }
0x168e   : > { %v2921_v27 = vadd.f32 1e-06, %v2919_v4  ;;  %v4343_v4 = vld [vmem:[%s6179_s16 + $0x28] sm:$0xff] }
0x1690   : > { %4648 = vrsqrt.f32 %v2921_v27  ;;  %vm2929_vm13 = vweird.f32 %v2921_v27 }
0x1693   : > { %v2918_v14 = vpop.xlane.xlu2 %2917 }
0x1694   : > { %v2920_v31 = vmul.f32 %v2918_v14, %v5046_v39 }
0x1696   : > { %v4649_v32 = vpop.eup %4648  ;;  %v2922_v3 = vadd.f32 1e-06, %v2920_v31 }
0x1697   : > { %v2924_v15 = vmul.f32 %v4649_v32, %v2921_v27  ;;  %vm2930_vm8 = vweird.f32 %v4649_v32 }
0x1698   : > { %4650 = vrsqrt.f32 %v2922_v3  ;;  %vm2931_vm1 = vmor %vm2929_vm13, %vm2930_vm8  ;;  %vm2939_vm2 = vweird.f32 %v2922_v3  ;;  %vm2992_vm8 = vcmask 162816  }
0x1699   : > { %v2925_v0 = vmul.f32 %v4649_v32, %v2924_v15 }
0x169b   : > { %v2926_v9 = vmul.f32 0.5, %v2925_v0  ;;  %v2948_v46 = vpop.permute.xlu2 %2947 }
0x169d   : > { %v2927_v34 = vsub.f32 1.5, %v2926_v9  ;;  %v4351_v9 = vld [vmem:[%s6181_s18 + $0x28] sm:$0xff] }
0x169e   : > { %v4651_v29 = vpop.eup %4650  ;;  %v2965_v37 = vpop.permute.xlu0 %2964 }
0x169f   : > { %v2934_v56 = vmul.f32 %v4651_v29, %v2922_v3  ;;  %v2928_v33 = vmul.f32 %v4649_v32, %v2927_v34  ;;  %vm2940_vm0 = vweird.f32 %v4651_v29  ;;  %v4352_v34 = vld [vmem:[%s6182_s19 + $0x20] sm:$0xff] }
0x16a0   : > { %vm2941_vm3 = vmor %vm2939_vm2, %vm2940_vm0 }
0x16a1   : > { %v2935_v10 = vmul.f32 %v4651_v29, %v2934_v56  ;;  %v2932_v2 = vsel %vm2931_vm1, %v4649_v32, %v2928_v33  ;;  %v4363_v56 = vld [vmem:[%s6184_s21 + $0x58] sm:$0xff] }
0x16a2   : > { %v2943_v25 = vmul.f32 %v2932_v2, %v2909_v63 }
0x16a3   : > { %v2936_v40 = vmul.f32 0.5, %v2935_v10 }
0x16a4   : > { %v2955_v49 = vmul.f32 %v2948_v46, %v2943_v25 }
0x16a5   : > { %v2937_v52 = vsub.f32 1.5, %v2936_v40 }
0x16a6   : > { %v2967_v47 = vadd.f32 %v2960_v51, %v2955_v49 }
0x16a7   : > { %v2938_v58 = vmul.f32 %v4651_v29, %v2937_v52 }
0x16a8   : > { %v2971_v60 = vmin.f32 %v2967_v47, 0.0  ;;  %vm2969_vm12 = vcmp.gt.f32.partialorder %v2967_v47, 0.0 }
0x16a9   : > { %v2942_v24 = vsel %vm2941_vm3, %v4651_v29, %v2938_v58  ;;  %v4360_v29 = vld [vmem:[%s6184_s21 + $0x40] sm:$0xff]  ;;  %v4353_v58 = vld [vmem:[%s6182_s19 + $0x28] sm:$0xff] }
0x16aa   : > { %v2973_v38 = vmul.f32 1.442695, %v2971_v60  ;;  %v2944_v36 = vmul.f32 %v2942_v24, %v2910_v18  ;;  %v4362_v60 = vld [vmem:[%s6184_s21 + $0x50] sm:$0xff]  ;;  %v4350_v24 = vld [vmem:[%s6181_s18 + $0x20] sm:$0xff] }
0x16ac   : > { %4652 = vpow2.f32 %v2973_v38  ;;  %v2956_v35 = vmul.f32 %v2953_v41, %v2944_v36  ;;  %v4361_v38 = vld [vmem:[%s6184_s21 + $0x48] sm:$0xff] }
0x16ae   : > { %v2968_v30 = vadd.f32 %v2965_v37, %v2956_v35 }
0x16b0   : > { %v2972_v43 = vmin.f32 %v2968_v30, 0.0  ;;  %vm2970_vm14 = vcmp.gt.f32.partialorder %v2968_v30, 0.0 }
0x16b2   : > { %v4653_v62 = vpop.eup %4652  ;;  %v2975_v1 = vmul.f32 1.442695, %v2972_v43 }
0x16b3   : > { %v4340_v5 = vadd.f32 -1.0, %v4653_v62 }
0x16b4   : > { %4654 = vpow2.f32 %v2975_v1 }
0x16b5   : > { %v2979_v6 = vsel %vm2969_vm12, %v2967_v47, %v4340_v5 }
0x16b6   : > { %2983 = vrot.lane.b32.xlu2 %v2979_v6, %s4751_s2 }
0x16ba   : > { %v4655_v7 = vpop.eup %4654 }
0x16bb   : > { %v4341_v8 = vadd.f32 -1.0, %v4655_v7 }
0x16bd   : > { %v2980_v12 = vsel %vm2970_vm14, %v2968_v30, %v4341_v8 }
0x16be   : > { %2985 = vrot.lane.b32.xlu0 %v2980_v12, %s4751_s2  ;;  %3022 = vperm.xlu2 %4476, %v4345_v28   ;;  %s4453_s2 = sshll.u32 %s6235_s3, 5 }
0x16bf   : > { %s6144_s4 = scalar_lea.vmem %s6189_s26, %s4453_s2 }
0x1710   : > { %v2984_v48 = vpop.permute.xlu2 %2983 }
0x1711   : > { %v2990_v11 = vsel %vm2989_vm15, 0.0, %v2984_v48 }
0x1712   : > { %v2993_v63 = vsel %vm2992_vm8, %v2990_v11, 0.0 }
0x1718   : > { %v3023_v3 = vpop.permute.xlu2 %3022 }
0x1730   : > { %v2986_v54 = vpop.permute.xlu0 %2985 }
0x1731   : > { %v2991_v59 = vsel %vm2989_vm15, 0.0, %v2986_v54 }
0x1732   : > { %v2994_v45 = vsel %vm2992_vm8, %v2991_v59, 0.0 }
0x1733   : > { %v4503_v16 = vpack.i.bf16 %v2993_v63, %v2994_v45 }
0x1735   : > { %4504 = vrot.lane.b32.xlu0 %v4503_v16, %s6229_s6  ;;  %4499 = vrot.lane.b32.xlu1 %v4503_v16, %s4752_s0 }
0x173d   : > { %3017 = vperm.xlu1 %4477, %v4344_v55  }
0x17a7   : > { %v4500_v17 = vpop.permute.xlu1 %4499  ;;  %v4505_v57 = vpop.permute.xlu0 %4504 }
0x17a8   : > { %v4501_v18 = vunpack.i.l.bf16 %v4500_v17  ;;  %v4502_v44 = vunpack.i.h.bf16 %v4500_v17  ;;  %v4506_v22 = vunpack.i.l.bf16 %v4505_v57  ;;  %v4507_v23 = vunpack.i.h.bf16 %v4505_v57 }
0x17aa   : > { %3041 = vmatpush.msrb.mxu0 %v4501_v18 }
0x17ac   : > { %3042 = vmatpush.msrb.mxu0 %v4502_v44 }
0x17ae   : > { %3043 = vmatpush.msrb.mxu0 %v4506_v22 }
0x17af   : > { %v3018_v27 = vpop.permute.xlu1 %3017 }
0x17b0   : > { %3044 = vmatpush.msrb.mxu0 %v4507_v23 }
0x17b2   : > { %4346 = vmatpush.msk.msrb.mxu0 %vm2992_vm8, %v2991_v59 }
0x17b4   : > { %4347 = vmatpush.msk.msrb.mxu0 %vm2992_vm8, %v2990_v11  ;;  %vm6230_vm8 = vcmask 254976  }
0x17b5   : > { %4348 = vmatmul.msk.f32.vlgmr.msrb.gmra.mxu0 %vm1581_vm10, %v4342_v13 }
0x17bd   : > { %4349 = vmatmul.msk.f32.gmra.mxu0 %vm1581_vm10, %v4343_v4 }
0x1832   : > { %v3048_v14 = vpop.f32.mrf.mxu0 }
0x1833   : > { %v3049_v31 = vadd.f32 %v3048_v14, %v3018_v27 }
0x1835   : > { %v3060_v32 = vsel %vm1006_vm5, %v3049_v31, 0.0 }
0x1836   : > { %3061 = vadd.xlane.f32.xlu2 %v3060_v32 }
0x183a   : > { %v3051_v15 = vpop.f32.mrf.mxu0 }
0x183b   : > { %v3052_v0 = vadd.f32 %v3051_v15, %v3023_v3 }
0x183d   : > { %v3063_v41 = vsel %vm1006_vm5, %v3052_v0, 0.0 }
0x183e   : > { %3064 = vadd.xlane.f32.xlu0 %v3063_v41 }
0x1852   : > { %3111 = vperm.xlu0 %4475, %v4351_v9  }
0x185a   : > { %3118 = vperm.xlu0 %4475, %v4352_v34  }
0x1862   : > { %3152 = vperm.xlu0 %4475, %v4360_v29   ;;  %v4356_v29 = vld [vmem:[%s6183_s20 + $0x40] sm:$0xff] }
0x186a   : > { %3167 = vperm.xlu0 %4475, %v4363_v56  }
0x18a9   : > { %v3062_v33 = vpop.xlane.xlu2 %3061 }
0x18aa   : > { %v3066_v10 = vmul.f32 %v3062_v33, %v5046_v39  ;;  %v4357_v33 = vld [vmem:[%s6183_s20 + $0x48] sm:$0xff] }
0x18ac   : > { %v3068_v2 = vsub.f32 %v3049_v31, %v3066_v10  ;;  %v4358_v10 = vld [vmem:[%s6183_s20 + $0x50] sm:$0xff] }
0x18ae   : > { %v3070_v25 = vmul.f32 %v3068_v2, %v3068_v2 }
0x18b0   : > { %v3072_v40 = vsel %vm1006_vm5, %v3070_v25, 0.0 }
0x18b1   : > { %v3065_v46 = vpop.xlane.xlu0 %3064  ;;  %3073 = vadd.xlane.f32.xlu2 %v3072_v40 }
0x18b2   : > { %v3067_v49 = vmul.f32 %v3065_v46, %v5046_v39 }
0x18b4   : > { %v3069_v51 = vsub.f32 %v3052_v0, %v3067_v49 }
0x18b6   : > { %v3071_v52 = vmul.f32 %v3069_v51, %v3069_v51 }
0x18b8   : > { %v3075_v47 = vsel %vm1006_vm5, %v3071_v52, 0.0 }
0x18b9   : > { %3076 = vadd.xlane.f32.xlu1 %v3075_v47 }
0x18c4   : > { %v3112_v11 = vpop.permute.xlu0 %3111 }
0x18c9   : > { %3123 = vperm.xlu2 %4476, %v4353_v58  }
0x18cc   : > { %v3119_v23 = vpop.permute.xlu0 %3118 }
0x18d1   : > { %3162 = vperm.xlu2 %4476, %v4362_v60  }
0x18d2   : > { %3106 = vperm.xlu1 %4477, %v4350_v24  }
0x18d4   : > { %v3153_v25 = vpop.permute.xlu0 %3152 }
0x18da   : > { %3157 = vperm.xlu1 %4477, %v4361_v38  }
0x1924   : > { %v3074_v36 = vpop.xlane.xlu2 %3073 }
0x1925   : > { %v3078_v35 = vmul.f32 %v3074_v36, %v5046_v39 }
0x1927   : > { %v3080_v37 = vadd.f32 1e-06, %v3078_v35  ;;  %v3168_v35 = vpop.permute.xlu0 %3167 }
0x1929   : > { %4656 = vrsqrt.f32 %v3080_v37  ;;  %vm3088_vm1 = vweird.f32 %v3080_v37 }
0x192c   : > { %v3077_v30 = vpop.xlane.xlu1 %3076  ;;  %v3124_v13 = vpop.permute.xlu2 %3123 }
0x192d   : > { %v3079_v43 = vmul.f32 %v3077_v30, %v5046_v39 }
0x192f   : > { %v4657_v62 = vpop.eup %4656  ;;  %v3081_v1 = vadd.f32 1e-06, %v3079_v43 }
0x1930   : > { %v3083_v5 = vmul.f32 %v4657_v62, %v3080_v37  ;;  %vm3089_vm13 = vweird.f32 %v4657_v62 }
0x1931   : > { %4658 = vrsqrt.f32 %v3081_v1  ;;  %vm3090_vm2 = vmor %vm3088_vm1, %vm3089_vm13  ;;  %vm3098_vm3 = vweird.f32 %v3081_v1 }
0x1932   : > { %v3084_v6 = vmul.f32 %v4657_v62, %v3083_v5 }
0x1934   : > { %v3085_v7 = vmul.f32 0.5, %v3084_v6  ;;  %v3163_v60 = vpop.permute.xlu2 %3162 }
0x1936   : > { %v3086_v28 = vsub.f32 1.5, %v3085_v7 }
0x1937   : > { %v4659_v8 = vpop.eup %4658 }
0x1938   : > { %v3093_v12 = vmul.f32 %v4659_v8, %v3081_v1  ;;  %v3087_v59 = vmul.f32 %v4657_v62, %v3086_v28  ;;  %vm3099_vm0 = vweird.f32 %v4659_v8 }
0x1939   : > { %vm3100_vm12 = vmor %vm3098_vm3, %vm3099_vm0 }
0x193a   : > { %v3094_v48 = vmul.f32 %v4659_v8, %v3093_v12  ;;  %v3091_v16 = vsel %vm3090_vm2, %v4657_v62, %v3087_v59 }
0x193b   : > { %v3102_v18 = vmul.f32 %v3091_v16, %v3068_v2  ;;  %v4359_v2 = vld [vmem:[%s6183_s20 + $0x58] sm:$0xff] }
0x193c   : > { %v3095_v54 = vmul.f32 0.5, %v3094_v48 }
0x193e   : > { %v3096_v63 = vsub.f32 1.5, %v3095_v54 }
0x1940   : > { %v3097_v45 = vmul.f32 %v4659_v8, %v3096_v63 }
0x1942   : > { %v3101_v55 = vsel %vm3100_vm12, %v4659_v8, %v3097_v45  ;;  %v4368_v45 = vld [vmem:[%s6185_s22 + $0x4] sm:$0x3] }
0x1943   : > { %v3103_v17 = vmul.f32 %v3101_v55, %v3069_v51 }
0x1944   : > { %v3107_v57 = vpop.permute.xlu1 %3106 }
0x1945   : > { %v3115_v44 = vmul.f32 %v3112_v11, %v3103_v17  ;;  %v3114_v22 = vmul.f32 %v3107_v57, %v3102_v18  ;;  %v4369_v57 = vld [vmem:[%s6186_s23 + $0x4] sm:$0x3] }
0x1947   : > { %v3127_v4 = vadd.f32 %v3124_v13, %v3115_v44  ;;  %v3126_v27 = vadd.f32 %v3119_v23, %v3114_v22  ;;  %v4384_v13 = vld [vmem:[%s6223_s10 + $0x70] sm:$0xff] }
0x1949   : > { %v3131_v14 = vmin.f32 %v3127_v4, 0.0  ;;  %v3130_v31 = vmin.f32 %v3126_v27, 0.0  ;;  %vm3129_vm14 = vcmp.gt.f32.partialorder %v3127_v4, 0.0  ;;  %vm3128_vm15 = vcmp.gt.f32.partialorder %v3126_v27, 0.0 }
0x194b   : > { %v3134_v32 = vmul.f32 1.442695, %v3131_v14  ;;  %v3132_v3 = vmul.f32 1.442695, %v3130_v31  ;;  %v4372_v14 = vld [vmem:[%s6187_s24 + $0x50] sm:$0xff] }
0x194c   : > { %v3158_v51 = vpop.permute.xlu1 %3157 }
0x194d   : > { %4660 = vpow2.f32 %v3134_v32 }
0x194e   : > { %4662 = vpow2.f32 %v3132_v3 }
0x1953   : > { %v4661_v15 = vpop.eup %4660 }
0x1954   : > { %v4663_v0 = vpop.eup %4662  ;;  %v4355_v41 = vadd.f32 -1.0, %v4661_v15 }
0x1955   : > { %v4354_v9 = vadd.f32 -1.0, %v4663_v0 }
0x1956   : > { %v3139_v34 = vsel %vm3129_vm14, %v3127_v4, %v4355_v41  ;;  %v4371_v41 = vld [vmem:[%s6187_s24 + $0x48] sm:$0xff] }
0x1957   : > { %3196 = vmatpush.msrb.mxu1 %v3139_v34  ;;  %v3138_v56 = vsel %vm3128_vm15, %v3126_v27, %v4354_v9  ;;  %v4373_v27 = vld [vmem:[%s6187_s24 + $0x58] sm:$0xff]  ;;  %v4370_v9 = vld [vmem:[%s6187_s24 + $0x40] sm:$0xff] }
0x1959   : > { %3197 = vmatpush.msrb.mxu1 %v3138_v56 }
0x195a   : > { %4364 = vmatmul.msk.f32.vlgmr.msrb.gmra.mxu1 %vm1006_vm5, %v4356_v29 }
0x1962   : > { %4365 = vmatmul.msk.f32.gmra.mxu1 %vm1006_vm5, %v4357_v33 }
0x196a   : > { %4366 = vmatmul.msk.f32.gmra.mxu1 %vm1006_vm5, %v4358_v10  ;;  %v4385_v10 = vld [vmem:[%s6223_s10 + $0x78] sm:$0xff] }
0x1972   : > { %4367 = vmatmul.msk.f32.gmra.mxu1 %vm1006_vm5, %v4359_v2  ;;  %v4377_v2 = vld [vmem:[%s6188_s25 + $0x58] sm:$0xff] }
0x19d7   : > { %v3199_v40 = vpop.f32.mrf.mxu1 }
0x19d8   : > { %v5824_v46 = vadd.f32 %v3199_v40, %v3153_v25  ;;  %v4376_v25 = vld [vmem:[%s6188_s25 + $0x50] sm:$0xff] }
0x19da   : > { %v3211_v49 = vsel %vm1006_vm5, %v5824_v46, 0.0 }
0x19db   : > { %3212 = vadd.xlane.f32.xlu1 %v3211_v49 }
0x19df   : > { %v3202_v52 = vpop.f32.mrf.mxu1 }
0x19e0   : > { %v5828_v47 = vadd.f32 %v3202_v52, %v3158_v51 }
0x19e2   : > { %v3214_v58 = vsel %vm1006_vm5, %v5828_v47, 0.0 }
0x19e3   : > { %3215 = vadd.xlane.f32.xlu2 %v3214_v58 }
0x19e7   : > { %v3205_v24 = vpop.f32.mrf.mxu1 }
0x19e8   : > { %v5832_v38 = vadd.f32 %v3205_v24, %v3163_v60 }
0x19ea   : > { %v3217_v36 = vsel %vm1006_vm5, %v5832_v38, 0.0 }
0x19eb   : > { %3218 = vadd.xlane.f32.xlu0 %v3217_v36 }
0x19ef   : > { %v3208_v37 = vpop.f32.mrf.mxu1 }
0x19f0   : > { %v5836_v30 = vadd.f32 %v3208_v37, %v3168_v35  ;;  %v4375_v35 = vld [vmem:[%s6188_s25 + $0x48] sm:$0xff]  ;;  %v4374_v37 = vld [vmem:[%s6188_s25 + $0x40] sm:$0xff] }
0x19f2   : > { %v3220_v43 = vsel %vm1006_vm5, %v5836_v30, 0.0 }
0x19f3   : > { %3221 = vadd.xlane.f32.xlu1 %v3220_v43 }
0x1a4e   : > { %v3213_v62 = vpop.xlane.xlu1 %3212 }
0x1a4f   : > { %v3223_v8 = vmul.f32 %v3213_v62, %v5046_v39 }
0x1a51   : > { %v3233_v11 = vperm.slane %v3223_v8, %v5319_v19 }
0x1a56   : > { %v3216_v1 = vpop.xlane.xlu2 %3215 }
0x1a57   : > { %v3224_v6 = vmul.f32 %v3216_v1, %v5046_v39 }
0x1a59   : > { %v3234_v28 = vperm.slane %v3224_v6, %v5322_v20 }
0x1a5b   : > { %v3235_v59 = vsel %vm1790_vm4, %v3234_v28, %v3233_v11 }
0x1a5e   : > { %v3219_v5 = vpop.xlane.xlu0 %3218 }
0x1a5f   : > { %v3225_v7 = vmul.f32 %v3219_v5, %v5046_v39 }
0x1a61   : > { %v3236_v12 = vperm.slane %v3225_v7, %v5326_v21 }
0x1a63   : > { %v3237_v16 = vsel %vm1794_vm6, %v3236_v12, %v3235_v59 }
0x1a66   : > { %v3222_v48 = vpop.xlane.xlu1 %3221 }
0x1a67   : > { %v3226_v54 = vmul.f32 %v3222_v48, %v5046_v39 }
0x1a69   : > { %v3238_v63 = vperm.slane %v3226_v54, %v5332_v26 }
0x1a6b   : > { %v3239_v55 = vsel %vm1798_vm7, %v3238_v63, %v3237_v16 }
0x1a6c   : > { %v3241_v17 = vmul.f32 %v4368_v45, %v3239_v55 }
0x1a6e   : > { %v3242_v18 = vsel %vm6230_vm8, %v3241_v17, 0.0 }
0x1a6f   : > { %3243 = vadd.xlane.f32.xlu2 %v3242_v18 }
0x1ae2   : > { %v3244_v44 = vpop.xlane.xlu2 %3243 }
0x1ae3   : > { %v3247_v22 = vadd.f32 %v4369_v57, %v3244_v44 }
0x1ae5   : > { %v3248_v23 = vmax.f32 %v3247_v22, 0.0 }
0x1ae7   : > { %3256 = vperm.xlu0 %4475, %v3248_v23  }
0x1aef   : > { %3509 = vperm.xlu0 %4475, %v4384_v13  }
0x1b59   : > { %v3257_v4 = vpop.permute.xlu0 %3256 }
0x1b5a   : > { %v3258_v31 = vperm.slane %v3257_v4, %v5319_v19 }
0x1b5c   : > { %v3269_v32 = vmul.f32 %v4373_v27, %v3258_v31  ;;  %v3268_v3 = vmul.f32 %v4372_v14, %v3258_v31  ;;  %v3267_v34 = vmul.f32 %v4371_v41, %v3258_v31  ;;  %v3266_v29 = vmul.f32 %v4370_v9, %v3258_v31 }
0x1b5e   : > { %v3279_v15 = vsel %vm1833_vm11, %v3269_v32, 0.0  ;;  %v3276_v0 = vsel %vm1833_vm11, %v3268_v3, 0.0  ;;  %v3273_v56 = vsel %vm1833_vm11, %v3267_v34, 0.0  ;;  %v3270_v33 = vsel %vm1833_vm11, %v3266_v29, 0.0 }
0x1b5f   : > { %3280 = vadd.xlane.f32.xlu1 %v3279_v15  ;;  %3277 = vadd.xlane.f32.xlu2 %v3276_v0 }
0x1b67   : > { %3274 = vadd.xlane.f32.xlu1 %v3273_v56  ;;  %3271 = vadd.xlane.f32.xlu2 %v3270_v33 }
0x1b80   : > { %3514 = vperm.xlu1 %4477, %v4385_v10  }
0x1bd2   : > { %v3281_v40 = vpop.xlane.xlu1 %3280  ;;  %v3278_v49 = vpop.xlane.xlu2 %3277 }
0x1bd3   : > { %v3290_v51 = vadd.f32 %v4377_v2, %v3281_v40  ;;  %v3289_v52 = vadd.f32 %v4376_v25, %v3278_v49 }
0x1bd5   : > { %v3294_v58 = vmax.f32 %v3290_v51, 0.0  ;;  %v3293_v60 = vmax.f32 %v3289_v52, 0.0 }
0x1bd7   : > { %v4381_v24 = vmul.f32 -1.442695, %v3294_v58  ;;  %v4380_v36 = vmul.f32 -1.442695, %v3293_v60 }
0x1bd9   : > { %4664 = vpow2.f32 %v4381_v24 }
0x1bda   : > { %4666 = vpow2.f32 %v4380_v36  ;;  %v3275_v43 = vpop.xlane.xlu1 %3274  ;;  %v3272_v62 = vpop.xlane.xlu2 %3271 }
0x1bdb   : > { %v3288_v1 = vadd.f32 %v4375_v35, %v3275_v43  ;;  %v3287_v5 = vadd.f32 %v4374_v37, %v3272_v62 }
0x1bdd   : > { %v3292_v6 = vmax.f32 %v3288_v1, 0.0  ;;  %v3291_v7 = vmax.f32 %v3287_v5, 0.0 }
0x1bdf   : > { %v4665_v8 = vpop.eup %4664  ;;  %v4379_v28 = vmul.f32 -1.442695, %v3292_v6  ;;  %v4378_v11 = vmul.f32 -1.442695, %v3291_v7 }
0x1be0   : > { %v4667_v12 = vpop.eup %4666  ;;  %v3310_v48 = vadd.f32 1.0, %v4665_v8 }
0x1be1   : > { %v3309_v54 = vadd.f32 1.0, %v4667_v12  ;;  %4668 = vpow2.f32 %v4379_v28 }
0x1be2   : > { %4670 = vrcp.f32 %v3310_v48  ;;  %v3365_v22 = vand.u32 2147483647, %v3310_v48  ;;  %v3367_v23 = vand.u32 2147483648, %v3310_v48  ;;  %vm3361_vm0 = vweird.f32 %v3310_v48 }
0x1be3   : > { %4672 = vrcp.f32 %v3309_v54  ;;  %v3352_v27 = vand.u32 2147483648, %v3309_v54  ;;  %v3350_v31 = vand.u32 2147483647, %v3309_v54  ;;  %vm3346_vm3 = vweird.f32 %v3309_v54 }
0x1be4   : > { %4674 = vpow2.f32 %v4378_v11  ;;  %v3368_v15 = vor.u32 1.1754944e-38, %v3367_v23  ;;  %vm3366_vm12 = vcmp.eq.f32.partialorder %v3365_v22, 8.507059e+37  ;;  %v5901_v11 = vpop.permute.xlu0 %3509 }
0x1be5   : > { %v3353_v9 = vor.u32 1.1754944e-38, %v3352_v27  ;;  %vm3351_vm15 = vcmp.eq.f32.partialorder %v3350_v31, 8.507059e+37 }
0x1be7   : > { %v4669_v59 = vpop.eup %4668 }
0x1be8   : > { %v4671_v63 = vpop.eup %4670  ;;  %v3308_v45 = vadd.f32 1.0, %v4669_v59 }
0x1be9   : > { %v4673_v16 = vpop.eup %4672  ;;  %v3357_v55 = vmul.f32 %v4671_v63, %v3310_v48  ;;  %vm3362_vm13 = vweird.f32 %v4671_v63 }
0x1bea   : > { %v4675_v17 = vpop.eup %4674  ;;  %4676 = vrcp.f32 %v3308_v45  ;;  %v3342_v18 = vmul.f32 %v4673_v16, %v3309_v54  ;;  %vm3347_vm1 = vweird.f32 %v4673_v16  ;;  %vm3363_vm2 = vmor %vm3361_vm0, %vm3362_vm13  ;;  %v3337_v25 = vand.u32 2147483648, %v3308_v45 }
0x1beb   : > { %v3307_v57 = vadd.f32 1.0, %v4675_v17  ;;  %v3358_v44 = vsub.f32 1.0, %v3357_v55  ;;  %vm3348_vm14 = vmor %vm3346_vm3, %vm3347_vm1  ;;  %v3335_v51 = vand.u32 2147483647, %v3308_v45  ;;  %vm3331_vm13 = vweird.f32 %v3308_v45 }
0x1bec   : > { %v3343_v13 = vsub.f32 1.0, %v3342_v18  ;;  %v3338_v60 = vor.u32 1.1754944e-38, %v3337_v25  ;;  %v4397_v25 = vld [vmem:[%s6176_s13 + $0x38] sm:$0xff] }
0x1bed   : > { %4678 = vrcp.f32 %v3307_v57  ;;  %v3359_v4 = vmul.f32 %v4671_v63, %v3358_v44  ;;  %vm3336_vm1 = vcmp.eq.f32.partialorder %v3335_v51, 8.507059e+37  ;;  %v3322_v43 = vand.u32 2147483648, %v3307_v57 }
0x1bee   : > { %v3344_v14 = vmul.f32 %v4673_v16, %v3343_v13  ;;  %vm3316_vm3 = vweird.f32 %v3307_v57  ;;  %v3320_v62 = vand.u32 2147483647, %v3307_v57 }
0x1bef   : > { %v3360_v32 = vadd.f32 %v4671_v63, %v3359_v4  ;;  %v3323_v5 = vor.u32 1.1754944e-38, %v3322_v43 }
0x1bf0   : > { %v4677_v3 = vpop.eup %4676  ;;  %v3345_v0 = vadd.f32 %v4673_v16, %v3344_v14 }
0x1bf1   : > { %v3364_v41 = vsel %vm3363_vm2, %v4671_v63, %v3360_v32  ;;  %v3327_v34 = vmul.f32 %v4677_v3, %v3308_v45  ;;  %vm3332_vm8 = vweird.f32 %v4677_v3  ;;  %v4386_v32 = vld [vmem:[%s6174_s11 + $0x60] sm:$0xff] }
0x1bf2   : > { %v3369_v29 = vsel %vm3366_vm12, %v3368_v15, %v3364_v41  ;;  %v3349_v56 = vsel %vm3348_vm14, %v4673_v16, %v3345_v0  ;;  %vm3333_vm0 = vmor %vm3331_vm13, %vm3332_vm8  ;;  %vm3321_vm14 = vcmp.eq.f32.partialorder %v3320_v62, 8.507059e+37  ;;  %v5899_v48 = vpop.permute.xlu1 %3514 }
0x1bf3   : > { %v4679_v33 = vpop.eup %4678  ;;  %3388 = vperm.xlu1 %4477, %v3369_v29   ;;  %v3354_v10 = vsel %vm3351_vm15, %v3353_v9, %v3349_v56  ;;  %v3328_v2 = vsub.f32 1.0, %v3327_v34 }
0x1bf4   : > { %3383 = vperm.xlu2 %4476, %v3354_v10   ;;  %v3312_v40 = vmul.f32 %v4679_v33, %v3307_v57  ;;  %vm3317_vm2 = vweird.f32 %v4679_v33 }
0x1bf5   : > { %v3329_v49 = vmul.f32 %v4677_v3, %v3328_v2  ;;  %vm3318_vm12 = vmor %vm3316_vm3, %vm3317_vm2  ;;  %v4382_v2 = vld [vmem:[%s6223_s10 + $0x60] sm:$0xff] }
0x1bf6   : > { %v3313_v52 = vsub.f32 1.0, %v3312_v40  ;;  %v4387_v40 = vld [vmem:[%s6174_s11 + $0x68] sm:$0xff] }
0x1bf7   : > { %v3330_v58 = vadd.f32 %v4677_v3, %v3329_v49  ;;  %v4396_v49 = vld [vmem:[%s6176_s13 + $0x30] sm:$0xff] }
0x1bf8   : > { %v3314_v24 = vmul.f32 %v4679_v33, %v3313_v52 }
0x1bf9   : > { %v3334_v36 = vsel %vm3333_vm0, %v4677_v3, %v3330_v58 }
0x1bfa   : > { %v3339_v35 = vsel %vm3336_vm1, %v3338_v60, %v3334_v36  ;;  %v3315_v37 = vadd.f32 %v4679_v33, %v3314_v24 }
0x1bfb   : > { %3378 = vperm.xlu0 %4475, %v3339_v35  }
0x1bfc   : > { %v3319_v1 = vsel %vm3318_vm12, %v4679_v33, %v3315_v37 }
0x1bfd   : > { %v3324_v6 = vsel %vm3321_vm14, %v3323_v5, %v3319_v1 }
0x1c03   : > { %3373 = vperm.xlu0 %4475, %v3324_v6  }
0x1c4e   : > { %v3384_v7 = vpop.permute.xlu2 %3383 }
0x1c4f   : > { %v3393_v8 = vmul.f32 %v3384_v7, %v5832_v38  ;;  %v4389_v38 = vld [vmem:[%s6174_s11 + $0x78] sm:$0xff] }
0x1c51   : > { %v5895_v28 = vadd.f32 %v3393_v8, %v5654_v53 }
0x1c53   : > { %v3415_v12 = vsel %vm1006_vm5, %v5895_v28, 0.0 }
0x1c54   : > { %3416 = vadd.xlane.f32.xlu2 %v3415_v12 }
0x1c65   : > { %v3389_v54 = vpop.permute.xlu1 %3388 }
0x1c66   : > { %v3394_v59 = vmul.f32 %v3389_v54, %v5836_v30 }
0x1c68   : > { %v5905_v63 = vadd.f32 %v3394_v59, %v5651_v61 }
0x1c6a   : > { %v3418_v53 = vsel %vm1006_vm5, %v5905_v63, 0.0 }
0x1c6b   : > { %3419 = vadd.xlane.f32.xlu0 %v3418_v53 }
0x1c6c   : > { %3538 = vperm.xlu2 %4476, %v4389_v38  }
0x1c6d   : > { %v3379_v45 = vpop.permute.xlu0 %3378 }
0x1c6e   : > { %v3392_v16 = vmul.f32 %v3379_v45, %v5828_v47  ;;  %v4388_v47 = vld [vmem:[%s6174_s11 + $0x70] sm:$0xff] }
0x1c70   : > { %v5914_v55 = vadd.f32 %v3392_v16, %v5644_v50  ;;  %v4383_v50 = vld [vmem:[%s6223_s10 + $0x68] sm:$0xff] }
0x1c72   : > { %v3412_v30 = vsel %vm1006_vm5, %v5914_v55, 0.0 }
0x1c73   : > { %3413 = vadd.xlane.f32.xlu1 %v3412_v30 }
0x1c75   : > { %v3374_v61 = vpop.permute.xlu0 %3373 }
0x1c76   : > { %v3391_v17 = vmul.f32 %v3374_v61, %v5824_v46 }
0x1c78   : > { %v5920_v18 = vadd.f32 %v3391_v17, %v5671_v42 }
0x1c7a   : > { %v3409_v57 = vsel %vm1006_vm5, %v5920_v18, 0.0 }
0x1c7b   : > { %3410 = vadd.xlane.f32.xlu0 %v3409_v57 }
0x1c8c   : > { %3533 = vperm.xlu1 %4477, %v4388_v47  }
0x1c8f   : > { %3504 = vperm.xlu0 %4475, %v4383_v50  }
0x1cc7   : > { %v3417_v44 = vpop.xlane.xlu2 %3416 }
0x1cc8   : > { %v3423_v46 = vmul.f32 %v3417_v44, %v5046_v39 }
0x1cca   : > { %v3427_v42 = vsub.f32 %v5895_v28, %v3423_v46 }
0x1ccc   : > { %v3431_v22 = vmul.f32 %v3427_v42, %v3427_v42 }
0x1cce   : > { %v3439_v23 = vsel %vm1006_vm5, %v3431_v22, 0.0 }
0x1ccf   : > { %3440 = vadd.xlane.f32.xlu1 %v3439_v23  ;;  %v3539_v35 = vpop.permute.xlu2 %3538 }
0x1cde   : > { %v3420_v13 = vpop.xlane.xlu0 %3419 }
0x1cdf   : > { %v3424_v4 = vmul.f32 %v3420_v13, %v5046_v39 }
0x1ce1   : > { %v5935_v27 = vsub.f32 %v5905_v63, %v3424_v4 }
0x1ce3   : > { %v3432_v14 = vmul.f32 %v5935_v27, %v5935_v27 }
0x1ce5   : > { %v3442_v31 = vsel %vm1006_vm5, %v3432_v14, 0.0 }
0x1ce6   : > { %v3414_v3 = vpop.xlane.xlu1 %3413  ;;  %3443 = vadd.xlane.f32.xlu2 %v3442_v31 }
0x1ce7   : > { %v3422_v15 = vmul.f32 %v3414_v3, %v5046_v39 }
0x1ce8   : > { %3523 = vperm.xlu1 %4477, %v4386_v32  }
0x1ce9   : > { %v5945_v0 = vsub.f32 %v5914_v55, %v3422_v15 }
0x1ceb   : > { %v3430_v41 = vmul.f32 %v5945_v0, %v5945_v0 }
0x1ced   : > { %v3436_v9 = vsel %vm1006_vm5, %v3430_v41, 0.0 }
0x1cee   : > { %3437 = vadd.xlane.f32.xlu0 %v3436_v9  ;;  %v3411_v34 = vpop.xlane.xlu0 %3410 }
0x1cef   : > { %v3421_v29 = vmul.f32 %v3411_v34, %v5046_v39 }
0x1cf1   : > { %v5952_v56 = vsub.f32 %v5920_v18, %v3421_v29 }
0x1cf3   : > { %v3429_v33 = vmul.f32 %v5952_v56, %v5952_v56 }
0x1cf5   : > { %v3433_v10 = vsel %vm1006_vm5, %v3429_v33, 0.0 }
0x1cf6   : > { %3434 = vadd.xlane.f32.xlu2 %v3433_v10 }
0x1cfe   : > { %v3534_v51 = vpop.permute.xlu1 %3533 }
0x1d01   : > { %v3505_v62 = vpop.permute.xlu0 %3504 }
0x1d02   : > { %3499 = vperm.xlu0 %4475, %v4382_v2  }
0x1d0a   : > { %3582 = vperm.xlu0 %4475, %v4397_v25  }
0x1d0e   : > { %3528 = vperm.xlu2 %4476, %v4387_v40  }
0x1d16   : > { %3577 = vperm.xlu2 %4476, %v4396_v49  }
0x1d42   : > { %v3441_v52 = vpop.xlane.xlu1 %3440 }
0x1d43   : > { %v3447_v58 = vmul.f32 %v3441_v52, %v5046_v39 }
0x1d45   : > { %v3451_v60 = vadd.f32 1e-06, %v3447_v58 }
0x1d47   : > { %4680 = vrsqrt.f32 %v3451_v60  ;;  %vm3479_vm8 = vweird.f32 %v3451_v60 }
0x1d4d   : > { %v4681_v24 = vpop.eup %4680 }
0x1d4e   : > { %v3474_v36 = vmul.f32 %v4681_v24, %v3451_v60  ;;  %vm3480_vm15 = vweird.f32 %v4681_v24 }
0x1d4f   : > { %vm3481_vm13 = vmor %vm3479_vm8, %vm3480_vm15 }
0x1d50   : > { %v3475_v37 = vmul.f32 %v4681_v24, %v3474_v36 }
0x1d52   : > { %v3476_v43 = vmul.f32 0.5, %v3475_v37 }
0x1d54   : > { %v3477_v1 = vsub.f32 1.5, %v3476_v43 }
0x1d56   : > { %v3478_v8 = vmul.f32 %v4681_v24, %v3477_v1 }
0x1d58   : > { %v3482_v12 = vsel %vm3481_vm13, %v4681_v24, %v3478_v8 }
0x1d59   : > { %v3444_v5 = vpop.xlane.xlu2 %3443  ;;  %v3495_v53 = vmul.f32 %v3482_v12, %v3427_v42 }
0x1d5a   : > { %v3448_v6 = vmul.f32 %v3444_v5, %v5046_v39 }
0x1d5b   : > { %v3519_v61 = vmul.f32 %v5901_v11, %v3495_v53 }
0x1d5c   : > { %v3452_v7 = vadd.f32 1e-06, %v3448_v6  ;;  %v3524_v6 = vpop.permute.xlu1 %3523 }
0x1d5d   : > { %v3543_v22 = vadd.f32 %v3534_v51, %v3519_v61 }
0x1d5e   : > { %4682 = vrsqrt.f32 %v3452_v7  ;;  %vm3489_vm1 = vweird.f32 %v3452_v7 }
0x1d5f   : > { %v3551_v31 = vmin.f32 %v3543_v22, 0.0 }
0x1d61   : > { %v3438_v54 = vpop.xlane.xlu0 %3437  ;;  %v3557_v9 = vmul.f32 1.442695, %v3551_v31 }
0x1d62   : > { %v3446_v59 = vmul.f32 %v3438_v54, %v5046_v39 }
0x1d64   : > { %v4683_v38 = vpop.eup %4682  ;;  %v3450_v45 = vadd.f32 1e-06, %v3446_v59 }
0x1d65   : > { %v3484_v16 = vmul.f32 %v4683_v38, %v3452_v7  ;;  %vm3490_vm0 = vweird.f32 %v4683_v38 }
0x1d66   : > { %4684 = vrsqrt.f32 %v3450_v45  ;;  %vm3491_vm2 = vmor %vm3489_vm1, %vm3490_vm0  ;;  %vm3469_vm12 = vweird.f32 %v3450_v45  ;;  %vm3547_vm1 = vcmp.gt.f32.partialorder %v3543_v22, 0.0 }
0x1d67   : > { %v3485_v30 = vmul.f32 %v4683_v38, %v3484_v16 }
0x1d69   : > { %v3486_v17 = vmul.f32 0.5, %v3485_v30  ;;  %v3435_v57 = vpop.xlane.xlu2 %3434  ;;  %v4394_v30 = vld [vmem:[%s6175_s12 + $0x30] sm:$0xff] }
0x1d6a   : > { %v3445_v47 = vmul.f32 %v3435_v57, %v5046_v39 }
0x1d6b   : > { %v3487_v50 = vsub.f32 1.5, %v3486_v17  ;;  %v4395_v17 = vld [vmem:[%s6175_s12 + $0x38] sm:$0xff] }
0x1d6c   : > { %v4685_v44 = vpop.eup %4684  ;;  %v3449_v46 = vadd.f32 1e-06, %v3445_v47 }
0x1d6d   : > { %v3488_v23 = vmul.f32 %v4683_v38, %v3487_v50  ;;  %v3464_v13 = vmul.f32 %v4685_v44, %v3450_v45  ;;  %vm3470_vm3 = vweird.f32 %v4685_v44 }
0x1d6e   : > { %4686 = vrsqrt.f32 %v3449_v46  ;;  %vm3471_vm14 = vmor %vm3469_vm12, %vm3470_vm3  ;;  %vm3459_vm8 = vweird.f32 %v3449_v46 }
0x1d6f   : > { %v3492_v42 = vsel %vm3491_vm2, %v4683_v38, %v3488_v23  ;;  %v3465_v4 = vmul.f32 %v4685_v44, %v3464_v13  ;;  %4688 = vpow2.f32 %v3557_v9 }
0x1d70   : > { %v3496_v14 = vmul.f32 %v3492_v42, %v5935_v27  ;;  %v4401_v42 = vld [vmem:[%s6177_s14 + $0x38] sm:$0xff] }
0x1d71   : > { %v3466_v11 = vmul.f32 0.5, %v3465_v4  ;;  %v3529_v51 = vpop.permute.xlu2 %3528  ;;  %v4402_v4 = vld [vmem:[%s6178_s15 + $0x30] sm:$0xff] }
0x1d72   : > { %v3520_v32 = vmul.f32 %v5899_v48, %v3496_v14 }
0x1d73   : > { %v3467_v3 = vsub.f32 1.5, %v3466_v11 }
0x1d74   : > { %v4687_v15 = vpop.eup %4686  ;;  %v3544_v41 = vadd.f32 %v3539_v35, %v3520_v32 }
0x1d75   : > { %v3454_v34 = vmul.f32 %v4687_v15, %v3449_v46  ;;  %v3468_v29 = vmul.f32 %v4685_v44, %v3467_v3  ;;  %vm3460_vm15 = vweird.f32 %v4687_v15  ;;  %v4689_v60 = vpop.eup %4688 }
0x1d76   : > { %v3552_v33 = vmin.f32 %v3544_v41, 0.0  ;;  %vm3461_vm13 = vmor %vm3459_vm8, %vm3460_vm15  ;;  %v4392_v5 = vadd.f32 -1.0, %v4689_v60  ;;  %vm3548_vm0 = vcmp.gt.f32.partialorder %v3544_v41, 0.0 }
0x1d77   : > { %v3455_v10 = vmul.f32 %v4687_v15, %v3454_v34  ;;  %v3472_v2 = vsel %vm3471_vm14, %v4685_v44, %v3468_v29 }
0x1d78   : > { %v3494_v25 = vmul.f32 %v3472_v2, %v5945_v0  ;;  %v3559_v40 = vmul.f32 1.442695, %v3552_v33  ;;  %v3500_v0 = vpop.permute.xlu0 %3499  ;;  %v3567_v12 = vsel %vm3547_vm1, %v3543_v22, %v4392_v5  ;;  %v4403_v33 = vld [vmem:[%s6178_s15 + $0x38] sm:$0xff] }
0x1d79   : > { %v3456_v27 = vmul.f32 0.5, %v3455_v10  ;;  %v3578_v57 = vpop.permute.xlu2 %3577  ;;  %v4400_v10 = vld [vmem:[%s6177_s14 + $0x30] sm:$0xff] }
0x1d7a   : > { %v3518_v49 = vmul.f32 %v3505_v62, %v3494_v25  ;;  %4690 = vpow2.f32 %v3559_v40 }
0x1d7b   : > { %v3457_v48 = vsub.f32 1.5, %v3456_v27 }
0x1d7c   : > { %v3542_v52 = vadd.f32 %v3529_v51, %v3518_v49 }
0x1d7d   : > { %v3458_v58 = vmul.f32 %v4687_v15, %v3457_v48 }
0x1d7e   : > { %v3550_v24 = vmin.f32 %v3542_v52, 0.0  ;;  %vm3546_vm2 = vcmp.gt.f32.partialorder %v3542_v52, 0.0 }
0x1d7f   : > { %v3462_v36 = vsel %vm3461_vm13, %v4687_v15, %v3458_v58 }
0x1d80   : > { %v4691_v35 = vpop.eup %4690  ;;  %v3555_v37 = vmul.f32 1.442695, %v3550_v24  ;;  %v3493_v43 = vmul.f32 %v3462_v36, %v5952_v56  ;;  %v3583_v46 = vpop.permute.xlu0 %3582 }
0x1d81   : > { %v4393_v1 = vadd.f32 -1.0, %v4691_v35 }
0x1d82   : > { %4692 = vpow2.f32 %v3555_v37  ;;  %v3517_v62 = vmul.f32 %v3500_v0, %v3493_v43 }
0x1d83   : > { %v3568_v7 = vsel %vm3548_vm0, %v3544_v41, %v4393_v1 }
0x1d84   : > { %v3541_v8 = vadd.f32 %v3524_v6, %v3517_v62  ;;  %3603 = vmatpush.msrb.mxu3 %v3568_v7 }
0x1d86   : > { %v3549_v54 = vmin.f32 %v3541_v8, 0.0  ;;  %3604 = vmatpush.msrb.mxu3 %v3567_v12  ;;  %vm3545_vm3 = vcmp.gt.f32.partialorder %v3541_v8, 0.0 }
0x1d88   : > { %v4693_v59 = vpop.eup %4692  ;;  %v3553_v38 = vmul.f32 1.442695, %v3549_v54 }
0x1d89   : > { %v4391_v53 = vadd.f32 -1.0, %v4693_v59 }
0x1d8a   : > { %4694 = vpow2.f32 %v3553_v38 }
0x1d8b   : > { %v3566_v56 = vsel %vm3546_vm2, %v3542_v52, %v4391_v53  ;;  %vm3710_vm2 = vcmask 195584  }
0x1d8c   : > { %3605 = vmatpush.msrb.mxu3 %v3566_v56 }
0x1d90   : > { %v4695_v45 = vpop.eup %4694 }
0x1d91   : > { %v4390_v16 = vadd.f32 -1.0, %v4695_v45 }
0x1d93   : > { %v3565_v61 = vsel %vm3545_vm3, %v3541_v8, %v4390_v16  ;;  %vm6231_vm3 = vcmask 64512  }
0x1d94   : > { %3606 = vmatpush.msrb.mxu3 %v3565_v61 }
0x1d95   : > { %4398 = vmatmul.msk.f32.vlgmr.msrb.gmra.mxu3 %vm1202_vm9, %v4394_v30 }
0x1d9d   : > { %4399 = vmatmul.msk.f32.gmra.mxu3 %vm1202_vm9, %v4395_v17 }
0x1e18   : > { %v3608_v47 = vpop.f32.mrf.mxu3 }
0x1e19   : > { %v3609_v50 = vadd.f32 %v3608_v47, %v3578_v57 }
0x1e1b   : > { %v3620_v44 = vsel %vm1006_vm5, %v3609_v50, 0.0 }
0x1e1c   : > { %3621 = vadd.xlane.f32.xlu0 %v3620_v44 }
0x1e20   : > { %v3611_v22 = vpop.f32.mrf.mxu3 }
0x1e21   : > { %v3612_v23 = vadd.f32 %v3611_v22, %v3583_v46 }
0x1e23   : > { %v3623_v13 = vsel %vm1006_vm5, %v3612_v23, 0.0 }
0x1e24   : > { %3624 = vadd.xlane.f32.xlu1 %v3623_v13 }
0x1e30   : > { %3671 = vperm.xlu0 %4475, %v4401_v42  }
0x1e38   : > { %3678 = vperm.xlu0 %4475, %v4402_v4  }
0x1e8f   : > { %v3622_v14 = vpop.xlane.xlu0 %3621 }
0x1e90   : > { %v3626_v31 = vmul.f32 %v3622_v14, %v5046_v39 }
0x1e92   : > { %v3628_v11 = vsub.f32 %v3609_v50, %v3626_v31 }
0x1e94   : > { %v3630_v32 = vmul.f32 %v3628_v11, %v3628_v11 }
0x1e96   : > { %v3632_v3 = vsel %vm1006_vm5, %v3630_v32, 0.0 }
0x1e97   : > { %v3625_v15 = vpop.xlane.xlu1 %3624  ;;  %3633 = vadd.xlane.f32.xlu1 %v3632_v3 }
0x1e98   : > { %v3627_v41 = vmul.f32 %v3625_v15, %v5046_v39  ;;  %v4408_v15 = vld [vmem:[%s6180_s17 + $0x30] sm:$0xff] }
0x1e9a   : > { %v3629_v9 = vsub.f32 %v3612_v23, %v3627_v41  ;;  %v4409_v23 = vld [vmem:[%s6180_s17 + $0x38] sm:$0xff] }
0x1e9c   : > { %v3631_v34 = vmul.f32 %v3629_v9, %v3629_v9 }
0x1e9e   : > { %v3635_v29 = vsel %vm1006_vm5, %v3631_v34, 0.0 }
0x1e9f   : > { %3636 = vadd.xlane.f32.xlu2 %v3635_v29 }
0x1ea2   : > { %v3672_v60 = vpop.permute.xlu0 %3671 }
0x1eaa   : > { %v3679_v8 = vpop.permute.xlu0 %3678 }
0x1eb0   : > { %3683 = vperm.xlu1 %4477, %v4403_v33  }
0x1eb7   : > { %3666 = vperm.xlu2 %4476, %v4400_v10  }
0x1f0a   : > { %v3634_v2 = vpop.xlane.xlu1 %3633 }
0x1f0b   : > { %v3638_v25 = vmul.f32 %v3634_v2, %v5046_v39  ;;  %v4406_v2 = vld [vmem:[%s6179_s16 + $0x30] sm:$0xff] }
0x1f0d   : > { %v3640_v40 = vadd.f32 1e-06, %v3638_v25  ;;  %v4407_v25 = vld [vmem:[%s6179_s16 + $0x38] sm:$0xff] }
0x1f0f   : > { %4696 = vrsqrt.f32 %v3640_v40  ;;  %vm3648_vm12 = vweird.f32 %v3640_v40 }
0x1f12   : > { %v3637_v27 = vpop.xlane.xlu2 %3636 }
0x1f13   : > { %v3639_v49 = vmul.f32 %v3637_v27, %v5046_v39 }
0x1f15   : > { %v4697_v48 = vpop.eup %4696  ;;  %v3641_v51 = vadd.f32 1e-06, %v3639_v49 }
0x1f16   : > { %v3643_v52 = vmul.f32 %v4697_v48, %v3640_v40  ;;  %vm3649_vm9 = vweird.f32 %v4697_v48 }
0x1f17   : > { %4698 = vrsqrt.f32 %v3641_v51  ;;  %vm3650_vm14 = vmor %vm3648_vm12, %vm3649_vm9  ;;  %vm3658_vm8 = vweird.f32 %v3641_v51 }
0x1f18   : > { %v3644_v58 = vmul.f32 %v4697_v48, %v3643_v52  ;;  %vm6232_vm9 = vmmov %vm6231_vm3 }
0x1f1a   : > { %v3645_v24 = vmul.f32 0.5, %v3644_v58  ;;  %v3667_v6 = vpop.permute.xlu2 %3666 }
0x1f1c   : > { %v3646_v36 = vsub.f32 1.5, %v3645_v24  ;;  %v4415_v24 = vld [vmem:[%s6181_s18 + $0x38] sm:$0xff] }
0x1f1d   : > { %v4699_v35 = vpop.eup %4698 }
0x1f1e   : > { %v3653_v37 = vmul.f32 %v4699_v35, %v3641_v51  ;;  %v3647_v43 = vmul.f32 %v4697_v48, %v3646_v36  ;;  %vm3659_vm15 = vweird.f32 %v4699_v35  ;;  %v4416_v36 = vld [vmem:[%s6182_s19 + $0x30] sm:$0xff] }
0x1f1f   : > { %vm3660_vm13 = vmor %vm3658_vm8, %vm3659_vm15 }
0x1f20   : > { %v3654_v0 = vmul.f32 %v4699_v35, %v3653_v37  ;;  %v3651_v1 = vsel %vm3650_vm14, %v4697_v48, %v3647_v43 }
0x1f21   : > { %v3662_v5 = vmul.f32 %v3651_v1, %v3628_v11 }
0x1f22   : > { %v3655_v62 = vmul.f32 0.5, %v3654_v0  ;;  %v3684_v30 = vpop.permute.xlu1 %3683 }
0x1f23   : > { %v3674_v7 = vmul.f32 %v3667_v6, %v3662_v5 }
0x1f24   : > { %v3656_v12 = vsub.f32 1.5, %v3655_v62 }
0x1f25   : > { %v3686_v54 = vadd.f32 %v3679_v8, %v3674_v7 }
0x1f26   : > { %v3657_v59 = vmul.f32 %v4699_v35, %v3656_v12 }
0x1f27   : > { %v3690_v38 = vmin.f32 %v3686_v54, 0.0  ;;  %vm3688_vm0 = vcmp.gt.f32.partialorder %v3686_v54, 0.0 }
0x1f28   : > { %v3661_v53 = vsel %vm3660_vm13, %v4699_v35, %v3657_v59  ;;  %v4426_v35 = vld [vmem:[%s6184_s21 + $0x70] sm:$0xff]  ;;  %v4425_v59 = vld [vmem:[%s6184_s21 + $0x68] sm:$0xff] }
0x1f29   : > { %v3692_v56 = vmul.f32 1.442695, %v3690_v38  ;;  %v3663_v45 = vmul.f32 %v3661_v53, %v3629_v9  ;;  %v4414_v38 = vld [vmem:[%s6181_s18 + $0x30] sm:$0xff]  ;;  %v4424_v53 = vld [vmem:[%s6184_s21 + $0x60] sm:$0xff] }
0x1f2b   : > { %4700 = vpow2.f32 %v3692_v56  ;;  %v3675_v16 = vmul.f32 %v3672_v60, %v3663_v45  ;;  %v4427_v56 = vld [vmem:[%s6184_s21 + $0x78] sm:$0xff] }
0x1f2d   : > { %v3687_v61 = vadd.f32 %v3684_v30, %v3675_v16 }
0x1f2f   : > { %v3691_v17 = vmin.f32 %v3687_v61, 0.0  ;;  %vm3689_vm1 = vcmp.gt.f32.partialorder %v3687_v61, 0.0 }
0x1f31   : > { %v4701_v57 = vpop.eup %4700  ;;  %v3694_v47 = vmul.f32 1.442695, %v3691_v17 }
0x1f32   : > { %v4404_v50 = vadd.f32 -1.0, %v4701_v57 }
0x1f33   : > { %4702 = vpow2.f32 %v3694_v47 }
0x1f34   : > { %v3698_v44 = vsel %vm3688_vm0, %v3686_v54, %v4404_v50  ;;  %v4417_v54 = vld [vmem:[%s6182_s19 + $0x38] sm:$0xff] }
0x1f35   : > { %3702 = vrot.lane.b32.xlu0 %v3698_v44, %s4753_s9 }
0x1f39   : > { %v4703_v46 = vpop.eup %4702 }
0x1f3a   : > { %v4405_v22 = vadd.f32 -1.0, %v4703_v46 }
0x1f3c   : > { %v3699_v13 = vsel %vm3689_vm1, %v3687_v61, %v4405_v22 }
0x1f3d   : > { %3704 = vrot.lane.b32.xlu2 %v3699_v13, %s4753_s9  ;;  %3740 = vperm.xlu0 %4475, %v4409_v23  }
0x1f97   : > { %v3705_v42 = vpop.permute.xlu2 %3704 }
0x1f98   : > { %v3709_v4 = vsel %vm6231_vm3, 0.0, %v3705_v42 }
0x1f99   : > { %v3712_v11 = vsel %vm3710_vm2, %v3709_v4, 0.0 }
0x1fa7   : > { %v3703_v14 = vpop.permute.xlu0 %3702 }
0x1fa8   : > { %v3708_v31 = vsel %vm6232_vm9, 0.0, %v3703_v14 }
0x1fa9   : > { %v3711_v32 = vsel %vm3710_vm2, %v3708_v31, 0.0 }
0x1faa   : > { %v4513_v3 = vpack.i.bf16 %v3711_v32, %v3712_v11 }
0x1fac   : > { %4514 = vrot.lane.b32.xlu2 %v4513_v3, %s4752_s0  ;;  %4509 = vrot.lane.b32.xlu1 %v4513_v3, %s4754_s7 }
0x1faf   : > { %v3741_v51 = vpop.permute.xlu0 %3740 }
0x1fb4   : > { %3735 = vperm.xlu1 %4477, %v4408_v15  }
0x2006   : > { %v4515_v34 = vpop.permute.xlu2 %4514 }
0x2007   : > { %v4516_v33 = vunpack.i.l.bf16 %v4515_v34  ;;  %v4517_v10 = vunpack.i.h.bf16 %v4515_v34 }
0x201e   : > { %v4510_v41 = vpop.permute.xlu1 %4509 }
0x201f   : > { %v4511_v9 = vunpack.i.l.bf16 %v4510_v41  ;;  %v4512_v29 = vunpack.i.h.bf16 %v4510_v41 }
0x2021   : > { %3759 = vmatpush.msra.mxu0 %v4511_v9 }
0x2023   : > { %3760 = vmatpush.msra.mxu0 %v4512_v29 }
0x2025   : > { %3761 = vmatpush.msra.mxu0 %v4516_v33 }
0x2026   : > { %v3736_v40 = vpop.permute.xlu1 %3735 }
0x2027   : > { %3762 = vmatpush.msra.mxu0 %v4517_v10 }
0x2029   : > { %4410 = vmatpush.msk.msra.mxu0 %vm3710_vm2, %v3709_v4 }
0x202b   : > { %4411 = vmatpush.msk.msra.mxu0 %vm3710_vm2, %v3708_v31  ;;  %vm6233_vm2 = vcmask 254976  }
0x202c   : > { %4412 = vmatmul.msk.f32.vlgmr.msra.gmra.mxu0 %vm1581_vm10, %v4406_v2 }
0x2034   : > { %4413 = vmatmul.msk.f32.gmra.mxu0 %vm1581_vm10, %v4407_v25 }
0x20a9   : > { %v3766_v27 = vpop.f32.mrf.mxu0 }
0x20aa   : > { %v3767_v49 = vadd.f32 %v3766_v27, %v3736_v40 }
0x20ac   : > { %v3778_v48 = vsel %vm1006_vm5, %v3767_v49, 0.0 }
0x20ad   : > { %3779 = vadd.xlane.f32.xlu0 %v3778_v48 }
0x20b1   : > { %v3769_v52 = vpop.f32.mrf.mxu0 }
0x20b2   : > { %v3770_v58 = vadd.f32 %v3769_v52, %v3741_v51 }
0x20b4   : > { %v3781_v60 = vsel %vm1006_vm5, %v3770_v58, 0.0 }
0x20b5   : > { %3782 = vadd.xlane.f32.xlu2 %v3781_v60 }
0x20c1   : > { %3829 = vperm.xlu0 %4475, %v4415_v24  }
0x20c9   : > { %3836 = vperm.xlu0 %4475, %v4416_v36  }
0x20d1   : > { %3880 = vperm.xlu0 %4475, %v4426_v35   ;;  %v4420_v35 = vld [vmem:[%s6183_s20 + $0x60] sm:$0xff] }
0x2120   : > { %v3780_v37 = vpop.xlane.xlu0 %3779 }
0x2121   : > { %v3784_v43 = vmul.f32 %v3780_v37, %v5046_v39 }
0x2123   : > { %v3786_v0 = vsub.f32 %v3767_v49, %v3784_v43  ;;  %v4421_v43 = vld [vmem:[%s6183_s20 + $0x68] sm:$0xff] }
0x2125   : > { %v3788_v1 = vmul.f32 %v3786_v0, %v3786_v0 }
0x2127   : > { %v3790_v5 = vsel %vm1006_vm5, %v3788_v1, 0.0  ;;  %v4423_v1 = vld [vmem:[%s6183_s20 + $0x78] sm:$0xff] }
0x2128   : > { %v3783_v62 = vpop.xlane.xlu2 %3782  ;;  %3791 = vadd.xlane.f32.xlu2 %v3790_v5 }
0x2129   : > { %v3785_v6 = vmul.f32 %v3783_v62, %v5046_v39 }
0x212b   : > { %v3787_v7 = vsub.f32 %v3770_v58, %v3785_v6 }
0x212d   : > { %v3789_v8 = vmul.f32 %v3787_v7, %v3787_v7 }
0x212f   : > { %v3793_v12 = vsel %vm1006_vm5, %v3789_v8, 0.0 }
0x2130   : > { %3794 = vadd.xlane.f32.xlu1 %v3793_v12 }
0x2133   : > { %v3830_v4 = vpop.permute.xlu0 %3829 }
0x213b   : > { %v3837_v10 = vpop.permute.xlu0 %3836 }
0x2140   : > { %3841 = vperm.xlu2 %4476, %v4417_v54  }
0x2148   : > { %3875 = vperm.xlu2 %4476, %v4425_v59  }
0x2149   : > { %3824 = vperm.xlu1 %4477, %v4414_v38   ;;  %v3881_v38 = vpop.permute.xlu0 %3880 }
0x2151   : > { %3870 = vperm.xlu1 %4477, %v4424_v53  }
0x2159   : > { %3885 = vperm.xlu1 %4477, %v4427_v56  }
0x219b   : > { %v3792_v45 = vpop.xlane.xlu2 %3791 }
0x219c   : > { %v3796_v16 = vmul.f32 %v3792_v45, %v5046_v39 }
0x219e   : > { %v3798_v30 = vadd.f32 1e-06, %v3796_v16 }
0x21a0   : > { %4704 = vrsqrt.f32 %v3798_v30  ;;  %vm3806_vm12 = vweird.f32 %v3798_v30 }
0x21a3   : > { %v3795_v61 = vpop.xlane.xlu1 %3794  ;;  %v3842_v2 = vpop.permute.xlu2 %3841 }
0x21a4   : > { %v3797_v17 = vmul.f32 %v3795_v61, %v5046_v39 }
0x21a6   : > { %v4705_v57 = vpop.eup %4704  ;;  %v3799_v47 = vadd.f32 1e-06, %v3797_v17 }
0x21a7   : > { %v3801_v50 = vmul.f32 %v4705_v57, %v3798_v30  ;;  %vm3807_vm10 = vweird.f32 %v4705_v57 }
0x21a8   : > { %4706 = vrsqrt.f32 %v3799_v47  ;;  %vm3808_vm15 = vmor %vm3806_vm12, %vm3807_vm10  ;;  %vm3816_vm8 = vweird.f32 %v3799_v47 }
0x21a9   : > { %v3802_v44 = vmul.f32 %v4705_v57, %v3801_v50 }
0x21ab   : > { %v3803_v46 = vmul.f32 0.5, %v3802_v44  ;;  %v3876_v8 = vpop.permute.xlu2 %3875 }
0x21ad   : > { %v3804_v23 = vsub.f32 1.5, %v3803_v46 }
0x21ae   : > { %v4707_v22 = vpop.eup %4706 }
0x21af   : > { %v3811_v13 = vmul.f32 %v4707_v22, %v3799_v47  ;;  %v3805_v31 = vmul.f32 %v4705_v57, %v3804_v23  ;;  %vm3817_vm14 = vweird.f32 %v4707_v22 }
0x21b0   : > { %vm3818_vm13 = vmor %vm3816_vm8, %vm3817_vm14 }
0x21b1   : > { %v3812_v42 = vmul.f32 %v4707_v22, %v3811_v13  ;;  %v3809_v3 = vsel %vm3808_vm15, %v4705_v57, %v3805_v31 }
0x21b2   : > { %v3820_v9 = vmul.f32 %v3809_v3, %v3786_v0  ;;  %v4422_v0 = vld [vmem:[%s6183_s20 + $0x70] sm:$0xff] }
0x21b3   : > { %v3813_v14 = vmul.f32 0.5, %v3812_v42 }
0x21b5   : > { %v3814_v11 = vsub.f32 1.5, %v3813_v14 }
0x21b7   : > { %v3815_v32 = vmul.f32 %v4707_v22, %v3814_v11 }
0x21b9   : > { %v3819_v15 = vsel %vm3818_vm13, %v4707_v22, %v3815_v32  ;;  %v4432_v32 = vld [vmem:[%s6185_s22 + $0x6] sm:$0x3] }
0x21ba   : > { %v3821_v41 = vmul.f32 %v3819_v15, %v3787_v7 }
0x21bb   : > { %v3825_v34 = vpop.permute.xlu1 %3824 }
0x21bc   : > { %v3833_v29 = vmul.f32 %v3830_v4, %v3821_v41  ;;  %v3832_v33 = vmul.f32 %v3825_v34, %v3820_v9 }
0x21be   : > { %v3845_v25 = vadd.f32 %v3842_v2, %v3833_v29  ;;  %v3844_v40 = vadd.f32 %v3837_v10, %v3832_v33  ;;  %v4435_v29 = vld [vmem:[%s6187_s24 + $0x68] sm:$0xff]  ;;  %v4434_v33 = vld [vmem:[%s6187_s24 + $0x60] sm:$0xff] }
0x21c0   : > { %v3849_v27 = vmin.f32 %v3845_v25, 0.0  ;;  %v3848_v49 = vmin.f32 %v3844_v40, 0.0  ;;  %vm3847_vm0 = vcmp.gt.f32.partialorder %v3845_v25, 0.0  ;;  %vm3846_vm1 = vcmp.gt.f32.partialorder %v3844_v40, 0.0 }
0x21c2   : > { %v3852_v48 = vmul.f32 1.442695, %v3849_v27  ;;  %v3850_v51 = vmul.f32 1.442695, %v3848_v49  ;;  %v4437_v49 = vld [vmem:[%s6187_s24 + $0x78] sm:$0xff] }
0x21c3   : > { %v3871_v5 = vpop.permute.xlu1 %3870 }
0x21c4   : > { %4708 = vpow2.f32 %v3852_v48  ;;  %v4436_v48 = vld [vmem:[%s6187_s24 + $0x70] sm:$0xff] }
0x21c5   : > { %4710 = vpow2.f32 %v3850_v51 }
0x21ca   : > { %v4709_v52 = vpop.eup %4708 }
0x21cb   : > { %v4711_v58 = vpop.eup %4710  ;;  %v4419_v60 = vadd.f32 -1.0, %v4709_v52  ;;  %v3886_v16 = vpop.permute.xlu1 %3885 }
0x21cc   : > { %v4418_v24 = vadd.f32 -1.0, %v4711_v58 }
0x21cd   : > { %v3857_v36 = vsel %vm3847_vm0, %v3845_v25, %v4419_v60  ;;  %v4439_v60 = vld [vmem:[%s6188_s25 + $0x68] sm:$0xff] }
0x21ce   : > { %3914 = vmatpush.msra.mxu2 %v3857_v36  ;;  %v3856_v37 = vsel %vm3846_vm1, %v3844_v40, %v4418_v24  ;;  %v4438_v24 = vld [vmem:[%s6188_s25 + $0x60] sm:$0xff] }
0x21d0   : > { %3915 = vmatpush.msra.mxu2 %v3856_v37 }
0x21d1   : > { %4428 = vmatmul.msk.f32.vlgmr.msra.gmra.mxu2 %vm1006_vm5, %v4420_v35 }
0x21d9   : > { %4429 = vmatmul.msk.f32.gmra.mxu2 %vm1006_vm5, %v4421_v43 }
0x21e1   : > { %4430 = vmatmul.msk.f32.gmra.mxu2 %vm1006_vm5, %v4422_v0 }
0x21e9   : > { %4431 = vmatmul.msk.f32.gmra.mxu2 %vm1006_vm5, %v4423_v1 }
0x2254   : > { %v3917_v62 = vpop.f32.mrf.mxu2 }
0x2255   : > { %v6075_v6 = vadd.f32 %v3917_v62, %v3871_v5 }
0x2257   : > { %v3929_v7 = vsel %vm1006_vm5, %v6075_v6, 0.0 }
0x2258   : > { %3930 = vadd.xlane.f32.xlu2 %v3929_v7  ;;  %v4441_v7 = vld [vmem:[%s6188_s25 + $0x78] sm:$0xff] }
0x225c   : > { %v3920_v12 = vpop.f32.mrf.mxu2 }
0x225d   : > { %v6079_v54 = vadd.f32 %v3920_v12, %v3876_v8  ;;  %v4440_v8 = vld [vmem:[%s6188_s25 + $0x70] sm:$0xff] }
0x225f   : > { %v3932_v59 = vsel %vm1006_vm5, %v6079_v54, 0.0 }
0x2260   : > { %3933 = vadd.xlane.f32.xlu0 %v3932_v59 }
0x2264   : > { %v3923_v53 = vpop.f32.mrf.mxu2 }
0x2265   : > { %v6083_v56 = vadd.f32 %v3923_v53, %v3881_v38 }
0x2267   : > { %v3935_v45 = vsel %vm1006_vm5, %v6083_v56, 0.0 }
0x2268   : > { %3936 = vadd.xlane.f32.xlu1 %v3935_v45 }
0x226c   : > { %v3926_v30 = vpop.f32.mrf.mxu2 }
0x226d   : > { %v6087_v61 = vadd.f32 %v3926_v30, %v3886_v16 }
0x226f   : > { %v3938_v17 = vsel %vm1006_vm5, %v6087_v61, 0.0 }
0x2270   : > { %3939 = vadd.xlane.f32.xlu2 %v3938_v17 }
0x22cb   : > { %v3931_v57 = vpop.xlane.xlu2 %3930 }
0x22cc   : > { %v3941_v22 = vmul.f32 %v3931_v57, %v5046_v39 }
0x22ce   : > { %v3951_v4 = vperm.slane %v3941_v22, %v5319_v19 }
0x22d3   : > { %v3934_v47 = vpop.xlane.xlu0 %3933 }
0x22d4   : > { %v3942_v44 = vmul.f32 %v3934_v47, %v5046_v39 }
0x22d6   : > { %v3952_v23 = vperm.slane %v3942_v44, %v5322_v20 }
0x22d8   : > { %v3953_v31 = vsel %vm1790_vm4, %v3952_v23, %v3951_v4 }
0x22db   : > { %v3937_v50 = vpop.xlane.xlu1 %3936 }
0x22dc   : > { %v3943_v46 = vmul.f32 %v3937_v50, %v5046_v39 }
0x22de   : > { %v3954_v13 = vperm.slane %v3943_v46, %v5326_v21 }
0x22e0   : > { %v3955_v3 = vsel %vm1794_vm6, %v3954_v13, %v3953_v31 }
0x22e3   : > { %v3940_v42 = vpop.xlane.xlu2 %3939 }
0x22e4   : > { %v3944_v14 = vmul.f32 %v3940_v42, %v5046_v39  ;;  %v4433_v39 = vld [vmem:[%s6186_s23 + $0x6] sm:$0x3] }
0x22e6   : > { %v3956_v11 = vperm.slane %v3944_v14, %v5332_v26 }
0x22e8   : > { %v3957_v15 = vsel %vm1798_vm7, %v3956_v11, %v3955_v3 }
0x22e9   : > { %v3959_v20 = vmul.f32 %v4432_v32, %v3957_v15 }
0x22eb   : > { %v3960_v21 = vsel %vm6233_vm2, %v3959_v20, 0.0 }
0x22ec   : > { %3961 = vadd.xlane.f32.xlu0 %v3960_v21 }
0x235f   : > { %v3962_v41 = vpop.xlane.xlu0 %3961 }
0x2360   : > { %v3965_v9 = vadd.f32 %v4433_v39, %v3962_v41 }
0x2362   : > { %v3966_v34 = vmax.f32 %v3965_v9, 0.0 }
0x2364   : > { %3974 = vperm.xlu1 %4477, %v3966_v34  }
0x23d6   : > { %v3975_v26 = vpop.permute.xlu1 %3974 }
0x23d7   : > { %v3976_v10 = vperm.slane %v3975_v26, %v5319_v19 }
0x23d9   : > { %v3985_v2 = vmul.f32 %v4435_v29, %v3976_v10  ;;  %v3984_v25 = vmul.f32 %v4434_v33, %v3976_v10  ;;  %v3987_v51 = vmul.f32 %v4437_v49, %v3976_v10  ;;  %v3986_v52 = vmul.f32 %v4436_v48, %v3976_v10 }
0x23db   : > { %v3991_v40 = vsel %vm1833_vm11, %v3985_v2, 0.0  ;;  %v3988_v27 = vsel %vm1833_vm11, %v3984_v25, 0.0  ;;  %v3997_v19 = vsel %vm1833_vm11, %v3987_v51, 0.0  ;;  %v3994_v58 = vsel %vm1833_vm11, %v3986_v52, 0.0 }
0x23dc   : > { %3992 = vadd.xlane.f32.xlu0 %v3991_v40  ;;  %3989 = vadd.xlane.f32.xlu2 %v3988_v27 }
0x23e4   : > { %3998 = vadd.xlane.f32.xlu0 %v3997_v19  ;;  %3995 = vadd.xlane.f32.xlu2 %v3994_v58 }
0x244f   : > { %v3993_v36 = vpop.xlane.xlu0 %3992  ;;  %v3990_v35 = vpop.xlane.xlu2 %3989 }
0x2450   : > { %v4006_v37 = vadd.f32 %v4439_v60, %v3993_v36  ;;  %v4005_v43 = vadd.f32 %v4438_v24, %v3990_v35 }
0x2452   : > { %v4010_v0 = vmax.f32 %v4006_v37, 0.0  ;;  %v4009_v1 = vmax.f32 %v4005_v43, 0.0 }
0x2454   : > { %v4443_v5 = vmul.f32 -1.442695, %v4010_v0  ;;  %v4442_v62 = vmul.f32 -1.442695, %v4009_v1 }
0x2456   : > { %4712 = vpow2.f32 %v4443_v5 }
0x2457   : > { %4714 = vpow2.f32 %v4442_v62  ;;  %v3999_v12 = vpop.xlane.xlu0 %3998  ;;  %v3996_v59 = vpop.xlane.xlu2 %3995 }
0x2458   : > { %v4008_v38 = vadd.f32 %v4441_v7, %v3999_v12  ;;  %v4007_v53 = vadd.f32 %v4440_v8, %v3996_v59 }
0x245a   : > { %v4012_v45 = vmax.f32 %v4008_v38, 0.0  ;;  %v4011_v16 = vmax.f32 %v4007_v53, 0.0 }
0x245c   : > { %v4713_v30 = vpop.eup %4712  ;;  %v4445_v17 = vmul.f32 -1.442695, %v4012_v45  ;;  %v4444_v50 = vmul.f32 -1.442695, %v4011_v16 }
0x245d   : > { %v4715_v57 = vpop.eup %4714  ;;  %v4026_v47 = vadd.f32 1.0, %v4713_v30 }
0x245e   : > { %v4025_v44 = vadd.f32 1.0, %v4715_v57  ;;  %4716 = vpow2.f32 %v4445_v17 }
0x245f   : > { %4718 = vrcp.f32 %v4026_v47  ;;  %v4053_v32 = vand.u32 2147483647, %v4026_v47  ;;  %v4055_v3 = vand.u32 2147483648, %v4026_v47  ;;  %vm4049_vm7 = vweird.f32 %v4026_v47 }
0x2460   : > { %4720 = vrcp.f32 %v4025_v44  ;;  %v4040_v21 = vand.u32 2147483648, %v4025_v44  ;;  %v4038_v41 = vand.u32 2147483647, %v4025_v44  ;;  %vm4034_vm3 = vweird.f32 %v4025_v44 }
0x2461   : > { %4722 = vpow2.f32 %v4444_v50  ;;  %v4056_v26 = vor.u32 1.1754944e-38, %v4055_v3  ;;  %vm4054_vm9 = vcmp.eq.f32.partialorder %v4053_v32, 8.507059e+37 }
0x2462   : > { %v4041_v10 = vor.u32 1.1754944e-38, %v4040_v21  ;;  %vm4039_vm12 = vcmp.eq.f32.partialorder %v4038_v41, 8.507059e+37 }
0x2464   : > { %v4717_v46 = vpop.eup %4716 }
0x2465   : > { %v4719_v22 = vpop.eup %4718  ;;  %v4028_v23 = vadd.f32 1.0, %v4717_v46 }
0x2466   : > { %v4721_v13 = vpop.eup %4720  ;;  %v4045_v42 = vmul.f32 %v4719_v22, %v4026_v47  ;;  %vm4050_vm4 = vweird.f32 %v4719_v22 }
0x2467   : > { %v4723_v4 = vpop.eup %4722  ;;  %4724 = vrcp.f32 %v4028_v23  ;;  %v4030_v14 = vmul.f32 %v4721_v13, %v4025_v44  ;;  %vm4035_vm6 = vweird.f32 %v4721_v13  ;;  %vm4051_vm11 = vmor %vm4049_vm7, %vm4050_vm4  ;;  %v4085_v1 = vand.u32 2147483648, %v4028_v23 }
0x2468   : > { %v4027_v31 = vadd.f32 1.0, %v4723_v4  ;;  %v4046_v11 = vsub.f32 1.0, %v4045_v42  ;;  %vm4036_vm10 = vmor %vm4034_vm3, %vm4035_vm6  ;;  %vm4079_vm1 = vweird.f32 %v4028_v23  ;;  %v4083_v5 = vand.u32 2147483647, %v4028_v23 }
0x2469   : > { %v4031_v15 = vsub.f32 1.0, %v4030_v14  ;;  %v4086_v7 = vor.u32 1.1754944e-38, %v4085_v1 }
0x246a   : > { %4726 = vrcp.f32 %v4027_v31  ;;  %v4047_v20 = vmul.f32 %v4719_v22, %v4046_v11  ;;  %v4070_v19 = vand.u32 2147483648, %v4027_v31  ;;  %v4068_v60 = vand.u32 2147483647, %v4027_v31 }
0x246b   : > { %v4032_v39 = vmul.f32 %v4721_v13, %v4031_v15  ;;  %vm4064_vm15 = vweird.f32 %v4027_v31  ;;  %vm4084_vm4 = vcmp.eq.f32.partialorder %v4083_v5, 8.507059e+37 }
0x246c   : > { %v4048_v9 = vadd.f32 %v4719_v22, %v4047_v20  ;;  %v4071_v35 = vor.u32 1.1754944e-38, %v4070_v19  ;;  %vm4069_vm13 = vcmp.eq.f32.partialorder %v4068_v60, 8.507059e+37 }
0x246d   : > { %v4725_v34 = vpop.eup %4724  ;;  %v4033_v29 = vadd.f32 %v4721_v13, %v4032_v39 }
0x246e   : > { %v4052_v33 = vsel %vm4051_vm11, %v4719_v22, %v4048_v9  ;;  %v4075_v40 = vmul.f32 %v4725_v34, %v4028_v23  ;;  %vm4080_vm0 = vweird.f32 %v4725_v34 }
0x246f   : > { %v4057_v2 = vsel %vm4054_vm9, %v4056_v26, %v4052_v33  ;;  %v4037_v25 = vsel %vm4036_vm10, %v4721_v13, %v4033_v29  ;;  %vm4081_vm2 = vmor %vm4079_vm1, %vm4080_vm0 }
0x2470   : > { %v4727_v27 = vpop.eup %4726  ;;  %4096 = vperm.xlu0 %4475, %v4057_v2   ;;  %v4042_v49 = vsel %vm4039_vm12, %v4041_v10, %v4037_v25  ;;  %v4076_v52 = vsub.f32 1.0, %v4075_v40 }
0x2471   : > { %4091 = vperm.xlu2 %4476, %v4042_v49   ;;  %v4060_v48 = vmul.f32 %v4727_v27, %v4027_v31  ;;  %vm4065_vm14 = vweird.f32 %v4727_v27 }
0x2472   : > { %v4077_v36 = vmul.f32 %v4725_v34, %v4076_v52  ;;  %vm4066_vm8 = vmor %vm4064_vm15, %vm4065_vm14 }
0x2473   : > { %v4061_v51 = vsub.f32 1.0, %v4060_v48 }
0x2474   : > { %v4078_v0 = vadd.f32 %v4725_v34, %v4077_v36 }
0x2475   : > { %v4062_v58 = vmul.f32 %v4727_v27, %v4061_v51 }
0x2476   : > { %v4082_v62 = vsel %vm4081_vm2, %v4725_v34, %v4078_v0 }
0x2477   : > { %v4063_v24 = vadd.f32 %v4727_v27, %v4062_v58  ;;  %v4087_v8 = vsel %vm4084_vm4, %v4086_v7, %v4082_v62 }
0x2479   : > { %v4067_v37 = vsel %vm4066_vm8, %v4727_v27, %v4063_v24 }
0x247a   : > { %v4072_v43 = vsel %vm4069_vm13, %v4071_v35, %v4067_v37 }
0x247b   : > { %4101 = vperm.xlu1 %4477, %v4072_v43  }
0x2483   : > { %4106 = vperm.xlu1 %4477, %v4087_v8  }
0x24cb   : > { %v4092_v12 = vpop.permute.xlu2 %4091 }
0x24cc   : > { %v4109_v59 = vmul.f32 %v4092_v12, %v6075_v6 }
0x24ce   : > { %v4113_v38 = vadd.f32 %v4109_v59, %v5920_v18 }
0x24d0   : > { %v4121_v53 = vmin.f32 %v4113_v38, 0.0  ;;  %vm4117_vm6 = vcmp.gt.f32.partialorder %v4113_v38, 0.0 }
0x24d2   : > { %v4125_v45 = vmul.f32 1.442695, %v4121_v53 }
0x24d4   : > { %4728 = vpow2.f32 %v4125_v45 }
0x24da   : > { %v4729_v16 = vpop.eup %4728 }
0x24db   : > { %v4446_v30 = vadd.f32 -1.0, %v4729_v16 }
0x24dd   : > { %v4137_v17 = vsel %vm4117_vm6, %v4113_v38, %v4446_v30 }
0x24de   : > { %4141 = vst.msk [vmem:[%s6144_s4] sm:$0xff] %vm1006_vm5, %v4137_v17 }
0x24e2   : > { %v4097_v6 = vpop.permute.xlu0 %4096 }
0x24e3   : > { %v4110_v18 = vmul.f32 %v4097_v6, %v6079_v54 }
0x24e5   : > { %v4114_v57 = vadd.f32 %v4110_v18, %v5914_v55 }
0x24e7   : > { %v4122_v47 = vmin.f32 %v4114_v57, 0.0  ;;  %vm4118_vm7 = vcmp.gt.f32.partialorder %v4114_v57, 0.0 }
0x24e9   : > { %v4127_v50 = vmul.f32 1.442695, %v4122_v47 }
0x24eb   : > { %4730 = vpow2.f32 %v4127_v50 }
0x24ed   : > { %v4102_v44 = vpop.permute.xlu1 %4101 }
0x24ee   : > { %v4111_v46 = vmul.f32 %v4102_v44, %v6083_v56 }
0x24f0   : > { %v4115_v22 = vadd.f32 %v4111_v46, %v5895_v28 }
0x24f1   : > { %v4731_v23 = vpop.eup %4730 }
0x24f2   : > { %v4447_v13 = vadd.f32 -1.0, %v4731_v23  ;;  %v4123_v42 = vmin.f32 %v4115_v22, 0.0  ;;  %vm4119_vm11 = vcmp.gt.f32.partialorder %v4115_v22, 0.0 }
0x24f4   : > { %v4138_v4 = vsel %vm4118_vm7, %v4114_v57, %v4447_v13  ;;  %v4129_v14 = vmul.f32 1.442695, %v4123_v42 }
0x24f5   : > { %4142 = vst.msk [vmem:[%s6144_s4 + $0x8] sm:$0xff] %vm1006_vm5, %v4138_v4  ;;  %v4107_v54 = vpop.permute.xlu1 %4106 }
0x24f6   : > { %4732 = vpow2.f32 %v4129_v14  ;;  %v4112_v55 = vmul.f32 %v4107_v54, %v6087_v61 }
0x24f8   : > { %v4116_v31 = vadd.f32 %v4112_v55, %v5905_v63 }
0x24fa   : > { %v4124_v11 = vmin.f32 %v4116_v31, 0.0  ;;  %vm4120_vm3 = vcmp.gt.f32.partialorder %v4116_v31, 0.0 }
0x24fc   : > { %v4733_v56 = vpop.eup %4732  ;;  %v4131_v32 = vmul.f32 1.442695, %v4124_v11 }
0x24fd   : > { %v4448_v28 = vadd.f32 -1.0, %v4733_v56 }
0x24fe   : > { %4734 = vpow2.f32 %v4131_v32 }
0x24ff   : > { %v4139_v3 = vsel %vm4119_vm11, %v4115_v22, %v4448_v28 }
0x2500   : > { %4143 = vst.msk [vmem:[%s6144_s4 + $0x10] sm:$0xff] %vm1006_vm5, %v4139_v3 }
0x2504   : > { %v4735_v15 = vpop.eup %4734 }
0x2505   : > { %v4449_v20 = vadd.f32 -1.0, %v4735_v15 }
0x2507   : > { %v4140_v21 = vsel %vm4120_vm3, %v4116_v31, %v4449_v20 }
0x2508   : > { %4144 = vst.msk [vmem:[%s6144_s4 + $0x18] sm:$0xff] %vm1006_vm5, %v4140_v21 }
0x2509 PF: > { %s36_s27 = sadd.s32 1, %s4742_s27  }
0x250a   : > { %p33_p4 = scmp.ge.s32.totalorder %s36_s27, 4  }
0x250c   :  { %35 = sbr.rel (!%p33_p4) target bundleno = 12 (0xc), region = 205 }

</bundles_post_ra>
